<compile_context>
chip_gen: v7x
topology: tpu7x:2x2x1
jax: 0.10.0
libtpu: 0.0.40
codegen_flags: <defaults>
</compile_context>

<pallas_src>
import functools

import jax
import jax.numpy as jnp
from jax import lax
from jax.experimental import pallas as pl
from jax.experimental.pallas import tpu as pltpu


def _round_up(a: int, b: int) -> int:
    return (a + b - 1) // b * b


def _vmem_capacity_bytes() -> int:
    """Physical VMEM per TensorCore, with a conservative fallback."""
    try:
        cap = int(pltpu.get_tpu_info().vmem_capacity_bytes)
        if cap > 0:
            return cap
    except Exception:
        pass
    return 64 << 20  # v7x per-TC capacity (most conservative)


def _spdiff_kernel(a_ref, xw_ref, b_ref, dinv_ref, out_ref, *scratch,
                   t, n_tiles, tm, alpha, self_term,
                   include_fwd, include_trans, compute_dtype):
    f32 = jnp.float32

    idx = 0
    if include_fwd:
        z1a, z1b, acc_f = scratch[idx], scratch[idx + 1], scratch[idx + 2]
        idx += 3
    if include_trans:
        z2a, z2b, t2, acc_t = (scratch[idx], scratch[idx + 1],
                               scratch[idx + 2], scratch[idx + 3])

    s = pl.program_id(0)                      # diffusion step   (0 .. t-1)
    r = pl.program_id(1)                      # A row-tile index (0 .. n_tiles-1)
    row0 = pl.multiple_of(r * tm, tm)

    # ---- one-time init (first grid point): copy xw (= x @ W, computed in the
    # wrapper) into the propagated state and seed the accumulators with the
    # identity term of K. ----
    @pl.when(jnp.logical_and(s == 0, r == 0))
    def _init():
        xw_c = xw_ref[...]                                   # (n_pad, F) cdt
        if self_term != 0.0:
            acc0 = xw_c.astype(f32) * self_term
        else:
            acc0 = jnp.zeros(xw_c.shape, f32)
        if include_fwd:
            z1a[...] = xw_c
            acc_f[...] = acc0
        if include_trans:
            z2a[...] = xw_c
            acc_t[...] = acc0

    # Coefficient folded into the propagated state:
    #   y_1 = alpha * P y_0 ;   y_{i+1} = (1 - alpha) * P y_i
    scale = jnp.where(s == 0, alpha, 1.0 - alpha).astype(f32)
    a = a_ref[...]                                           # (tm, n_pad) cdt
    # scale folded into deg_inv once per tile: (tm, 1) multiply, not (tm, F).
    sdinv_rows = scale * dinv_ref[pl.ds(row0, tm), :]        # (tm, 1) f32

    def fwd_step(z_old, z_new):
        # rows [row0, row0+tm) of y_{s+1} = scale * deg_inv ⊙ (A @ y_s)
        h = jnp.dot(a, z_old[...], preferred_element_type=f32)   # (tm, F) f32
        y_tile = sdinv_rows * h
        z_new[pl.ds(row0, tm), :] = y_tile.astype(compute_dtype)
        acc_f[pl.ds(row0, tm), :] += y_tile

    def trans_step(z_old, z_new):
        # partial Aᵀ @ y_s contribution of this row tile, accumulated in f32.
        y_rows = z_old[pl.ds(row0, tm), :]                       # (tm, F)
        contrib = lax.dot_general(a, y_rows, (((0,), (0,)), ((), ())),
                                  preferred_element_type=f32)    # (n_pad, F)

        @pl.when(r == 0)
        def _():
            t2[...] = contrib

        @pl.when(r != 0)
        def _():
            t2[...] += contrib

        @pl.when(r == n_tiles - 1)
        def _():
            y_full = (scale * dinv_ref[...]) * t2[...]
            z_new[...] = y_full.astype(compute_dtype)
            acc_t[...] += y_full

    # Ping-pong y buffers selected by step parity (static refs under pl.when).
    is_even = lax.rem(s, 2) == 0

    @pl.when(is_even)
    def _even():
        if include_fwd:
            fwd_step(z1a, z1b)
        if include_trans:
            trans_step(z2a, z2b)

    @pl.when(jnp.logical_not(is_even))
    def _odd():
        if include_fwd:
            fwd_step(z1b, z1a)
        if include_trans:
            trans_step(z2b, z2a)

    # ---- finalize: bias + ReLU per branch, sum, one lane-dense store. ------
    @pl.when(jnp.logical_and(s == t - 1, r == n_tiles - 1))
    def _finish():
        bias = b_ref[...]                                        # (1, F) f32
        total = None
        if include_fwd:
            total = jnp.maximum(acc_f[...] + bias, 0.0)
        if include_trans:
            y_t = jnp.maximum(acc_t[...] + bias, 0.0)
            total = y_t if total is None else total + y_t
        out_ref[...] = total.astype(out_ref.dtype)


def _spdiff_pallas(x, adj, w, b, *, alpha, t, remove_self_loop, block_rows,
                   compute_dtype, include_fwd, include_trans):
    assert include_fwd or include_trans
    assert t >= 1, "diffusion requires t >= 1 (torch module default is t=1)"
    n, f_in = x.shape
    f_out = w.shape[1]

    # Tiny wrapper-side preprocessing (keeps N^2 VPU masking out of the kernel):
    # self-loop removal, degree-normalization vector, and x @ W (applied once,
    # shared by both branches).
    if remove_self_loop:
        adj = adj * (1.0 - jnp.eye(n, dtype=adj.dtype))
    deg = adj.sum(axis=1) + adj.sum(axis=0)
    deg_inv = jnp.where(deg == 0.0, 0.0, 1.0 / deg)                 # (N,)
    xw = jnp.dot(x.astype(jnp.float32), w.astype(jnp.float32))      # (N, F_out)

    cdt = jnp.dtype(compute_dtype)
    itm = cdt.itemsize
    fout_p = _round_up(f_out, 128)
    n128 = _round_up(n, 128)

    n_cdt_state = (2 if include_fwd else 0) + (2 if include_trans else 0)
    n_f32_state = (1 if include_fwd else 0) + (2 if include_trans else 0)

    def est_bytes(tm_c, n_pad_c):
        a_tiles = 2 * tm_c * n_pad_c * itm                   # double-buffered
        xw_in = 2 * n_pad_c * fout_p * itm
        state = n_pad_c * fout_p * (n_cdt_state * itm + n_f32_state * 4)
        out_buf = 2 * n_pad_c * fout_p * 4
        dinv_buf = 2 * n_pad_c * 128 * 4                     # (N,1) lane pad
        bias_buf = 2 * 8 * fout_p * 4
        return a_tiles + xw_in + state + out_buf + dinv_buf + bias_buf

    cap = _vmem_capacity_bytes()
    budget = max(cap - (8 << 20), 24 << 20)

    # Row-tile size: largest candidate that fits the VMEM budget. When the
    # whole A fits (tm == n_pad) its block index is constant -> fetched once.
    if block_rows is None:
        candidates = [n128] + [c for c in (1024, 512, 256, 128) if c < n128]
    else:
        br = min(_round_up(max(int(block_rows), 128), 128), n128)
        candidates = [br] + [c for c in (512, 256, 128) if c < br]
    tm = candidates[-1]
    for c in candidates:
        if est_bytes(c, _round_up(n, c)) <= budget:
            tm = c
            break

    n_pad = _round_up(n, tm)
    n_tiles = n_pad // tm

    adj_p = jnp.pad(adj.astype(cdt), ((0, n_pad - n), (0, n_pad - n)))
    xw_p = jnp.pad(xw, ((0, n_pad - n), (0, fout_p - f_out))).astype(cdt)
    b_p = jnp.pad(b.astype(jnp.float32), (0, fout_p - f_out)).reshape(1, fout_p)
    dinv_p = jnp.pad(deg_inv.astype(jnp.float32),
                     (0, n_pad - n)).reshape(n_pad, 1)

    kernel = functools.partial(
        _spdiff_kernel, t=int(t), n_tiles=n_tiles, tm=tm, alpha=float(alpha),
        self_term=0.0 if remove_self_loop else 1.0,
        include_fwd=include_fwd, include_trans=include_trans,
        compute_dtype=cdt)

    est = est_bytes(tm, n_pad)
    vmem_limit = int(min(max(cap - (2 << 20), 24 << 20),
                         max(est + (8 << 20), 32 << 20)))

    scratch_shapes = []
    if include_fwd:
        scratch_shapes += [pltpu.VMEM((n_pad, fout_p), cdt),          # y fwd even
                           pltpu.VMEM((n_pad, fout_p), cdt),          # y fwd odd
                           pltpu.VMEM((n_pad, fout_p), jnp.float32)]  # fwd acc
    if include_trans:
        scratch_shapes += [pltpu.VMEM((n_pad, fout_p), cdt),          # y trans even
                           pltpu.VMEM((n_pad, fout_p), cdt),          # y trans odd
                           pltpu.VMEM((n_pad, fout_p), jnp.float32),  # Aᵀ@y partial
                           pltpu.VMEM((n_pad, fout_p), jnp.float32)]  # trans acc

    out = pl.pallas_call(
        kernel,
        out_shape=jax.ShapeDtypeStruct((n_pad, fout_p), jnp.float32),
        grid=(int(t), n_tiles),
        in_specs=[
            pl.BlockSpec((tm, n_pad), lambda s, r: (r, 0)),        # A row tile
            pl.BlockSpec((n_pad, fout_p), lambda s, r: (0, 0)),    # xw (resident)
            pl.BlockSpec((1, fout_p), lambda s, r: (0, 0)),        # bias
            pl.BlockSpec((n_pad, 1), lambda s, r: (0, 0)),         # deg_inv
        ],
        out_specs=pl.BlockSpec((n_pad, fout_p), lambda s, r: (0, 0)),
        scratch_shapes=scratch_shapes,
        compiler_params=pltpu.CompilerParams(
            dimension_semantics=("arbitrary", "arbitrary"),
            vmem_limit_bytes=vmem_limit),
    )(adj_p, xw_p, b_p, dinv_p)
    return out[:n, :f_out]


def bispdiff2_forward(x, adj1, w_torch, bias, adj2=None, *, alpha=1.0, t=1,
                      remove_self_loop=True, block_rows=None,
                      compute_dtype=jnp.bfloat16):
    """Pallas implementation of BiSpDiff2.forward.

    x:        (N, F_in)  node features
    adj1:     (N, N)     adjacency
    w_torch:  (F_out, F_in) torch nn.Linear weight
    bias:     (F_out,)
    adj2:     optional (N, N); defaults to adj1.T (as in the torch module)
    block_rows: A row-tile size; None -> auto from the device VMEM budget.
    compute_dtype: dtype of the MXU matmul operands (A tiles + propagated y
      state).  bf16 (default) is exact for 0/1 adjacencies; accumulation,
      deg_inv, bias and ReLU stay f32.  Use jnp.float32 for exact results
      (bf16 state rounding compounds with large t).
    """
    x = jnp.asarray(x, jnp.float32)
    adj1 = jnp.asarray(adj1, jnp.float32)
    w = jnp.asarray(w_torch, jnp.float32).T               # (F_in, F_out)
    b = jnp.asarray(bias, jnp.float32)
    common = dict(alpha=float(alpha), t=int(t),
                  remove_self_loop=bool(remove_self_loop),
                  block_rows=block_rows, compute_dtype=compute_dtype)

    if adj2 is None:
        # adj2 == adj1.T: one kernel call streams A once per diffusion step and
        # evaluates both the A and Aᵀ branches from the same row tiles
        # (deg(adj1) == deg(adj1.T), so one deg_inv serves both branches).
        # On v7x this single call runs on one TensorCore; a dual-call split of
        # the two branches would use both TCs at the cost of a second A stream.
        return _spdiff_pallas(x, adj1, w, b, include_fwd=True,
                              include_trans=True, **common)

    # General user-supplied adj2: two single-branch calls (adjacency sharing
    # only holds when adj2 == adj1.T).
    adj2 = jnp.asarray(adj2, jnp.float32)
    y1 = _spdiff_pallas(x, adj1, w, b, include_fwd=True, include_trans=False,
                        **common)
    y2 = _spdiff_pallas(x, adj2, w, b, include_fwd=True, include_trans=False,
                        **common)
    return y1 + y2


def _reference(x, adj1, w_torch, bias, adj2=None, *, alpha=1.0, t=1,
               remove_self_loop=True):
    """Pure-JAX reference reproducing the torch module semantics."""
    if adj2 is None:
        adj2 = adj1.T
    N = adj1.shape[0]

    def one(adj):
        if remove_self_loop:
            adj = adj * (1.0 - jnp.eye(N, dtype=adj.dtype))
        deg = adj.sum(axis=1) + adj.sum(axis=0)
        deg_inv = jnp.where(deg == 0.0, 0.0, 1.0 / deg)
        P = deg_inv[:, None] * adj
        K = (jnp.zeros((N, N), jnp.float32) if remove_self_loop
             else jnp.eye(N, dtype=jnp.float32))
        Pi = P
        for i in range(1, t + 1):
            K = K + alpha * (1.0 - alpha) ** (i - 1) * Pi
            if i < t:
                Pi = Pi @ P
        h = K @ x
        return jax.nn.relu(h @ w_torch.T + bias)

    return one(jnp.asarray(adj1, jnp.float32)) + one(jnp.asarray(adj2, jnp.float32))


if __name__ == "__main__":
    N, F_IN, F_OUT = 200, 12, 8
    ALPHA, T = 0.5, 2

    key = jax.random.PRNGKey(0)
    k_a1, k_a2, k_x, k_w, k_b = jax.random.split(key, 5)

    adj1 = (jax.random.uniform(k_a1, (N, N)) < 0.25).astype(jnp.float32)
    x = jax.random.normal(k_x, (N, F_IN), dtype=jnp.float32)
    w_torch = (jax.random.normal(k_w, (F_OUT, F_IN), dtype=jnp.float32)
               / jnp.sqrt(F_IN))
    bias = jax.random.normal(k_b, (F_OUT,), dtype=jnp.float32) * 0.1

    ref = _reference(x, adj1, w_torch, bias, alpha=ALPHA, t=T,
                     remove_self_loop=True)

    # 1) f32 exact path with explicit block_rows=128 -> 2 row tiles (tests
    #    tiling + padding since N=200 is not a multiple of 128, and the
    #    cross-tile Aᵀ partial accumulation).
    out = bispdiff2_forward(x, adj1, w_torch, bias, alpha=ALPHA, t=T,
                            remove_self_loop=True, block_rows=128,
                            compute_dtype=jnp.float32)
    out = jax.block_until_ready(out)
    assert out.shape == (N, F_OUT)
    err = float(jnp.max(jnp.abs(out - ref)))
    assert err < 1e-3, f"f32 path max abs err = {err}"

    # 2) Default path: bf16 MXU operands (f32 accumulation), auto tile size
    #    (single resident A tile), looser tolerance.
    out_bf16 = bispdiff2_forward(x, adj1, w_torch, bias, alpha=ALPHA, t=T,
                                 remove_self_loop=True)
    out_bf16 = jax.block_until_ready(out_bf16)
    err_bf16 = float(jnp.max(jnp.abs(out_bf16 - ref)))
    assert err_bf16 < 5e-2, f"bf16 path max abs err = {err_bf16}"

    # 3) Explicit adj2 (general dual-call, single-branch path), keep self
    #    loops, t=1, f32 exact, auto tiling.
    adj2 = (jax.random.uniform(k_a2, (N, N)) < 0.25).astype(jnp.float32)
    out2 = bispdiff2_forward(x, adj1, w_torch, bias, adj2, alpha=1.0, t=1,
                             remove_self_loop=False,
                             compute_dtype=jnp.float32)
    out2 = jax.block_until_ready(out2)
    ref2 = _reference(x, adj1, w_torch, bias, adj2, alpha=1.0, t=1,
                      remove_self_loop=False)
    err2 = float(jnp.max(jnp.abs(out2 - ref2)))
    assert err2 < 1e-3, f"general-adj2 path max abs err = {err2}"

    print("KERNEL_OK")
</pallas_src>

<mosaic_0001>
module attributes {stable_mosaic.version = 11 : i64} {
  func.func @_spdiff_kernel(%arg0: i32, %arg1: i32, %arg2: memref<128x256xf32, #tpu.memory_space<vmem>>, %arg3: memref<256x128xf32, #tpu.memory_space<vmem>>, %arg4: memref<1x128xf32, #tpu.memory_space<vmem>>, %arg5: memref<256x1xf32, #tpu.memory_space<vmem>>, %arg6: memref<256x128xf32, #tpu.memory_space<vmem>>, %arg7: memref<256x128xf32, #tpu.memory_space<vmem>>, %arg8: memref<256x128xf32, #tpu.memory_space<vmem>>, %arg9: memref<256x128xf32, #tpu.memory_space<vmem>>, %arg10: memref<256x128xf32, #tpu.memory_space<vmem>>, %arg11: memref<256x128xf32, #tpu.memory_space<vmem>>, %arg12: memref<256x128xf32, #tpu.memory_space<vmem>>, %arg13: memref<256x128xf32, #tpu.memory_space<vmem>>) attributes {dimension_semantics = [#tpu.dimension_semantics<arbitrary>, #tpu.dimension_semantics<arbitrary>], iteration_bounds = array<i64: 2, 2>, scalar_prefetch = 0 : i64, scratch_operands = 7 : i64, tpu.core_type = #tpu.core_type<tc>, window_params = [{transform_indices = @transform_0, window_bounds = array<i64: 128, 256>}, {pipeline_mode = #tpu.pipeline_mode<synchronous>, transform_indices = @transform_1, window_bounds = array<i64: 256, 128>}, {pipeline_mode = #tpu.pipeline_mode<synchronous>, transform_indices = @transform_2, window_bounds = array<i64: 1, 128>}, {pipeline_mode = #tpu.pipeline_mode<synchronous>, transform_indices = @transform_3, window_bounds = array<i64: 256, 1>}, {pipeline_mode = #tpu.pipeline_mode<synchronous>, transform_indices = @transform_4, window_bounds = array<i64: 256, 128>}]} {
    %c128_i32 = arith.constant 128 : i32
    %0 = arith.muli %arg1, %c128_i32 : i32
    %1 = tpu.assume_multiple %0, 128 : i32
    %c0_i32 = arith.constant 0 : i32
    %2 = arith.cmpi eq, %arg0, %c0_i32 : i32
    %c0_i32_0 = arith.constant 0 : i32
    %3 = arith.cmpi eq, %arg1, %c0_i32_0 : i32
    %4 = arith.andi %2, %3 : i1
    %5 = arith.extui %4 : i1 to i32
    %c0_i32_1 = arith.constant 0 : i32
    %6 = arith.cmpi ne, %5, %c0_i32_1 : i32
    scf.if %6 {
      %c0_11 = arith.constant 0 : index
      %c0_12 = arith.constant 0 : index
      %26 = vector.load %arg3[%c0_11, %c0_12] : memref<256x128xf32, #tpu.memory_space<vmem>>, vector<256x128xf32>
      %cst_13 = arith.constant 0.000000e+00 : f32
      %27 = vector.broadcast %cst_13 : f32 to vector<256x128xf32>
      %c0_14 = arith.constant 0 : index
      %c0_15 = arith.constant 0 : index
      %28 = vector.load %arg7[%c0_14, %c0_15] : memref<256x128xf32, #tpu.memory_space<vmem>>, vector<256x128xf32>
      tpu.vector_store %arg7[%c0_14, %c0_15], %26 {strides = array<i32>} : memref<256x128xf32, #tpu.memory_space<vmem>>, vector<256x128xf32>,
      %c0_16 = arith.constant 0 : index
      %c0_17 = arith.constant 0 : index
      %29 = vector.load %arg9[%c0_16, %c0_17] : memref<256x128xf32, #tpu.memory_space<vmem>>, vector<256x128xf32>
      tpu.vector_store %arg9[%c0_16, %c0_17], %27 {strides = array<i32>} : memref<256x128xf32, #tpu.memory_space<vmem>>, vector<256x128xf32>,
      %c0_18 = arith.constant 0 : index
      %c0_19 = arith.constant 0 : index
      %30 = vector.load %arg10[%c0_18, %c0_19] : memref<256x128xf32, #tpu.memory_space<vmem>>, vector<256x128xf32>
      tpu.vector_store %arg10[%c0_18, %c0_19], %26 {strides = array<i32>} : memref<256x128xf32, #tpu.memory_space<vmem>>, vector<256x128xf32>,
      %c0_20 = arith.constant 0 : index
      %c0_21 = arith.constant 0 : index
      %31 = vector.load %arg13[%c0_20, %c0_21] : memref<256x128xf32, #tpu.memory_space<vmem>>, vector<256x128xf32>
      tpu.vector_store %arg13[%c0_20, %c0_21], %27 {strides = array<i32>} : memref<256x128xf32, #tpu.memory_space<vmem>>, vector<256x128xf32>,
    } else {
    }
    %c0_i32_2 = arith.constant 0 : i32
    %7 = arith.cmpi eq, %arg0, %c0_i32_2 : i32
    %cst = arith.constant 5.000000e-01 : f32
    %cst_3 = arith.constant 5.000000e-01 : f32
    %8 = arith.select %7, %cst, %cst_3 : f32
    %c0 = arith.constant 0 : index
    %c0_4 = arith.constant 0 : index
    %9 = vector.load %arg2[%c0, %c0_4] : memref<128x256xf32, #tpu.memory_space<vmem>>, vector<128x256xf32>
    %10 = arith.index_cast %1 : i32 to index
    %c0_5 = arith.constant 0 : index
    %11 = vector.load %arg5[%10, %c0_5] : memref<256x1xf32, #tpu.memory_space<vmem>>, vector<128x1xf32>
    %12 = vector.broadcast %8 : f32 to vector<128x1xf32>
    %13 = arith.mulf %12, %11 : vector<128x1xf32>
    %c2_i32 = arith.constant 2 : i32
    %14 = arith.remsi %arg0, %c2_i32 : i32
    %c0_i32_6 = arith.constant 0 : i32
    %15 = arith.cmpi eq, %14, %c0_i32_6 : i32
    %16 = arith.extui %15 : i1 to i32
    %c0_i32_7 = arith.constant 0 : i32
    %17 = arith.cmpi ne, %16, %c0_i32_7 : i32
    scf.if %17 {
      %c0_11 = arith.constant 0 : index
      %c0_12 = arith.constant 0 : index
      %26 = vector.load %arg7[%c0_11, %c0_12] : memref<256x128xf32, #tpu.memory_space<vmem>>, vector<256x128xf32>
      %cst_13 = arith.constant dense<0.000000e+00> : vector<128x128xf32>
      %27 = tpu.matmul %9, %26, %cst_13 {dimension_numbers = #tpu.dot_dimension_numbers<[1], [0], [0], [1], [0, 0, 1, 1], [], []>} : vector<128x256xf32>, vector<256x128xf32>, vector<128x128xf32> -> vector<128x128xf32>
      %28 = vector.broadcast %13 : vector<128x1xf32> to vector<128x128xf32>
      %29 = arith.mulf %28, %27 : vector<128x128xf32>
      %30 = arith.index_cast %1 : i32 to index
      %c0_14 = arith.constant 0 : index
      %31 = vector.load %arg8[%30, %c0_14] : memref<256x128xf32, #tpu.memory_space<vmem>>, vector<128x128xf32>
      tpu.vector_store %arg8[%30, %c0_14], %29 {strides = array<i32>} : memref<256x128xf32, #tpu.memory_space<vmem>>, vector<128x128xf32>,
      %32 = arith.index_cast %1 : i32 to index
      %c0_15 = arith.constant 0 : index
      %33 = vector.load %arg9[%32, %c0_15] : memref<256x128xf32, #tpu.memory_space<vmem>>, vector<128x128xf32>
      %34 = arith.addf %33, %29 : vector<128x128xf32>
      %35 = arith.index_cast %1 : i32 to index
      %c0_16 = arith.constant 0 : index
      %36 = vector.load %arg9[%35, %c0_16] : memref<256x128xf32, #tpu.memory_space<vmem>>, vector<128x128xf32>
      tpu.vector_store %arg9[%35, %c0_16], %34 {strides = array<i32>} : memref<256x128xf32, #tpu.memory_space<vmem>>, vector<128x128xf32>,
      %37 = arith.index_cast %1 : i32 to index
      %c0_17 = arith.constant 0 : index
      %38 = vector.load %arg10[%37, %c0_17] : memref<256x128xf32, #tpu.memory_space<vmem>>, vector<128x128xf32>
      %cst_18 = arith.constant dense<0.000000e+00> : vector<256x128xf32>
      %39 = tpu.matmul %9, %38, %cst_18 {dimension_numbers = #tpu.dot_dimension_numbers<[0], [0], [1], [1], [0, 1, 1, 1], [], []>} : vector<128x256xf32>, vector<128x128xf32>, vector<256x128xf32> -> vector<256x128xf32>
      %c0_i32_19 = arith.constant 0 : i32
      %40 = arith.cmpi eq, %arg1, %c0_i32_19 : i32
      %41 = arith.extui %40 : i1 to i32
      %c0_i32_20 = arith.constant 0 : i32
      %42 = arith.cmpi ne, %41, %c0_i32_20 : i32
      scf.if %42 {
        %c0_25 = arith.constant 0 : index
        %c0_26 = arith.constant 0 : index
        %49 = vector.load %arg12[%c0_25, %c0_26] : memref<256x128xf32, #tpu.memory_space<vmem>>, vector<256x128xf32>
        tpu.vector_store %arg12[%c0_25, %c0_26], %39 {strides = array<i32>} : memref<256x128xf32, #tpu.memory_space<vmem>>, vector<256x128xf32>,
      } else {
      }
      %c0_i32_21 = arith.constant 0 : i32
      %43 = arith.cmpi ne, %arg1, %c0_i32_21 : i32
      %44 = arith.extui %43 : i1 to i32
      %c0_i32_22 = arith.constant 0 : i32
      %45 = arith.cmpi ne, %44, %c0_i32_22 : i32
      scf.if %45 {
        %c0_25 = arith.constant 0 : index
        %c0_26 = arith.constant 0 : index
        %49 = vector.load %arg12[%c0_25, %c0_26] : memref<256x128xf32, #tpu.memory_space<vmem>>, vector<256x128xf32>
        %50 = arith.addf %49, %39 : vector<256x128xf32>
        %c0_27 = arith.constant 0 : index
        %c0_28 = arith.constant 0 : index
        %51 = vector.load %arg12[%c0_27, %c0_28] : memref<256x128xf32, #tpu.memory_space<vmem>>, vector<256x128xf32>
        tpu.vector_store %arg12[%c0_27, %c0_28], %50 {strides = array<i32>} : memref<256x128xf32, #tpu.memory_space<vmem>>, vector<256x128xf32>,
      } else {
      }
      %c1_i32_23 = arith.constant 1 : i32
      %46 = arith.cmpi eq, %arg1, %c1_i32_23 : i32
      %47 = arith.extui %46 : i1 to i32
      %c0_i32_24 = arith.constant 0 : i32
      %48 = arith.cmpi ne, %47, %c0_i32_24 : i32
      scf.if %48 {
        %c0_25 = arith.constant 0 : index
        %c0_26 = arith.constant 0 : index
        %49 = vector.load %arg5[%c0_25, %c0_26] : memref<256x1xf32, #tpu.memory_space<vmem>>, vector<256x1xf32>
        %50 = vector.broadcast %8 : f32 to vector<256x1xf32>
        %51 = arith.mulf %50, %49 : vector<256x1xf32>
        %c0_27 = arith.constant 0 : index
        %c0_28 = arith.constant 0 : index
        %52 = vector.load %arg12[%c0_27, %c0_28] : memref<256x128xf32, #tpu.memory_space<vmem>>, vector<256x128xf32>
        %53 = vector.broadcast %51 : vector<256x1xf32> to vector<256x128xf32>
        %54 = arith.mulf %53, %52 : vector<256x128xf32>
        %c0_29 = arith.constant 0 : index
        %c0_30 = arith.constant 0 : index
        %55 = vector.load %arg11[%c0_29, %c0_30] : memref<256x128xf32, #tpu.memory_space<vmem>>, vector<256x128xf32>
        tpu.vector_store %arg11[%c0_29, %c0_30], %54 {strides = array<i32>} : memref<256x128xf32, #tpu.memory_space<vmem>>, vector<256x128xf32>,
        %c0_31 = arith.constant 0 : index
        %c0_32 = arith.constant 0 : index
        %56 = vector.load %arg13[%c0_31, %c0_32] : memref<256x128xf32, #tpu.memory_space<vmem>>, vector<256x128xf32>
        %57 = arith.addf %56, %54 : vector<256x128xf32>
        %c0_33 = arith.constant 0 : index
        %c0_34 = arith.constant 0 : index
        %58 = vector.load %arg13[%c0_33, %c0_34] : memref<256x128xf32, #tpu.memory_space<vmem>>, vector<256x128xf32>
        tpu.vector_store %arg13[%c0_33, %c0_34], %57 {strides = array<i32>} : memref<256x128xf32, #tpu.memory_space<vmem>>, vector<256x128xf32>,
      } else {
      }
    } else {
    }
    %true = arith.constant true
    %18 = arith.xori %15, %true : i1
    %19 = arith.extui %18 : i1 to i32
    %c0_i32_8 = arith.constant 0 : i32
    %20 = arith.cmpi ne, %19, %c0_i32_8 : i32
    scf.if %20 {
      %c0_11 = arith.constant 0 : index
      %c0_12 = arith.constant 0 : index
      %26 = vector.load %arg8[%c0_11, %c0_12] : memref<256x128xf32, #tpu.memory_space<vmem>>, vector<256x128xf32>
      %cst_13 = arith.constant dense<0.000000e+00> : vector<128x128xf32>
      %27 = tpu.matmul %9, %26, %cst_13 {dimension_numbers = #tpu.dot_dimension_numbers<[1], [0], [0], [1], [0, 0, 1, 1], [], []>} : vector<128x256xf32>, vector<256x128xf32>, vector<128x128xf32> -> vector<128x128xf32>
      %28 = vector.broadcast %13 : vector<128x1xf32> to vector<128x128xf32>
      %29 = arith.mulf %28, %27 : vector<128x128xf32>
      %30 = arith.index_cast %1 : i32 to index
      %c0_14 = arith.constant 0 : index
      %31 = vector.load %arg7[%30, %c0_14] : memref<256x128xf32, #tpu.memory_space<vmem>>, vector<128x128xf32>
      tpu.vector_store %arg7[%30, %c0_14], %29 {strides = array<i32>} : memref<256x128xf32, #tpu.memory_space<vmem>>, vector<128x128xf32>,
      %32 = arith.index_cast %1 : i32 to index
      %c0_15 = arith.constant 0 : index
      %33 = vector.load %arg9[%32, %c0_15] : memref<256x128xf32, #tpu.memory_space<vmem>>, vector<128x128xf32>
      %34 = arith.addf %33, %29 : vector<128x128xf32>
      %35 = arith.index_cast %1 : i32 to index
      %c0_16 = arith.constant 0 : index
      %36 = vector.load %arg9[%35, %c0_16] : memref<256x128xf32, #tpu.memory_space<vmem>>, vector<128x128xf32>
      tpu.vector_store %arg9[%35, %c0_16], %34 {strides = array<i32>} : memref<256x128xf32, #tpu.memory_space<vmem>>, vector<128x128xf32>,
      %37 = arith.index_cast %1 : i32 to index
      %c0_17 = arith.constant 0 : index
      %38 = vector.load %arg11[%37, %c0_17] : memref<256x128xf32, #tpu.memory_space<vmem>>, vector<128x128xf32>
      %cst_18 = arith.constant dense<0.000000e+00> : vector<256x128xf32>
      %39 = tpu.matmul %9, %38, %cst_18 {dimension_numbers = #tpu.dot_dimension_numbers<[0], [0], [1], [1], [0, 1, 1, 1], [], []>} : vector<128x256xf32>, vector<128x128xf32>, vector<256x128xf32> -> vector<256x128xf32>
      %c0_i32_19 = arith.constant 0 : i32
      %40 = arith.cmpi eq, %arg1, %c0_i32_19 : i32
      %41 = arith.extui %40 : i1 to i32
      %c0_i32_20 = arith.constant 0 : i32
      %42 = arith.cmpi ne, %41, %c0_i32_20 : i32
      scf.if %42 {
        %c0_25 = arith.constant 0 : index
        %c0_26 = arith.constant 0 : index
        %49 = vector.load %arg12[%c0_25, %c0_26] : memref<256x128xf32, #tpu.memory_space<vmem>>, vector<256x128xf32>
        tpu.vector_store %arg12[%c0_25, %c0_26], %39 {strides = array<i32>} : memref<256x128xf32, #tpu.memory_space<vmem>>, vector<256x128xf32>,
      } else {
      }
      %c0_i32_21 = arith.constant 0 : i32
      %43 = arith.cmpi ne, %arg1, %c0_i32_21 : i32
      %44 = arith.extui %43 : i1 to i32
      %c0_i32_22 = arith.constant 0 : i32
      %45 = arith.cmpi ne, %44, %c0_i32_22 : i32
      scf.if %45 {
        %c0_25 = arith.constant 0 : index
        %c0_26 = arith.constant 0 : index
        %49 = vector.load %arg12[%c0_25, %c0_26] : memref<256x128xf32, #tpu.memory_space<vmem>>, vector<256x128xf32>
        %50 = arith.addf %49, %39 : vector<256x128xf32>
        %c0_27 = arith.constant 0 : index
        %c0_28 = arith.constant 0 : index
        %51 = vector.load %arg12[%c0_27, %c0_28] : memref<256x128xf32, #tpu.memory_space<vmem>>, vector<256x128xf32>
        tpu.vector_store %arg12[%c0_27, %c0_28], %50 {strides = array<i32>} : memref<256x128xf32, #tpu.memory_space<vmem>>, vector<256x128xf32>,
      } else {
      }
      %c1_i32_23 = arith.constant 1 : i32
      %46 = arith.cmpi eq, %arg1, %c1_i32_23 : i32
      %47 = arith.extui %46 : i1 to i32
      %c0_i32_24 = arith.constant 0 : i32
      %48 = arith.cmpi ne, %47, %c0_i32_24 : i32
      scf.if %48 {
        %c0_25 = arith.constant 0 : index
        %c0_26 = arith.constant 0 : index
        %49 = vector.load %arg5[%c0_25, %c0_26] : memref<256x1xf32, #tpu.memory_space<vmem>>, vector<256x1xf32>
        %50 = vector.broadcast %8 : f32 to vector<256x1xf32>
        %51 = arith.mulf %50, %49 : vector<256x1xf32>
        %c0_27 = arith.constant 0 : index
        %c0_28 = arith.constant 0 : index
        %52 = vector.load %arg12[%c0_27, %c0_28] : memref<256x128xf32, #tpu.memory_space<vmem>>, vector<256x128xf32>
        %53 = vector.broadcast %51 : vector<256x1xf32> to vector<256x128xf32>
        %54 = arith.mulf %53, %52 : vector<256x128xf32>
        %c0_29 = arith.constant 0 : index
        %c0_30 = arith.constant 0 : index
        %55 = vector.load %arg10[%c0_29, %c0_30] : memref<256x128xf32, #tpu.memory_space<vmem>>, vector<256x128xf32>
        tpu.vector_store %arg10[%c0_29, %c0_30], %54 {strides = array<i32>} : memref<256x128xf32, #tpu.memory_space<vmem>>, vector<256x128xf32>,
        %c0_31 = arith.constant 0 : index
        %c0_32 = arith.constant 0 : index
        %56 = vector.load %arg13[%c0_31, %c0_32] : memref<256x128xf32, #tpu.memory_space<vmem>>, vector<256x128xf32>
        %57 = arith.addf %56, %54 : vector<256x128xf32>
        %c0_33 = arith.constant 0 : index
        %c0_34 = arith.constant 0 : index
        %58 = vector.load %arg13[%c0_33, %c0_34] : memref<256x128xf32, #tpu.memory_space<vmem>>, vector<256x128xf32>
        tpu.vector_store %arg13[%c0_33, %c0_34], %57 {strides = array<i32>} : memref<256x128xf32, #tpu.memory_space<vmem>>, vector<256x128xf32>,
      } else {
      }
    } else {
    }
    %c1_i32 = arith.constant 1 : i32
    %21 = arith.cmpi eq, %arg0, %c1_i32 : i32
    %c1_i32_9 = arith.constant 1 : i32
    %22 = arith.cmpi eq, %arg1, %c1_i32_9 : i32
    %23 = arith.andi %21, %22 : i1
    %24 = arith.extui %23 : i1 to i32
    %c0_i32_10 = arith.constant 0 : i32
    %25 = arith.cmpi ne, %24, %c0_i32_10 : i32
    scf.if %25 {
      %c0_11 = arith.constant 0 : index
      %c0_12 = arith.constant 0 : index
      %26 = vector.load %arg4[%c0_11, %c0_12] : memref<1x128xf32, #tpu.memory_space<vmem>>, vector<1x128xf32>
      %c0_13 = arith.constant 0 : index
      %c0_14 = arith.constant 0 : index
      %27 = vector.load %arg9[%c0_13, %c0_14] : memref<256x128xf32, #tpu.memory_space<vmem>>, vector<256x128xf32>
      %28 = vector.broadcast %26 : vector<1x128xf32> to vector<256x128xf32>
      %29 = arith.addf %27, %28 : vector<256x128xf32>
      %cst_15 = arith.constant 0.000000e+00 : f32
      %30 = vector.broadcast %cst_15 : f32 to vector<256x128xf32>
      %31 = arith.maximumf %29, %30 : vector<256x128xf32>
      %c0_16 = arith.constant 0 : index
      %c0_17 = arith.constant 0 : index
      %32 = vector.load %arg13[%c0_16, %c0_17] : memref<256x128xf32, #tpu.memory_space<vmem>>, vector<256x128xf32>
      %33 = vector.broadcast %26 : vector<1x128xf32> to vector<256x128xf32>
      %34 = arith.addf %32, %33 : vector<256x128xf32>
      %cst_18 = arith.constant 0.000000e+00 : f32
      %35 = vector.broadcast %cst_18 : f32 to vector<256x128xf32>
      %36 = arith.maximumf %34, %35 : vector<256x128xf32>
      %37 = arith.addf %31, %36 : vector<256x128xf32>
      %c0_19 = arith.constant 0 : index
      %c0_20 = arith.constant 0 : index
      %38 = vector.load %arg6[%c0_19, %c0_20] : memref<256x128xf32, #tpu.memory_space<vmem>>, vector<256x128xf32>
      tpu.vector_store %arg6[%c0_19, %c0_20], %37 {strides = array<i32>} : memref<256x128xf32, #tpu.memory_space<vmem>>, vector<256x128xf32>,
    } else {
    }
    return
  }
  func.func @transform_0(%arg0: i32, %arg1: i32) -> (i32, i32) {
    %c0_i32 = arith.constant 0 : i32
    %c0_i32_0 = arith.constant 0 : i32
    return %arg1, %c0_i32 : i32, i32
  }
  func.func @transform_1(%arg0: i32, %arg1: i32) -> (i32, i32) {
    %c0_i32 = arith.constant 0 : i32
    %c0_i32_0 = arith.constant 0 : i32
    %c0_i32_1 = arith.constant 0 : i32
    return %c0_i32, %c0_i32_0 : i32, i32
  }
  func.func @transform_2(%arg0: i32, %arg1: i32) -> (i32, i32) {
    %c0_i32 = arith.constant 0 : i32
    %c0_i32_0 = arith.constant 0 : i32
    %c0_i32_1 = arith.constant 0 : i32
    return %c0_i32, %c0_i32_0 : i32, i32
  }
  func.func @transform_3(%arg0: i32, %arg1: i32) -> (i32, i32) {
    %c0_i32 = arith.constant 0 : i32
    %c0_i32_0 = arith.constant 0 : i32
    %c0_i32_1 = arith.constant 0 : i32
    return %c0_i32, %c0_i32_0 : i32, i32
  }
  func.func @transform_4(%arg0: i32, %arg1: i32) -> (i32, i32) {
    %c0_i32 = arith.constant 0 : i32
    %c0_i32_0 = arith.constant 0 : i32
    %c0_i32_1 = arith.constant 0 : i32
    return %c0_i32, %c0_i32_0 : i32, i32
  }
}

</mosaic_0001>

<bundles_post_ra>
// kernel: tpu_custom_call.1
= control target key start
LH: loop header
LB: loop body
LE: loop exit
PB: predicated region body
PF: predicated region fallthrough
CT: control target
= control target key end

     0   :  { %9 = vsyncpa [#allocation10], 0  ;;  %s5389_s0 = inlined_call_operand.hbm [shape: f32[256,256], index: 0, kind: input, shape index: {}]   ;;  %s5390_s1 = inlined_call_operand.vmem [shape: f32[256,128], index: 1, kind: input, shape index: {}]   ;;  %s5391_s2 = inlined_call_operand.vmem [shape: f32[1,128], index: 2, kind: input, shape index: {}]   ;;  %s5392_s3 = inlined_call_operand.vmem [shape: f32[256,1], index: 3, kind: input, shape index: {}]   ;;  %s5393_s4 = inlined_call_operand.hbm [shape: f32[256,128], index: 4, kind: output, shape index: {}]  }
   0x1   :  { %11 = vsyncpa [#allocation10 + $0x1], 0 }
   0x2   :  { %12 = vsyncpa [#allocation11], 0  ;;  %s4047_s15 = smov 0   ;;  %s4049_s16 = smov 0  }
   0x3   :  { %s4051_s17 = smov 0   ;;  %s4053_s18 = smov 0  }
   0x4   :  { %s4055_s19 = smov 0   ;;  %s4057_s20 = smov 0  }
   0x5   :  { %s4059_s21 = smov 0   ;;  %s4061_s22 = smov 0  }
   0x6 LB: > { %s3218_s23 = sadd.s32 4294967295, %s4009_s22   ;;  %s27_s24 = sadd.s32 1, %s4001_s20  ;;  %s4009_s22 = sphi %s4061_s22, %s18_s22   ;;  %s4005_s21 = sphi %s4059_s21, %s5512_s21   ;;  %s4001_s20 = sphi %s4057_s20, %s5511_s20   ;;  %s3997_s19 = sphi %s4055_s19, %s5510_s19   ;;  %s3993_s18 = sphi %s4053_s18, %s5509_s18   ;;  %s3989_s17 = sphi %s4051_s17, %s5508_s17   ;;  %s3985_s16 = sphi %s4049_s16, %s5507_s16   ;;  %s3981_s15 = sphi %s4047_s15, %s5506_s15  }
   0x7   : > { %p28_p0 = scmp.ge.s32.totalorder %s27_s24, 2  ;;  %s30_s25 = sadd.s32 1, %s4005_s21 }
   0x8   : > { %s37_s26 = sadd.s32 1, %s3989_s17  ;;  %p44_p1 = scmp.ne.s32.totalorder %s3989_s17, %s3985_s16 }
   0x9   : > { %s5514_s24 = smov (%p28_p0, %s27_s24), 0  ;;  %s5516_s25 = smov (!%p28_p0, %s30_s25), %s4005_s21 }
   0xa   : > { %s34_s27 = ssub.s32 %s4001_s20, %s5514_s24  ;;  %p45_p2 = scmp.eq.s32.totalorder %s4009_s22, 0 }
   0xb   : > { %p32_p3 = scmp.ge.s32.totalorder %s5516_s25, 2  ;;  %p35_p4 = scmp.eq.s32.totalorder %s34_s27, 0 }
   0xc   : > { %p4097_p5 = por %p45_p2, %p44_p1  ;;  %p50_p6 = scmp.ne.s32.totalorder %s3985_s16, %s3981_s15 }
   0xd   : > { %s5518_s25 = smov (%p32_p3, %s5516_s25), 0  ;;  %p51_p7 = scmp.eq.s32.totalorder %s3218_s23, 0 }
   0xe   : > { %s4105_s29 = scalar_select %p35_p4, %s3989_s17, %s37_s26  }
   0xf   : > { %p3798_p8 = scmp.lt.s32.totalorder %s4009_s22, 4  ;;  %s167_s30 = sand.u32 1, %s3989_s17  }
  0x10   : > { %p4111_p9 = por %p51_p7, %p50_p6  ;;  %s3221_s6 = sshll.u32 %s167_s30, 8 }
  0x11   : > { %s3243_s7 = sshll.u32 %s4001_s20, 12  ;;  %s171_s11 = scalar_lea.vmem [#allocation9], %s3221_s6 }
  0x12   : > { %s4119_s10 = scalar_lea.hbm %s5389_s0, %s3243_s7  ;;  %s179_s12 = sshll.u32 %s171_s11, 4  ;;  %s4127_s12 = int_to_ptr.vmem [resolvable:$true] %s179_s12 }
  0x13   : > { %p4123_p10 = pnand %p3798_p8, %p4097_p5  ;;  %s4129_s14 = scalar_lea.sflag [#allocation10], %s167_s30 }
  0x14   : > { %s3883_s15 = scalar_lea.hbm %s4119_s10, 4096  ;;  %s3888_s28 = scalar_lea.hbm %s5389_s0, 8192 }
  0x15   : > { %p3884_p11 = scmp.ne.s32.totalorder %s4119_s10, %s3883_s15  ;;  %p3885_p12 = pneg %p4123_p10 }
  0x16   : > { %p3889_p1 = scmp.lt.u32.totalorder %s4119_s10, %s5389_s0  ;;  %p3890_p2 = scmp.lt.u32.totalorder %s3888_s28, %s3883_s15 }
  0x17   : > { %p3886_p13 = pnand %p3885_p12, %p3884_p11  ;;  %p3892_p4 = scmp.lt.u32.totalorder %s3883_s15, %s4119_s10 }
  0x18   : > { %p3891_p3 = por %p3890_p2, %p3889_p1 }
  0x19   : > { %p3887_p0 = pneg %p3886_p13 }
  0x1a   : > { %p3893_p5 = por %p3892_p4, %p3891_p3 }
  0x1c   : > { %p3894_p6 = pnand %p3893_p5, %p3887_p0 }
  0x1e   : > { %3897 = shalt.err (!%p3894_p6)
}
  0x1f   : > { %s3898_s30 = scalar_lea.vmem %s4127_s12, 4096  ;;  %s4011_s8 = smov [#allocation9]  }
  0x20   : > { %p3899_p7 = scmp.ne.s32.totalorder %s4127_s12, %s3898_s30  ;;  %s3903_s9 = sshll.u32 %s4011_s8, 4  ;;  %s3904_s9 = int_to_ptr.vmem [resolvable:$false] %s3903_s9 }
  0x21   : > { %s3905_s11 = scalar_lea.vmem %s3904_s9, 8192  ;;  %p3906_p13 = scmp.lt.s32.totalorder %s4127_s12, %s3904_s9 }
  0x22   : > { %p3901_p8 = pnand %p3899_p7, %p3885_p12  ;;  %p3907_p1 = scmp.lt.s32.totalorder %s3905_s11, %s3898_s30 }
  0x24   : > { %p3902_p11 = pneg %p3901_p8  ;;  %p3908_p2 = por %p3907_p1, %p3906_p13 }
  0x26   : > { %p3909_p3 = pnand %p3908_p2, %p3902_p11 }
  0x28   : > { %3912 = shalt.err (!%p3909_p3)
}
  0x29   : > { %s4012_s15 = smov 256   ;;  %s4013_s26 = smov 16  }
  0x2a   : > { %3797 = dma.hbm_to_vmem [thread:$0]  (!%p4123_p10), %s4119_s10, 4096, %s4127_s12, %s4129_s14, %s4012_s15, %s4012_s15, %s4013_s26  }
  0x2b   : > { %p3225_p12 = scmp.ge.s32.totalorder %s4009_s22, 1  ;;  %p187_p0 = scmp.lt.s32.totalorder %s4009_s22, 5 }
  0x2d   : > { %p188_p4 = pnand %p3225_p12, %p187_p0 }
  0x2f   : > { %191 = sbr.rel (%p188_p4) target bundleno = 1511 (0x5e7), region = 36 }
  0x36   : > { %s193_s27 = sand.u32 1, %s3985_s16  }
  0x37   : > { %s3226_s28 = sshll.u32 %s193_s27, 8  ;;  %s194_s6 = scalar_lea.sflag [#allocation10], %s193_s27 }
  0x38   : > { %s4160_s7 = scalar_lea.vmem [#allocation9], %s3226_s28 }
  0x39   : > { %3972 = dma.done.wait (%p4111_p9), %s194_s6, 4096  }
  0x3a   : > { %3974 = vsyncadd (%p4111_p9), %s194_s6, 4294963200  ;;  %s4167_s10 = sshll.u32 %s3993_s18, 7  ;;  %p219_p10 = scmp.eq.s32.totalorder %s3997_s19, 0 }
  0x3b   : > { %p220_p5 = scmp.eq.s32.totalorder %s3993_s18, 0 }
  0x3d   : > { %p221_p6 = pnand %p220_p5, %p219_p10 }
  0x3e   : > { %v225_v0 = vld [vmem:[%s5390_s1] sm:$0xff] (!%p221_p6)  ;;  %v226_v1 = vld [vmem:[%s5390_s1 + $0x8] sm:$0xff] (!%p221_p6)  ;;  %v227_v2 = vld [vmem:[%s5390_s1 + $0x10] sm:$0xff] (!%p221_p6)  ;;  %v4014_v6 = vmov (!%p221_p6), 0.0  }
  0x3f   : > { %224 = sbr.rel (%p221_p6) target bundleno = 127 (0x7f), region = 44  ;;  %257 = vst [vmem:[#allocation2] sm:$0xff] (!%p221_p6), %v225_v0  ;;  %321 = vst [vmem:[#allocation5] sm:$0xff] (!%p221_p6), %v225_v0  ;;  %v4185_v3 = vld [vmem:[%s5390_s1 + $0x18] sm:$0xff] (!%p221_p6)  ;;  %v4190_v4 = vld [vmem:[%s5390_s1 + $0x20] sm:$0xff] (!%p221_p6) }
  0x40   : > { %258 = vst [vmem:[#allocation2 + $0x8] sm:$0xff] (!%p221_p6), %v226_v1  ;;  %322 = vst [vmem:[#allocation5 + $0x8] sm:$0xff] (!%p221_p6), %v226_v1  ;;  %v4195_v5 = vld [vmem:[%s5390_s1 + $0x28] sm:$0xff] (!%p221_p6)  ;;  %v231_v7 = vld [vmem:[%s5390_s1 + $0x30] sm:$0xff] (!%p221_p6) }
  0x41   : > { %259 = vst [vmem:[#allocation2 + $0x10] sm:$0xff] (!%p221_p6), %v227_v2  ;;  %323 = vst [vmem:[#allocation5 + $0x10] sm:$0xff] (!%p221_p6), %v227_v2  ;;  %v232_v8 = vld [vmem:[%s5390_s1 + $0x38] sm:$0xff] (!%p221_p6)  ;;  %v233_v9 = vld [vmem:[%s5390_s1 + $0x40] sm:$0xff] (!%p221_p6) }
  0x42   : > { %289 = vst [vmem:[#allocation4] sm:$0xff] (!%p221_p6), %v4014_v6  ;;  %290 = vst [vmem:[#allocation4 + $0x8] sm:$0xff] (!%p221_p6), %v4014_v6  ;;  %v234_v10 = vld [vmem:[%s5390_s1 + $0x48] sm:$0xff] (!%p221_p6)  ;;  %v235_v11 = vld [vmem:[%s5390_s1 + $0x50] sm:$0xff] (!%p221_p6) }
  0x43   : > { %291 = vst [vmem:[#allocation4 + $0x10] sm:$0xff] (!%p221_p6), %v4014_v6  ;;  %292 = vst [vmem:[#allocation4 + $0x18] sm:$0xff] (!%p221_p6), %v4014_v6  ;;  %v236_v12 = vld [vmem:[%s5390_s1 + $0x58] sm:$0xff] (!%p221_p6)  ;;  %v237_v13 = vld [vmem:[%s5390_s1 + $0x60] sm:$0xff] (!%p221_p6) }
  0x44   : > { %293 = vst [vmem:[#allocation4 + $0x20] sm:$0xff] (!%p221_p6), %v4014_v6  ;;  %294 = vst [vmem:[#allocation4 + $0x28] sm:$0xff] (!%p221_p6), %v4014_v6  ;;  %v238_v14 = vld [vmem:[%s5390_s1 + $0x68] sm:$0xff] (!%p221_p6)  ;;  %v239_v15 = vld [vmem:[%s5390_s1 + $0x70] sm:$0xff] (!%p221_p6) }
  0x45   : > { %295 = vst [vmem:[#allocation4 + $0x30] sm:$0xff] (!%p221_p6), %v4014_v6  ;;  %296 = vst [vmem:[#allocation4 + $0x38] sm:$0xff] (!%p221_p6), %v4014_v6  ;;  %v240_v16 = vld [vmem:[%s5390_s1 + $0x78] sm:$0xff] (!%p221_p6)  ;;  %v241_v17 = vld [vmem:[%s5390_s1 + $0x80] sm:$0xff] (!%p221_p6) }
  0x46   : > { %297 = vst [vmem:[#allocation4 + $0x40] sm:$0xff] %v4014_v6  ;;  %298 = vst [vmem:[#allocation4 + $0x48] sm:$0xff] %v4014_v6  ;;  %v242_v18 = vld [vmem:[%s5390_s1 + $0x88] sm:$0xff]  ;;  %v243_v19 = vld [vmem:[%s5390_s1 + $0x90] sm:$0xff] }
  0x47   : > { %299 = vst [vmem:[#allocation4 + $0x50] sm:$0xff] %v4014_v6  ;;  %300 = vst [vmem:[#allocation4 + $0x58] sm:$0xff] %v4014_v6  ;;  %v244_v20 = vld [vmem:[%s5390_s1 + $0x98] sm:$0xff]  ;;  %v245_v21 = vld [vmem:[%s5390_s1 + $0xa0] sm:$0xff] }
  0x48   : > { %301 = vst [vmem:[#allocation4 + $0x60] sm:$0xff] %v4014_v6  ;;  %302 = vst [vmem:[#allocation4 + $0x68] sm:$0xff] %v4014_v6  ;;  %v246_v22 = vld [vmem:[%s5390_s1 + $0xa8] sm:$0xff]  ;;  %v247_v23 = vld [vmem:[%s5390_s1 + $0xb0] sm:$0xff] }
  0x49   : > { %303 = vst [vmem:[#allocation4 + $0x70] sm:$0xff] %v4014_v6  ;;  %304 = vst [vmem:[#allocation4 + $0x78] sm:$0xff] %v4014_v6  ;;  %v248_v24 = vld [vmem:[%s5390_s1 + $0xb8] sm:$0xff]  ;;  %v249_v25 = vld [vmem:[%s5390_s1 + $0xc0] sm:$0xff] }
  0x4a   : > { %305 = vst [vmem:[#allocation4 + $0x80] sm:$0xff] %v4014_v6  ;;  %306 = vst [vmem:[#allocation4 + $0x88] sm:$0xff] %v4014_v6  ;;  %v250_v26 = vld [vmem:[%s5390_s1 + $0xc8] sm:$0xff]  ;;  %v251_v27 = vld [vmem:[%s5390_s1 + $0xd0] sm:$0xff] }
  0x4b   : > { %307 = vst [vmem:[#allocation4 + $0x90] sm:$0xff] %v4014_v6  ;;  %308 = vst [vmem:[#allocation4 + $0x98] sm:$0xff] %v4014_v6  ;;  %v252_v28 = vld [vmem:[%s5390_s1 + $0xd8] sm:$0xff]  ;;  %v253_v29 = vld [vmem:[%s5390_s1 + $0xe0] sm:$0xff] }
  0x4c   : > { %309 = vst [vmem:[#allocation4 + $0xa0] sm:$0xff] %v4014_v6  ;;  %310 = vst [vmem:[#allocation4 + $0xa8] sm:$0xff] %v4014_v6  ;;  %v254_v30 = vld [vmem:[%s5390_s1 + $0xe8] sm:$0xff]  ;;  %v255_v31 = vld [vmem:[%s5390_s1 + $0xf0] sm:$0xff] }
  0x4d   : > { %311 = vst [vmem:[#allocation4 + $0xb0] sm:$0xff] %v4014_v6  ;;  %312 = vst [vmem:[#allocation4 + $0xb8] sm:$0xff] %v4014_v6  ;;  %v256_v32 = vld [vmem:[%s5390_s1 + $0xf8] sm:$0xff] }
  0x4e   : > { %313 = vst [vmem:[#allocation4 + $0xc0] sm:$0xff] %v4014_v6  ;;  %314 = vst [vmem:[#allocation4 + $0xc8] sm:$0xff] %v4014_v6 }
  0x4f   : > { %315 = vst [vmem:[#allocation4 + $0xd0] sm:$0xff] %v4014_v6  ;;  %316 = vst [vmem:[#allocation4 + $0xd8] sm:$0xff] %v4014_v6 }
  0x50   : > { %317 = vst [vmem:[#allocation4 + $0xe0] sm:$0xff] %v4014_v6  ;;  %318 = vst [vmem:[#allocation4 + $0xe8] sm:$0xff] %v4014_v6 }
  0x51   : > { %319 = vst [vmem:[#allocation4 + $0xf0] sm:$0xff] %v4014_v6  ;;  %320 = vst [vmem:[#allocation4 + $0xf8] sm:$0xff] %v4014_v6 }
  0x52   : > { %353 = vst [vmem:[#allocation8] sm:$0xff] %v4014_v6  ;;  %354 = vst [vmem:[#allocation8 + $0x8] sm:$0xff] %v4014_v6 }
  0x53   : > { %355 = vst [vmem:[#allocation8 + $0x10] sm:$0xff] %v4014_v6  ;;  %356 = vst [vmem:[#allocation8 + $0x18] sm:$0xff] %v4014_v6 }
  0x54   : > { %357 = vst [vmem:[#allocation8 + $0x20] sm:$0xff] %v4014_v6  ;;  %358 = vst [vmem:[#allocation8 + $0x28] sm:$0xff] %v4014_v6 }
  0x55   : > { %359 = vst [vmem:[#allocation8 + $0x30] sm:$0xff] %v4014_v6  ;;  %360 = vst [vmem:[#allocation8 + $0x38] sm:$0xff] %v4014_v6 }
  0x56   : > { %361 = vst [vmem:[#allocation8 + $0x40] sm:$0xff] %v4014_v6  ;;  %362 = vst [vmem:[#allocation8 + $0x48] sm:$0xff] %v4014_v6 }
  0x57   : > { %363 = vst [vmem:[#allocation8 + $0x50] sm:$0xff] %v4014_v6  ;;  %364 = vst [vmem:[#allocation8 + $0x58] sm:$0xff] %v4014_v6 }
  0x58   : > { %365 = vst [vmem:[#allocation8 + $0x60] sm:$0xff] %v4014_v6  ;;  %366 = vst [vmem:[#allocation8 + $0x68] sm:$0xff] %v4014_v6 }
  0x59   : > { %367 = vst [vmem:[#allocation8 + $0x70] sm:$0xff] %v4014_v6  ;;  %368 = vst [vmem:[#allocation8 + $0x78] sm:$0xff] %v4014_v6 }
  0x5a   : > { %369 = vst [vmem:[#allocation8 + $0x80] sm:$0xff] %v4014_v6  ;;  %370 = vst [vmem:[#allocation8 + $0x88] sm:$0xff] %v4014_v6 }
  0x5b   : > { %371 = vst [vmem:[#allocation8 + $0x90] sm:$0xff] %v4014_v6  ;;  %372 = vst [vmem:[#allocation8 + $0x98] sm:$0xff] %v4014_v6 }
  0x5c   : > { %373 = vst [vmem:[#allocation8 + $0xa0] sm:$0xff] %v4014_v6  ;;  %374 = vst [vmem:[#allocation8 + $0xa8] sm:$0xff] %v4014_v6 }
  0x5d   : > { %375 = vst [vmem:[#allocation8 + $0xb0] sm:$0xff] %v4014_v6  ;;  %376 = vst [vmem:[#allocation8 + $0xb8] sm:$0xff] %v4014_v6 }
  0x5e   : > { %377 = vst [vmem:[#allocation8 + $0xc0] sm:$0xff] %v4014_v6  ;;  %378 = vst [vmem:[#allocation8 + $0xc8] sm:$0xff] %v4014_v6 }
  0x5f   : > { %379 = vst [vmem:[#allocation8 + $0xd0] sm:$0xff] %v4014_v6  ;;  %380 = vst [vmem:[#allocation8 + $0xd8] sm:$0xff] %v4014_v6 }
  0x60   : > { %381 = vst [vmem:[#allocation8 + $0xe0] sm:$0xff] %v4014_v6  ;;  %382 = vst [vmem:[#allocation8 + $0xe8] sm:$0xff] %v4014_v6 }
  0x61   : > { %383 = vst [vmem:[#allocation8 + $0xf0] sm:$0xff] %v4014_v6  ;;  %384 = vst [vmem:[#allocation8 + $0xf8] sm:$0xff] %v4014_v6 }
  0x62   : > { %260 = vst [vmem:[#allocation2 + $0x18] sm:$0xff] %v4185_v3  ;;  %324 = vst [vmem:[#allocation5 + $0x18] sm:$0xff] %v4185_v3 }
  0x63   : > { %261 = vst [vmem:[#allocation2 + $0x20] sm:$0xff] %v4190_v4  ;;  %325 = vst [vmem:[#allocation5 + $0x20] sm:$0xff] %v4190_v4 }
  0x64   : > { %262 = vst [vmem:[#allocation2 + $0x28] sm:$0xff] %v4195_v5  ;;  %326 = vst [vmem:[#allocation5 + $0x28] sm:$0xff] %v4195_v5 }
  0x65   : > { %263 = vst [vmem:[#allocation2 + $0x30] sm:$0xff] %v231_v7  ;;  %327 = vst [vmem:[#allocation5 + $0x30] sm:$0xff] %v231_v7 }
  0x66   : > { %264 = vst [vmem:[#allocation2 + $0x38] sm:$0xff] %v232_v8  ;;  %328 = vst [vmem:[#allocation5 + $0x38] sm:$0xff] %v232_v8 }
  0x67   : > { %265 = vst [vmem:[#allocation2 + $0x40] sm:$0xff] %v233_v9  ;;  %329 = vst [vmem:[#allocation5 + $0x40] sm:$0xff] %v233_v9 }
  0x68   : > { %266 = vst [vmem:[#allocation2 + $0x48] sm:$0xff] %v234_v10  ;;  %330 = vst [vmem:[#allocation5 + $0x48] sm:$0xff] %v234_v10 }
  0x69   : > { %267 = vst [vmem:[#allocation2 + $0x50] sm:$0xff] %v235_v11  ;;  %331 = vst [vmem:[#allocation5 + $0x50] sm:$0xff] %v235_v11 }
  0x6a   : > { %268 = vst [vmem:[#allocation2 + $0x58] sm:$0xff] %v236_v12  ;;  %332 = vst [vmem:[#allocation5 + $0x58] sm:$0xff] %v236_v12 }
  0x6b   : > { %269 = vst [vmem:[#allocation2 + $0x60] sm:$0xff] %v237_v13  ;;  %333 = vst [vmem:[#allocation5 + $0x60] sm:$0xff] %v237_v13 }
  0x6c   : > { %270 = vst [vmem:[#allocation2 + $0x68] sm:$0xff] %v238_v14  ;;  %334 = vst [vmem:[#allocation5 + $0x68] sm:$0xff] %v238_v14 }
  0x6d   : > { %271 = vst [vmem:[#allocation2 + $0x70] sm:$0xff] %v239_v15  ;;  %335 = vst [vmem:[#allocation5 + $0x70] sm:$0xff] %v239_v15 }
  0x6e   : > { %272 = vst [vmem:[#allocation2 + $0x78] sm:$0xff] %v240_v16  ;;  %336 = vst [vmem:[#allocation5 + $0x78] sm:$0xff] %v240_v16 }
  0x6f   : > { %273 = vst [vmem:[#allocation2 + $0x80] sm:$0xff] %v241_v17  ;;  %337 = vst [vmem:[#allocation5 + $0x80] sm:$0xff] %v241_v17 }
  0x70   : > { %274 = vst [vmem:[#allocation2 + $0x88] sm:$0xff] %v242_v18  ;;  %338 = vst [vmem:[#allocation5 + $0x88] sm:$0xff] %v242_v18 }
  0x71   : > { %275 = vst [vmem:[#allocation2 + $0x90] sm:$0xff] %v243_v19  ;;  %339 = vst [vmem:[#allocation5 + $0x90] sm:$0xff] %v243_v19 }
  0x72   : > { %276 = vst [vmem:[#allocation2 + $0x98] sm:$0xff] %v244_v20  ;;  %340 = vst [vmem:[#allocation5 + $0x98] sm:$0xff] %v244_v20 }
  0x73   : > { %277 = vst [vmem:[#allocation2 + $0xa0] sm:$0xff] %v245_v21  ;;  %341 = vst [vmem:[#allocation5 + $0xa0] sm:$0xff] %v245_v21 }
  0x74   : > { %278 = vst [vmem:[#allocation2 + $0xa8] sm:$0xff] %v246_v22  ;;  %342 = vst [vmem:[#allocation5 + $0xa8] sm:$0xff] %v246_v22 }
  0x75   : > { %279 = vst [vmem:[#allocation2 + $0xb0] sm:$0xff] %v247_v23  ;;  %343 = vst [vmem:[#allocation5 + $0xb0] sm:$0xff] %v247_v23 }
  0x76   : > { %280 = vst [vmem:[#allocation2 + $0xb8] sm:$0xff] %v248_v24  ;;  %344 = vst [vmem:[#allocation5 + $0xb8] sm:$0xff] %v248_v24 }
  0x77   : > { %281 = vst [vmem:[#allocation2 + $0xc0] sm:$0xff] %v249_v25  ;;  %345 = vst [vmem:[#allocation5 + $0xc0] sm:$0xff] %v249_v25 }
  0x78   : > { %282 = vst [vmem:[#allocation2 + $0xc8] sm:$0xff] %v250_v26  ;;  %346 = vst [vmem:[#allocation5 + $0xc8] sm:$0xff] %v250_v26 }
  0x79   : > { %283 = vst [vmem:[#allocation2 + $0xd0] sm:$0xff] %v251_v27  ;;  %347 = vst [vmem:[#allocation5 + $0xd0] sm:$0xff] %v251_v27 }
  0x7a   : > { %284 = vst [vmem:[#allocation2 + $0xd8] sm:$0xff] %v252_v28  ;;  %348 = vst [vmem:[#allocation5 + $0xd8] sm:$0xff] %v252_v28 }
  0x7b   : > { %285 = vst [vmem:[#allocation2 + $0xe0] sm:$0xff] %v253_v29  ;;  %349 = vst [vmem:[#allocation5 + $0xe0] sm:$0xff] %v253_v29 }
  0x7c   : > { %286 = vst [vmem:[#allocation2 + $0xe8] sm:$0xff] %v254_v30  ;;  %350 = vst [vmem:[#allocation5 + $0xe8] sm:$0xff] %v254_v30 }
  0x7d   : > { %287 = vst [vmem:[#allocation2 + $0xf0] sm:$0xff] %v255_v31  ;;  %351 = vst [vmem:[#allocation5 + $0xf0] sm:$0xff] %v255_v31 }
  0x7e   : > { %288 = vst [vmem:[#allocation2 + $0xf8] sm:$0xff] %v256_v32  ;;  %352 = vst [vmem:[#allocation5 + $0xf8] sm:$0xff] %v256_v32 }
  0x7f PF: > { %v4346_v33 = vld [vmem:[%s4160_s7] sm:$0xff]  ;;  %v4349_v34 = vld [vmem:[%s4160_s7 + $0x8] sm:$0xff]  ;;  %v4352_v35 = vld [vmem:[%s4160_s7 + $0x10] sm:$0xff]  ;;  %p450_p9 = scmp.lt.s32.totalorder %s3997_s19, 0  ;;  %s451_s6 = ssub.s32 0, %s3997_s19 }
  0x80   : > { %5440 = vst [vmem:[#allocation15_spill] sm:$0xff] %v4349_v34  ;;  %v4355_v36 = vld [vmem:[%s4160_s7 + $0x18] sm:$0xff]  ;;  %v4358_v37 = vld [vmem:[%s4160_s7 + $0x20] sm:$0xff]  ;;  %v4361_v38 = vld [vmem:[%s4160_s7 + $0x28] sm:$0xff]  ;;  %s3228_s12 = smin.u32 %s3997_s19, %s451_s6  ;;  %s4428_s8 = scalar_lea.vmem %s5392_s3, %s4167_s10 }
  0x81   : > { %v4366_v39 = vld [vmem:[%s4160_s7 + $0x30] sm:$0xff]  ;;  %v4369_v40 = vld [vmem:[%s4160_s7 + $0x38] sm:$0xff]  ;;  %v4372_v41 = vld [vmem:[%s4160_s7 + $0x40] sm:$0xff]  ;;  %s453_s13 = sand.u32 1, %s3228_s12  }
  0x82   : > { %v4376_v42 = vld [vmem:[%s4160_s7 + $0x48] sm:$0xff]  ;;  %v4379_v43 = vld [vmem:[%s4160_s7 + $0x50] sm:$0xff]  ;;  %v4382_v44 = vld [vmem:[%s4160_s7 + $0x58] sm:$0xff]  ;;  %s454_s14 = ssub.s32 0, %s453_s13 }
  0x83   : > { %v4385_v45 = vld [vmem:[%s4160_s7 + $0x60] sm:$0xff]  ;;  %v4388_v46 = vld [vmem:[%s4160_s7 + $0x68] sm:$0xff]  ;;  %v4391_v47 = vld [vmem:[%s4160_s7 + $0x70] sm:$0xff]  ;;  %s5520_s14 = smov (!%p450_p9, %s454_s14), %s453_s13 }
  0x84   : > { %v4394_v48 = vld [vmem:[%s4160_s7 + $0x78] sm:$0xff]  ;;  %v4397_v49 = vld [vmem:[%s4160_s7 + $0x80] sm:$0xff]  ;;  %v4400_v50 = vld [vmem:[%s4160_s7 + $0x88] sm:$0xff]  ;;  %p3229_p7 = scmp.ne.s32.totalorder %s5520_s14, 0 }
  0x85   : > { %v4407_v51 = vld [vmem:[%s4160_s7 + $0x90] sm:$0xff]  ;;  %v4410_v52 = vld [vmem:[%s4160_s7 + $0x98] sm:$0xff]  ;;  %v4413_v53 = vld [vmem:[%s4160_s7 + $0xa0] sm:$0xff]  ;;  %816 = vxpose.xlu0.b32.start [1/16] (!%p3229_p7), %v4346_v33, 128  ;;  %848 = vxpose.xlu1.b32.start [1/16] (!%p3229_p7), %v4349_v34, 128  ;;  %s4603_s9 = scalar_lea.vmem (!%p3229_p7), [#allocation4], %s4167_s10  ;;  %s4607_s11 = scalar_lea.vmem (!%p3229_p7), [#allocation3], %s4167_s10 }
  0x86   : > { %5441 = vst [vmem:[#allocation16_spill] sm:$0xff] %v4407_v51  ;;  %5442 = vst [vmem:[#allocation17_spill] sm:$0xff] %v4410_v52  ;;  %v4416_v54 = vld [vmem:[%s4160_s7 + $0xa8] sm:$0xff]  ;;  %v4419_v55 = vld [vmem:[%s4160_s7 + $0xb0] sm:$0xff]  ;;  %556 = vmatprep.mubr.f32.mxu0 (!%p3229_p7), %v4349_v34  ;;  %p3230_p8 = scmp.ne.s32.totalorder (!%p3229_p7), %s3993_s18, 0 }
  0x87   : > { %5443 = vst [vmem:[#allocation18_spill] sm:$0xff] %v4413_v53  ;;  %5444 = vst [vmem:[#allocation19_spill] sm:$0xff] %v4416_v54  ;;  %v4422_v56 = vld [vmem:[%s4160_s7 + $0xb8] sm:$0xff]  ;;  %v4431_v57 = vld [vmem:[%s4160_s7 + $0xc0] sm:$0xff] }
  0x88   : > { %5445 = vst [vmem:[#allocation20_spill] sm:$0xff] %v4419_v55  ;;  %5446 = vst [vmem:[#allocation21_spill] sm:$0xff] %v4422_v56  ;;  %v4434_v58 = vld [vmem:[%s4160_s7 + $0xc8] sm:$0xff]  ;;  %v4437_v59 = vld [vmem:[%s4160_s7 + $0xd0] sm:$0xff] }
  0x89   : > { %5447 = vst [vmem:[#allocation22_spill] sm:$0xff] %v4431_v57  ;;  %5448 = vst [vmem:[#allocation23_spill] sm:$0xff] %v4434_v58  ;;  %v4440_v60 = vld [vmem:[%s4160_s7 + $0xd8] sm:$0xff]  ;;  %v4443_v61 = vld [vmem:[%s4160_s7 + $0xe0] sm:$0xff]  ;;  %817 = vxpose.xlu0.b32.cont [2/16] (!%p3229_p7), %v4352_v35, 128  ;;  %849 = vxpose.xlu1.b32.cont [2/16] (!%p3229_p7), %v4355_v36, 128 }
  0x8a   : > { %5449 = vst [vmem:[#allocation24_spill] sm:$0xff] %v4437_v59  ;;  %5450 = vst [vmem:[#allocation25_spill] sm:$0xff] %v4440_v60  ;;  %v4446_v62 = vld [vmem:[%s4160_s7 + $0xe8] sm:$0xff]  ;;  %v4449_v63 = vld [vmem:[%s4160_s7 + $0xf0] sm:$0xff] }
  0x8b   : > { %5451 = vst [vmem:[#allocation26_spill] sm:$0xff] %v4443_v61  ;;  %5452 = vst [vmem:[#allocation27_spill] sm:$0xff] %v4446_v62  ;;  %v4452_v0 = vld [vmem:[%s4160_s7 + $0xf8] sm:$0xff]  ;;  %v418_v1 = vld [vmem:[%s4428_s8] sm:$0xff]  ;;  %s4507_s7 = scalar_lea.vmem (!%p3229_p7), [#allocation5], %s4167_s10 }
  0x8c   : > { %5453 = vst [vmem:[#allocation28_spill] sm:$0xff] %v4449_v63  ;;  %5454 = vst [vmem:[#allocation29_spill] sm:$0xff] %v4452_v0  ;;  %v419_v2 = vld [vmem:[%s4428_s8 + $0x8] sm:$0xff]  ;;  %v420_v3 = vld [vmem:[%s4428_s8 + $0x10] sm:$0xff]  ;;  %v4458_v5 = vmul.f32 0.5, %v418_v1 }
  0x8d   : > { %v421_v4 = vld [vmem:[%s4428_s8 + $0x18] sm:$0xff]  ;;  %v422_v6 = vld [vmem:[%s4428_s8 + $0x20] sm:$0xff]  ;;  %v423_v7 = vld [vmem:[%s4428_s8 + $0x28] sm:$0xff]  ;;  %v4463_v9 = vmul.f32 0.5, %v419_v2  ;;  %v4465_v10 = vmul.f32 0.5, %v420_v3  ;;  %818 = vxpose.xlu0.b32.cont [3/16] (!%p3229_p7), %v4358_v37, 128  ;;  %850 = vxpose.xlu1.b32.cont [3/16] (!%p3229_p7), %v4361_v38, 128 }
  0x8e   : > { %5455 = vst [vmem:[#allocation30_spill] sm:$0xff] %v4458_v5  ;;  %v424_v8 = vld [vmem:[%s4428_s8 + $0x30] sm:$0xff]  ;;  %v4467_v11 = vmul.f32 0.5, %v421_v4  ;;  %v425_v12 = vld [vmem:[%s4428_s8 + $0x38] sm:$0xff]  ;;  %v426_v13 = vld [vmem:[%s4428_s8 + $0x40] sm:$0xff]  ;;  %v4472_v15 = vmul.f32 0.5, %v422_v6 }
  0x8f   : > { %5456 = vst [vmem:[#allocation31_spill] sm:$0xff] %v4463_v9  ;;  %5457 = vst [vmem:[#allocation32_spill] sm:$0xff] %v4465_v10  ;;  %v427_v14 = vld [vmem:[%s4428_s8 + $0x48] sm:$0xff]  ;;  %v4474_v16 = vmul.f32 0.5, %v423_v7  ;;  %v4476_v17 = vmul.f32 0.5, %v424_v8  ;;  %v428_v18 = vld [vmem:[%s4428_s8 + $0x50] sm:$0xff] }
  0x90   : > { %5458 = vst [vmem:[#allocation33_spill] sm:$0xff] %v4467_v11  ;;  %5459 = vst [vmem:[#allocation34_spill] sm:$0xff] %v4472_v15  ;;  %v429_v19 = vld [vmem:[%s4428_s8 + $0x58] sm:$0xff]  ;;  %v430_v20 = vld [vmem:[%s4428_s8 + $0x60] sm:$0xff]  ;;  %v4481_v21 = vmul.f32 0.5, %v425_v12  ;;  %v4483_v22 = vmul.f32 0.5, %v426_v13 }
  0x91   : > { %5460 = vst [vmem:[#allocation35_spill] sm:$0xff] %v4474_v16  ;;  %5461 = vst [vmem:[#allocation36_spill] sm:$0xff] %v4476_v17  ;;  %v4485_v23 = vmul.f32 0.5, %v427_v14  ;;  %v431_v24 = vld [vmem:[%s4428_s8 + $0x68] sm:$0xff]  ;;  %v432_v25 = vld [vmem:[%s4428_s8 + $0x70] sm:$0xff]  ;;  %v4490_v27 = vmul.f32 0.5, %v428_v18  ;;  %819 = vxpose.xlu0.b32.cont [4/16] (!%p3229_p7), %v4366_v39, 128  ;;  %851 = vxpose.xlu1.b32.cont [4/16] (!%p3229_p7), %v4369_v40, 128 }
  0x92   : > { %5462 = vst [vmem:[#allocation37_spill] sm:$0xff] %v4481_v21  ;;  %5463 = vst [vmem:[#allocation38_spill] sm:$0xff] %v4483_v22  ;;  %v433_v26 = vld [vmem:[%s4428_s8 + $0x78] sm:$0xff]  ;;  %v4492_v28 = vmul.f32 0.5, %v429_v19  ;;  %v4494_v29 = vmul.f32 0.5, %v430_v20  ;;  %v4496_v30 = vmul.f32 0.5, %v431_v24 }
  0x93   : > { %5464 = vst [vmem:[#allocation39_spill] sm:$0xff] %v4485_v23  ;;  %5465 = vst [vmem:[#allocation40_spill] sm:$0xff] %v4490_v27  ;;  %v4498_v31 = vmul.f32 0.5, %v432_v25  ;;  %v4500_v32 = vmul.f32 0.5, %v433_v26  ;;  %459 = sbr.rel (%p3229_p7) target bundleno = 784 (0x310), region = 48  ;;  %v476_v1 = vld [vmem:[#allocation2 + $0x80] sm:$0xff] (!%p3229_p7) }
  0x94   : > { %5466 = vst [vmem:[#allocation41_spill] sm:$0xff] %v4492_v28  ;;  %5467 = vst [vmem:[#allocation42_spill] sm:$0xff] %v4494_v29  ;;  %v477_v2 = vld [vmem:[#allocation2 + $0x88] sm:$0xff] (!%p3229_p7)  ;;  %v460_v3 = vld [vmem:[#allocation2] sm:$0xff] (!%p3229_p7) }
  0x95   : > { %5468 = vst [vmem:[#allocation43_spill] sm:$0xff] %v4496_v30  ;;  %5469 = vst [vmem:[#allocation44_spill] sm:$0xff] %v4498_v31  ;;  %v3660_v4 = vpack.c.bf16 (!%p3229_p7), %v477_v2, %v476_v1  ;;  %v461_v6 = vld [vmem:[#allocation2 + $0x8] sm:$0xff] (!%p3229_p7)  ;;  %v478_v7 = vld [vmem:[#allocation2 + $0x90] sm:$0xff] (!%p3229_p7)  ;;  %820 = vxpose.xlu0.b32.cont [5/16] (!%p3229_p7), %v4372_v41, 128  ;;  %852 = vxpose.xlu1.b32.cont [5/16] (!%p3229_p7), %v4376_v42, 128 }
  0x96   : > { %5470 = vst [vmem:[#allocation45_spill] sm:$0xff] %v4500_v32  ;;  %v479_v8 = vld [vmem:[#allocation2 + $0x98] sm:$0xff] (!%p3229_p7)  ;;  %v3662_v12 = vpack.c.bf16 (!%p3229_p7), %v461_v6, %v460_v3  ;;  %v462_v14 = vld [vmem:[#allocation2 + $0x10] sm:$0xff] (!%p3229_p7)  ;;  %v800_v19 = vld [vmem:[%s4507_s7] sm:$0xff] (!%p3229_p7) }
  0x97   : > { %v3664_v13 = vpack.c.bf16 (!%p3229_p7), %v479_v8, %v478_v7  ;;  %v463_v18 = vld [vmem:[#allocation2 + $0x18] sm:$0xff] (!%p3229_p7)  ;;  %3661 = vmatprep.subr.bf16.mxu0 (!%p3229_p7), %v3660_v4  ;;  %v801_v20 = vld [vmem:[%s4507_s7 + $0x8] sm:$0xff] (!%p3229_p7)  ;;  %v480_v24 = vld [vmem:[#allocation2 + $0xa0] sm:$0xff] (!%p3229_p7) }
  0x98   : > { %v481_v25 = vld [vmem:[#allocation2 + $0xa8] sm:$0xff] (!%p3229_p7)  ;;  %v3692_v26 = vpack.c.bf16 (!%p3229_p7), %v801_v20, %v800_v19  ;;  %v802_v1 = vld [vmem:[%s4507_s7 + $0x10] sm:$0xff] (!%p3229_p7)  ;;  %3663 = vmatpush3.bf16.msra.mxu0 (!%p3229_p7), %v3662_v12  ;;  %v3666_v2 = vpack.c.bf16 (!%p3229_p7), %v463_v18, %v462_v14  ;;  %v803_v3 = vld [vmem:[%s4507_s7 + $0x18] sm:$0xff] (!%p3229_p7) }
  0x99   : > { %3665 = vmatprep.subr.bf16.mxu0 (!%p3229_p7), %v3664_v13  ;;  %v3668_v6 = vpack.c.bf16 (!%p3229_p7), %v481_v25, %v480_v24  ;;  %v464_v7 = vld [vmem:[#allocation2 + $0x20] sm:$0xff] (!%p3229_p7)  ;;  %v465_v8 = vld [vmem:[#allocation2 + $0x28] sm:$0xff] (!%p3229_p7)  ;;  %v3696_v4 = vpack.c.bf16 (!%p3229_p7), %v803_v3, %v802_v1  ;;  %v482_v31 = vld [vmem:[#allocation2 + $0xb0] sm:$0xff] (!%p3229_p7)  ;;  %821 = vxpose.xlu0.b32.cont [6/16] (!%p3229_p7), %v4379_v43, 128 }
  0x9a   : > { %3693 = vmatprep.subr.bf16.mxu1 %v3692_v26  ;;  %v804_v34 = vld [vmem:[%s4507_s7 + $0x20] sm:$0xff]  ;;  %v483_v32 = vld [vmem:[#allocation2 + $0xb8] sm:$0xff]  ;;  %v805_v29 = vld [vmem:[%s4507_s7 + $0x28] sm:$0xff]  ;;  %v3670_v12 = vpack.c.bf16 %v465_v8, %v464_v7  ;;  %853 = vxpose.xlu1.b32.cont [6/16] %v4382_v44, 128 }
  0x9b   : > { %3695 = vmatpush3.bf16.msra.mxu1 %v3692_v26  ;;  %v466_v13 = vld [vmem:[#allocation2 + $0x30] sm:$0xff]  ;;  %v3700_v14 = vpack.c.bf16 %v805_v29, %v804_v34  ;;  %v3672_v18 = vpack.c.bf16 %v483_v32, %v482_v31  ;;  %v467_v19 = vld [vmem:[#allocation2 + $0x38] sm:$0xff]  ;;  %v484_v25 = vld [vmem:[#allocation2 + $0xc0] sm:$0xff] }
  0x9c   : > { %3667 = vmatpush3.bf16.msra.mxu0 %v3666_v2  ;;  %3697 = vmatprep.subr.bf16.mxu1 %v3696_v4  ;;  %v806_v20 = vld [vmem:[%s4507_s7 + $0x30] sm:$0xff]  ;;  %v807_v24 = vld [vmem:[%s4507_s7 + $0x38] sm:$0xff]  ;;  %v485_v26 = vld [vmem:[#allocation2 + $0xc8] sm:$0xff]  ;;  %v3674_v1 = vpack.c.bf16 %v467_v19, %v466_v13 }
  0x9d   : > { %3669 = vmatprep.subr.bf16.mxu0 %v3668_v6  ;;  %v468_v2 = vld [vmem:[#allocation2 + $0x40] sm:$0xff]  ;;  %v3704_v3 = vpack.c.bf16 %v807_v24, %v806_v20  ;;  %v3676_v34 = vpack.c.bf16 %v485_v26, %v484_v25  ;;  %v469_v29 = vld [vmem:[#allocation2 + $0x48] sm:$0xff]  ;;  %v486_v6 = vld [vmem:[#allocation2 + $0xd0] sm:$0xff]  ;;  %822 = vxpose.xlu0.b32.cont [7/16] %v4385_v45, 128 }
  0x9e   : > { %v808_v31 = vld [vmem:[%s4507_s7 + $0x40] sm:$0xff]  ;;  %v809_v32 = vld [vmem:[%s4507_s7 + $0x48] sm:$0xff]  ;;  %v487_v7 = vld [vmem:[#allocation2 + $0xd8] sm:$0xff]  ;;  %v3678_v8 = vpack.c.bf16 %v469_v29, %v468_v2  ;;  %854 = vxpose.xlu1.b32.cont [7/16] %v4388_v46, 128 }
  0x9f   : > { %3699 = vmatpush3.bf16.msra.mxu1 %v3696_v4  ;;  %v470_v4 = vld [vmem:[#allocation2 + $0x50] sm:$0xff]  ;;  %v3680_v13 = vpack.c.bf16 %v487_v7, %v486_v6  ;;  %v811_v20 = vld [vmem:[%s4507_s7 + $0x58] sm:$0xff]  ;;  %v489_v24 = vld [vmem:[#allocation2 + $0xe8] sm:$0xff] }
  0xa0   : > { %3671 = vmatpush3.bf16.msra.mxu0 %v3670_v12  ;;  %3701 = vmatprep.subr.bf16.mxu1 %v3700_v14  ;;  %v3708_v12 = vpack.c.bf16 %v809_v32, %v808_v31  ;;  %v810_v19 = vld [vmem:[%s4507_s7 + $0x50] sm:$0xff]  ;;  %v472_v26 = vld [vmem:[#allocation2 + $0x60] sm:$0xff]  ;;  %v813_v31 = vld [vmem:[%s4507_s7 + $0x68] sm:$0xff] }
  0xa1   : > { %3673 = vmatprep.subr.bf16.mxu0 %v3672_v18  ;;  %v471_v18 = vld [vmem:[#allocation2 + $0x58] sm:$0xff]  ;;  %v812_v29 = vld [vmem:[%s4507_s7 + $0x60] sm:$0xff]  ;;  %v474_v7 = vld [vmem:[#allocation2 + $0x70] sm:$0xff]  ;;  %823 = vxpose.xlu0.b32.cont [8/16] %v4391_v47, 128 }
  0xa2   : > { %v3682_v25 = vpack.c.bf16 %v471_v18, %v470_v4  ;;  %v491_v32 = vld [vmem:[#allocation2 + $0xf8] sm:$0xff]  ;;  %v814_v18 = vld [vmem:[%s4507_s7 + $0x70] sm:$0xff]  ;;  %855 = vxpose.xlu1.b32.cont [8/16] %v4394_v48, 128 }
  0xa3   : > { %3703 = vmatpush3.bf16.msra.mxu1 %v3700_v14  ;;  %v488_v14 = vld [vmem:[#allocation2 + $0xe0] sm:$0xff] }
  0xa4   : > { %3675 = vmatpush3.bf16.msra.mxu0 %v3674_v1  ;;  %3705 = vmatprep.subr.bf16.mxu1 %v3704_v3  ;;  %v3712_v1 = vpack.c.bf16 %v811_v20, %v810_v19  ;;  %v3684_v2 = vpack.c.bf16 %v489_v24, %v488_v14  ;;  %v815_v19 = vld [vmem:[%s4507_s7 + $0x78] sm:$0xff]  ;;  %v4015_v14 = vmov 0  }
  0xa5   : > { %3677 = vmatprep.subr.bf16.mxu0 %v3676_v34  ;;  %v473_v34 = vld [vmem:[#allocation2 + $0x68] sm:$0xff]  ;;  %v3720_v20 = vpack.c.bf16 %v815_v19, %v814_v18  ;;  %824 = vxpose.xlu0.b32.cont [9/16] %v4397_v49, 128  ;;  %v5471_v24 = vld [vmem:[#allocation42_spill] sm:$0xff] }
  0xa6   : > { %v3686_v6 = vpack.c.bf16 %v473_v34, %v472_v26  ;;  %856 = vxpose.xlu1.b32.cont [9/16] %v4400_v50, 128  ;;  %v5473_v26 = vld [vmem:[#allocation44_spill] sm:$0xff] }
  0xa7   : > { %3707 = vmatpush3.bf16.msra.mxu1 %v3704_v3  ;;  %v490_v3 = vld [vmem:[#allocation2 + $0xf0] sm:$0xff] }
  0xa8   : > { %3679 = vmatpush3.bf16.msra.mxu0 %v3678_v8  ;;  %3709 = vmatprep.subr.bf16.mxu1 %v3708_v12  ;;  %v3716_v8 = vpack.c.bf16 %v813_v31, %v812_v29  ;;  %v3688_v4 = vpack.c.bf16 %v491_v32, %v490_v3 }
  0xa9   : > { %3681 = vmatprep.subr.bf16.mxu0 %v3680_v13  ;;  %v475_v13 = vld [vmem:[#allocation2 + $0x78] sm:$0xff]  ;;  %825 = vxpose.xlu0.b32.cont [10/16] %v4407_v51, 128 }
  0xaa   : > { %857 = vxpose.xlu1.b32.cont [10/16] %v4410_v52, 128 }
  0xab   : > { %3711 = vmatpush3.bf16.msra.mxu1 %v3708_v12  ;;  %v3690_v12 = vpack.c.bf16 %v475_v13, %v474_v7 }
  0xac   : > { %3683 = vmatpush3.bf16.msra.mxu0 %v3682_v25  ;;  %3713 = vmatprep.subr.bf16.mxu1 %v3712_v1  ;;  %v5472_v25 = vld [vmem:[#allocation45_spill] sm:$0xff] }
  0xad   : > { %3685 = vmatprep.subr.bf16.mxu0 %v3684_v2  ;;  %826 = vxpose.xlu0.b32.cont [11/16] %v4413_v53, 128 }
  0xae   : > { %858 = vxpose.xlu1.b32.cont [11/16] %v4416_v54, 128 }
  0xaf   : > { %3715 = vmatpush3.bf16.msra.mxu1 %v3712_v1 }
  0xb0   : > { %3687 = vmatpush3.bf16.msra.mxu0 %v3686_v6  ;;  %3717 = vmatprep.subr.bf16.mxu1 %v3716_v8 }
  0xb1   : > { %3689 = vmatprep.subr.bf16.mxu0 %v3688_v4  ;;  %827 = vxpose.xlu0.b32.cont [12/16] %v4419_v55, 128 }
  0xb2   : > { %859 = vxpose.xlu1.b32.cont [12/16] %v4422_v56, 128 }
  0xb3   : > { %3719 = vmatpush3.bf16.msra.mxu1 %v3716_v8 }
  0xb4   : > { %3691 = vmatpush3.bf16.msra.mxu0 %v3690_v12  ;;  %3721 = vmatprep.subr.bf16.mxu1 %v3720_v20 }
  0xb5   : > { %828 = vxpose.xlu0.b32.cont [13/16] %v4431_v57, 128 }
  0xb6   : > { %860 = vxpose.xlu1.b32.cont [13/16] %v4434_v58, 128 }
  0xb7   : > { %3723 = vmatpush3.bf16.msra.mxu1 %v3720_v20  ;;  %557 = vmatmul.mubr.f32.vlgmr.msra.gmra.mrb[0].mxu0 %v4346_v33 }
  0xb8   : > { %561 = vmatprep.mubr.f32.mxu0 %v4355_v36 }
  0xb9   : > { %829 = vxpose.xlu0.b32.cont [14/16] %v4437_v59, 128 }
  0xba   : > { %861 = vxpose.xlu1.b32.cont [14/16] %v4440_v60, 128 }
  0xbb   : > { %562 = vmatmul.mubr.f32.gmra.mrb[2].mxu0 %v4352_v35 }
  0xbc   : > { %566 = vmatprep.mubr.f32.mxu0 %v4361_v38 }
  0xbd   : > { %830 = vxpose.xlu0.b32.cont [15/16] %v4443_v61, 128 }
  0xbe   : > { %862 = vxpose.xlu1.b32.cont [15/16] %v4446_v62, 128 }
  0xbf   : > { %567 = vmatmul.mubr.f32.gmra.mrb[4].mxu0 %v4358_v37 }
  0xc0   : > { %571 = vmatprep.mubr.f32.mxu0 %v4369_v40 }
  0xc1   : > { %831 = vxpose.xlu0.b32.end [16/16] %v4449_v63, 128 }
  0xc2   : > { %863 = vxpose.xlu1.b32.end [16/16] %v4452_v0, 128 }
  0xc3   : > { %572 = vmatmul.mubr.f32.gmra.mrb[6].mxu0 %v4366_v39 }
  0xc4   : > { %576 = vmatprep.mubr.f32.mxu0 %v4376_v42 }
  0xc7   : > { %577 = vmatmul.mubr.f32.gmra.mrb[8].mxu0 %v4372_v41 }
  0xc8   : > { %581 = vmatprep.mubr.f32.mxu0 %v4382_v44 }
  0xcb   : > { %582 = vmatmul.mubr.f32.gmra.mrb[10].mxu0 %v4379_v43 }
  0xcc   : > { %586 = vmatprep.mubr.f32.mxu0 %v4388_v46 }
  0xcf   : > { %587 = vmatmul.mubr.f32.gmra.mrb[12].mxu0 %v4385_v45 }
  0xd0   : > { %591 = vmatprep.mubr.f32.mxu0 %v4394_v48 }
  0xd3   : > { %592 = vmatmul.mubr.f32.gmra.mrb[14].mxu0 %v4391_v47 }
  0xd4   : > { %596 = vmatprep.mubr.f32.mxu0 %v4400_v50 }
  0xd7   : > { %597 = vmatmul.mubr.f32.gmra.mrb[16].mxu0 %v4397_v49 }
  0xd8   : > { %601 = vmatprep.mubr.f32.mxu0 %v4410_v52 }
  0xdb   : > { %602 = vmatmul.mubr.f32.gmra.mrb[18].mxu0 %v4407_v51 }
  0xdc   : > { %606 = vmatprep.mubr.f32.mxu0 %v4416_v54 }
  0xdf   : > { %607 = vmatmul.mubr.f32.gmra.mrb[20].mxu0 %v4413_v53 }
  0xe0   : > { %611 = vmatprep.mubr.f32.mxu0 %v4422_v56  ;;  %3876 = vset.pattern.permute.xlu1 %v4015_v14 }
  0xe1   : > { %644 = vperm.xlu1 %3876, %v4463_v9  }
  0xe3   : > { %612 = vmatmul.mubr.f32.gmra.mrb[22].mxu0 %v4419_v55 }
  0xe4   : > { %616 = vmatprep.mubr.f32.mxu0 %v4434_v58 }
  0xe5   : > { %649 = vperm.xlu1 %3876, %v4465_v10  }
  0xe7   : > { %617 = vmatmul.mubr.f32.gmra.mrb[24].mxu0 %v4431_v57 }
  0xe8   : > { %621 = vmatprep.mubr.f32.mxu0 %v4440_v60 }
  0xe9   : > { %654 = vperm.xlu1 %3876, %v4467_v11  }
  0xea   : > { %3875 = vset.pattern.permute.xlu0 %v4015_v14 }
  0xeb   : > { %622 = vmatmul.mubr.f32.gmra.mrb[26].mxu0 %v4437_v59  ;;  %639 = vperm.xlu0 %3875, %v4458_v5  }
  0xec   : > { %626 = vmatprep.mubr.f32.mxu0 %v4446_v62 }
  0xed   : > { %659 = vperm.xlu1 %3876, %v4472_v15  }
  0xef   : > { %627 = vmatmul.mubr.f32.gmra.mrb[28].mxu0 %v4443_v61  ;;  %664 = vperm.xlu0 %3875, %v4474_v16  }
  0xf0   : > { %631 = vmatprep.mubr.f32.mxu0 %v4452_v0 }
  0xf1   : > { %669 = vperm.xlu1 %3876, %v4476_v17  }
  0xf3   : > { %632 = vmatmul.mubr.f32.gmra.mrb[30].mxu0 %v4449_v63  ;;  %674 = vperm.xlu0 %3875, %v4481_v21  }
  0xf5   : > { %679 = vperm.xlu1 %3876, %v4483_v22  }
  0xf7   : > { %684 = vperm.xlu0 %3875, %v4485_v23  }
  0xf9   : > { %689 = vperm.xlu1 %3876, %v4490_v27  }
  0xfb   : > { %694 = vperm.xlu0 %3875, %v4492_v28  }
  0xfd   : > { %699 = vperm.xlu1 %3876, %v5471_v24  }
  0xff   : > { %704 = vperm.xlu0 %3875, %v4496_v30  }
 0x101   : > { %709 = vperm.xlu1 %3876, %v5473_v26  }
 0x103   : > { %714 = vperm.xlu0 %3875, %v5472_v25  }
 0x105   : > { %v832_v1 = vpop.trf.xlu0 }
 0x106   : > { %v864_v2 = vpop.trf.xlu1  ;;  %3532 = vmatprep.mubr.f32.mxu1 %v832_v1 }
 0x109   : > { %v833_v34 = vpop.trf.xlu0 }
 0x10a   : > { %3533 = vmatmul.mubr.f32.vlgmr.msra.gmra.mrb[0].mxu1 %v833_v34  ;;  %v865_v29 = vpop.trf.xlu1 }
 0x10d   : > { %v834_v31 = vpop.trf.xlu0 }
 0x10e   : > { %3535 = vmatprep.mubr.f32.mxu1 %v834_v31  ;;  %v866_v32 = vpop.trf.xlu1 }
 0x111   : > { %v835_v3 = vpop.trf.xlu0 }
 0x112   : > { %3536 = vmatmul.mubr.f32.gmra.mrb[2].mxu1 %v835_v3  ;;  %v867_v7 = vpop.trf.xlu1 }
 0x115   : > { %v836_v6 = vpop.trf.xlu0 }
 0x116   : > { %3538 = vmatprep.mubr.f32.mxu1 %v836_v6  ;;  %v868_v13 = vpop.trf.xlu1 }
 0x119   : > { %v837_v8 = vpop.trf.xlu0 }
 0x11a   : > { %3539 = vmatmul.mubr.f32.gmra.mrb[4].mxu1 %v837_v8  ;;  %v869_v19 = vpop.trf.xlu1 }
 0x11d   : > { %v838_v4 = vpop.trf.xlu0 }
 0x11e   : > { %3541 = vmatprep.mubr.f32.mxu1 %v838_v4  ;;  %v870_v14 = vpop.trf.xlu1 }
 0x121   : > { %v839_v18 = vpop.trf.xlu0 }
 0x122   : > { %3542 = vmatmul.mubr.f32.gmra.mrb[6].mxu1 %v839_v18  ;;  %v871_v25 = vpop.trf.xlu1 }
 0x125   : > { %v840_v12 = vpop.trf.xlu0 }
 0x126   : > { %3544 = vmatprep.mubr.f32.mxu1 %v840_v12  ;;  %v872_v34 = vpop.trf.xlu1 }
 0x129   : > { %v841_v20 = vpop.trf.xlu0 }
 0x12a   : > { %3545 = vmatmul.mubr.f32.gmra.mrb[8].mxu1 %v841_v20  ;;  %v873_v3 = vpop.trf.xlu1 }
 0x12d   : > { %v842_v24 = vpop.trf.xlu0 }
 0x12e   : > { %3547 = vmatprep.mubr.f32.mxu1 %v842_v24  ;;  %v874_v4 = vpop.trf.xlu1 }
 0x131   : > { %v843_v26 = vpop.trf.xlu0 }
 0x132   : > { %3548 = vmatmul.mubr.f32.gmra.mrb[10].mxu1 %v843_v26  ;;  %v875_v18 = vpop.trf.xlu1 }
 0x135   : > { %v844_v1 = vpop.trf.xlu0 }
 0x136   : > { %3550 = vmatprep.mubr.f32.mxu1 %v844_v1  ;;  %v876_v12 = vpop.trf.xlu1 }
 0x139   : > { %v845_v31 = vpop.trf.xlu0 }
 0x13a   : > { %3551 = vmatmul.mubr.f32.gmra.mrb[12].mxu1 %v845_v31  ;;  %v877_v20 = vpop.trf.xlu1 }
 0x13d   : > { %v846_v6 = vpop.trf.xlu0 }
 0x13e   : > { %3553 = vmatprep.mubr.f32.mxu1 %v846_v6  ;;  %v878_v24 = vpop.trf.xlu1  ;;  %v752_v6 = vld [vmem:[%s4603_s9 + $0x8] sm:$0xff] }
 0x141   : > { %v847_v8 = vpop.trf.xlu0 }
 0x142   : > { %3554 = vmatmul.mubr.f32.gmra.mrb[14].mxu1 %v847_v8 }
 0x143   : > { %3556 = vmatprep.mubr.f32.mxu1 %v864_v2  ;;  %v879_v2 = vpop.trf.xlu1 }
 0x146   : > { %3557 = vmatmul.mubr.f32.gmra.mrb[16].mxu1 %v865_v29 }
 0x147   : > { %3559 = vmatprep.mubr.f32.mxu1 %v866_v32 }
 0x14a   : > { %3560 = vmatmul.mubr.f32.gmra.mrb[18].mxu1 %v867_v7 }
 0x14b   : > { %3562 = vmatprep.mubr.f32.mxu1 %v868_v13 }
 0x14e   : > { %3563 = vmatmul.mubr.f32.gmra.mrb[20].mxu1 %v869_v19 }
 0x14f   : > { %3565 = vmatprep.mubr.f32.mxu1 %v870_v14  ;;  %v751_v14 = vld [vmem:[%s4603_s9] sm:$0xff] }
 0x152   : > { %3566 = vmatmul.mubr.f32.gmra.mrb[22].mxu1 %v871_v25 }
 0x153   : > { %3568 = vmatprep.mubr.f32.mxu1 %v872_v34 }
 0x156   : > { %3569 = vmatmul.mubr.f32.gmra.mrb[24].mxu1 %v873_v3 }
 0x157   : > { %3571 = vmatprep.mubr.f32.mxu1 %v874_v4 }
 0x15a   : > { %3572 = vmatmul.mubr.f32.gmra.mrb[26].mxu1 %v875_v18 }
 0x15b   : > { %3574 = vmatprep.mubr.f32.mxu1 %v876_v12 }
 0x15e   : > { %3575 = vmatmul.mubr.f32.gmra.mrb[28].mxu1 %v877_v20 }
 0x15f   : > { %3577 = vmatprep.mubr.f32.mxu1 %v878_v24  ;;  %v753_v24 = vld [vmem:[%s4603_s9 + $0x10] sm:$0xff] }
 0x160   : > { %v645_v29 = vpop.permute.xlu1 %644 }
 0x162   : > { %3578 = vmatmul.mubr.f32.gmra.mrb[30].mxu1 %v879_v2 }
 0x164   : > { %v650_v3 = vpop.permute.xlu1 %649 }
 0x16a   : > { %v640_v13 = vpop.permute.xlu0 %639 }
 0x18a   : > { %v3276_v32 = vpop.f32.mrb[0].mxu0 }
 0x18b   : > { %v3277_v7 = vpop.f32.mrb[1].mxu0 }
 0x18c   : > { %v3278_v19 = vadd.f32 %v3277_v7, %v3276_v32  ;;  %v655_v7 = vpop.permute.xlu1 %654 }
 0x18e   : > { %v717_v25 = vmul.f32 %v3278_v19, %v640_v13  ;;  %v3279_v26 = vpop.f32.mrb[2].mxu0 }
 0x18f   : > { %v3280_v1 = vpop.f32.mrb[3].mxu0 }
 0x190   : > { %734 = vst [vmem:[%s4607_s11] sm:$0xff] %v717_v25  ;;  %v767_v34 = vadd.f32 %v751_v14, %v717_v25  ;;  %v3281_v31 = vadd.f32 %v3280_v1, %v3279_v26 }
 0x192   : > { %783 = vst [vmem:[%s4603_s9] sm:$0xff] %v767_v34  ;;  %v718_v8 = vmul.f32 %v3281_v31, %v645_v29  ;;  %v3282_v4 = vpop.f32.mrb[4].mxu0  ;;  %v754_v29 = vld [vmem:[%s4603_s9 + $0x18] sm:$0xff] }
 0x193   : > { %v3283_v18 = vpop.f32.mrb[5].mxu0 }
 0x194   : > { %735 = vst [vmem:[%s4607_s11 + $0x8] sm:$0xff] %v718_v8  ;;  %v768_v12 = vadd.f32 %v752_v6, %v718_v8  ;;  %v3284_v20 = vadd.f32 %v3283_v18, %v3282_v4  ;;  %v755_v6 = vld [vmem:[%s4603_s9 + $0x20] sm:$0xff] }
 0x196   : > { %784 = vst [vmem:[%s4603_s9 + $0x8] sm:$0xff] %v768_v12  ;;  %v719_v2 = vmul.f32 %v3284_v20, %v650_v3  ;;  %v3285_v32 = vpop.f32.mrb[6].mxu0  ;;  %v660_v3 = vpop.permute.xlu1 %659 }
 0x197   : > { %v3286_v13 = vpop.f32.mrb[7].mxu0 }
 0x198   : > { %736 = vst [vmem:[%s4607_s11 + $0x10] sm:$0xff] %v719_v2  ;;  %v769_v19 = vadd.f32 %v753_v24, %v719_v2  ;;  %v3287_v14 = vadd.f32 %v3286_v13, %v3285_v32  ;;  %v756_v24 = vld [vmem:[%s4603_s9 + $0x28] sm:$0xff]  ;;  %v665_v2 = vpop.permute.xlu0 %664 }
 0x19a   : > { %785 = vst [vmem:[%s4603_s9 + $0x10] sm:$0xff] %v769_v19  ;;  %v720_v25 = vmul.f32 %v3287_v14, %v655_v7  ;;  %v3288_v26 = vpop.f32.mrb[8].mxu0 }
 0x19b   : > { %v3289_v1 = vpop.f32.mrb[9].mxu0 }
 0x19c   : > { %737 = vst [vmem:[%s4607_s11 + $0x18] sm:$0xff] %v720_v25  ;;  %v770_v34 = vadd.f32 %v754_v29, %v720_v25  ;;  %v3290_v31 = vadd.f32 %v3289_v1, %v3288_v26  ;;  %v757_v29 = vld [vmem:[%s4603_s9 + $0x30] sm:$0xff]  ;;  %v670_v25 = vpop.permute.xlu1 %669 }
 0x19e   : > { %786 = vst [vmem:[%s4603_s9 + $0x18] sm:$0xff] %v770_v34  ;;  %v3291_v8 = vpop.f32.mrb[10].mxu0  ;;  %v721_v4 = vmul.f32 %v3290_v31, %v660_v3  ;;  %v758_v3 = vld [vmem:[%s4603_s9 + $0x38] sm:$0xff] }
 0x19f   : > { %v3292_v18 = vpop.f32.mrb[11].mxu0 }
 0x1a0   : > { %738 = vst [vmem:[%s4607_s11 + $0x20] sm:$0xff] %v721_v4  ;;  %v771_v12 = vadd.f32 %v755_v6, %v721_v4  ;;  %v3293_v20 = vadd.f32 %v3292_v18, %v3291_v8  ;;  %v675_v8 = vpop.permute.xlu0 %674 }
 0x1a2   : > { %787 = vst [vmem:[%s4603_s9 + $0x20] sm:$0xff] %v771_v12  ;;  %v3294_v32 = vpop.f32.mrb[12].mxu0  ;;  %v722_v7 = vmul.f32 %v3293_v20, %v665_v2  ;;  %v759_v2 = vld [vmem:[%s4603_s9 + $0x40] sm:$0xff] }
 0x1a3   : > { %v3295_v13 = vpop.f32.mrb[13].mxu0 }
 0x1a4   : > { %v3296_v19 = vadd.f32 %v3295_v13, %v3294_v32  ;;  %739 = vst [vmem:[%s4607_s11 + $0x28] sm:$0xff] %v722_v7  ;;  %v772_v14 = vadd.f32 %v756_v24, %v722_v7  ;;  %v680_v32 = vpop.permute.xlu1 %679 }
 0x1a6   : > { %v3297_v26 = vpop.f32.mrb[14].mxu0  ;;  %v723_v1 = vmul.f32 %v3296_v19, %v670_v25  ;;  %788 = vst [vmem:[%s4603_s9 + $0x28] sm:$0xff] %v772_v14  ;;  %v760_v25 = vld [vmem:[%s4603_s9 + $0x48] sm:$0xff] }
 0x1a7   : > { %v3298_v34 = vpop.f32.mrb[15].mxu0 }
 0x1a8   : > { %740 = vst [vmem:[%s4607_s11 + $0x30] sm:$0xff] %v723_v1  ;;  %v773_v31 = vadd.f32 %v757_v29, %v723_v1  ;;  %v3299_v6 = vadd.f32 %v3298_v34, %v3297_v26  ;;  %v685_v26 = vpop.permute.xlu0 %684 }
 0x1aa   : > { %789 = vst [vmem:[%s4603_s9 + $0x30] sm:$0xff] %v773_v31  ;;  %v3300_v4 = vpop.f32.mrb[16].mxu0  ;;  %v724_v18 = vmul.f32 %v3299_v6, %v675_v8  ;;  %v761_v8 = vld [vmem:[%s4603_s9 + $0x50] sm:$0xff] }
 0x1ab   : > { %v3301_v12 = vpop.f32.mrb[17].mxu0 }
 0x1ac   : > { %v3302_v20 = vadd.f32 %v3301_v12, %v3300_v4  ;;  %741 = vst [vmem:[%s4607_s11 + $0x38] sm:$0xff] %v724_v18  ;;  %v774_v24 = vadd.f32 %v758_v3, %v724_v18  ;;  %v690_v4 = vpop.permute.xlu1 %689 }
 0x1ae   : > { %v3303_v7 = vpop.f32.mrb[18].mxu0  ;;  %v725_v13 = vmul.f32 %v3302_v20, %v680_v32  ;;  %790 = vst [vmem:[%s4603_s9 + $0x38] sm:$0xff] %v774_v24  ;;  %v762_v32 = vld [vmem:[%s4603_s9 + $0x58] sm:$0xff] }
 0x1af   : > { %v3304_v19 = vpop.f32.mrb[19].mxu0 }
 0x1b0   : > { %742 = vst [vmem:[%s4607_s11 + $0x40] sm:$0xff] %v725_v13  ;;  %v775_v14 = vadd.f32 %v759_v2, %v725_v13  ;;  %v3305_v29 = vadd.f32 %v3304_v19, %v3303_v7  ;;  %v695_v7 = vpop.permute.xlu0 %694 }
 0x1b2   : > { %791 = vst [vmem:[%s4603_s9 + $0x40] sm:$0xff] %v775_v14  ;;  %v3306_v1 = vpop.f32.mrb[20].mxu0  ;;  %v726_v34 = vmul.f32 %v3305_v29, %v685_v26  ;;  %v763_v26 = vld [vmem:[%s4603_s9 + $0x60] sm:$0xff] }
 0x1b3   : > { %v3307_v31 = vpop.f32.mrb[21].mxu0 }
 0x1b4   : > { %v3308_v6 = vadd.f32 %v3307_v31, %v3306_v1  ;;  %743 = vst [vmem:[%s4607_s11 + $0x48] sm:$0xff] %v726_v34  ;;  %v776_v3 = vadd.f32 %v760_v25, %v726_v34  ;;  %v700_v1 = vpop.permute.xlu1 %699 }
 0x1b6   : > { %v3309_v18 = vpop.f32.mrb[22].mxu0  ;;  %v727_v12 = vmul.f32 %v3308_v6, %v690_v4  ;;  %792 = vst [vmem:[%s4603_s9 + $0x48] sm:$0xff] %v776_v3  ;;  %v764_v4 = vld [vmem:[%s4603_s9 + $0x68] sm:$0xff] }
 0x1b7   : > { %v3310_v20 = vpop.f32.mrb[23].mxu0 }
 0x1b8   : > { %744 = vst [vmem:[%s4607_s11 + $0x50] sm:$0xff] %v727_v12  ;;  %v777_v24 = vadd.f32 %v761_v8, %v727_v12  ;;  %v3311_v2 = vadd.f32 %v3310_v20, %v3309_v18  ;;  %v705_v18 = vpop.permute.xlu0 %704 }
 0x1ba   : > { %793 = vst [vmem:[%s4603_s9 + $0x50] sm:$0xff] %v777_v24  ;;  %v3312_v13 = vpop.f32.mrb[24].mxu0  ;;  %v728_v19 = vmul.f32 %v3311_v2, %v695_v7  ;;  %v710_v2 = vpop.permute.xlu1 %709 }
 0x1bb   : > { %v3313_v14 = vpop.f32.mrb[25].mxu0 }
 0x1bc   : > { %v3314_v29 = vadd.f32 %v3313_v14, %v3312_v13  ;;  %745 = vst [vmem:[%s4607_s11 + $0x58] sm:$0xff] %v728_v19  ;;  %v778_v25 = vadd.f32 %v762_v32, %v728_v19  ;;  %v765_v13 = vld [vmem:[%s4603_s9 + $0x70] sm:$0xff] }
 0x1be   : > { %v3315_v34 = vpop.f32.mrb[26].mxu0  ;;  %v729_v31 = vmul.f32 %v3314_v29, %v700_v1  ;;  %794 = vst [vmem:[%s4603_s9 + $0x58] sm:$0xff] %v778_v25  ;;  %v715_v25 = vpop.permute.xlu0 %714 }
 0x1bf   : > { %v3316_v6 = vpop.f32.mrb[27].mxu0 }
 0x1c0   : > { %746 = vst [vmem:[%s4607_s11 + $0x60] sm:$0xff] %v729_v31  ;;  %v779_v3 = vadd.f32 %v763_v26, %v729_v31  ;;  %v3317_v8 = vadd.f32 %v3316_v6, %v3315_v34  ;;  %v766_v34 = vld [vmem:[%s4603_s9 + $0x78] sm:$0xff] }
 0x1c2   : > { %795 = vst [vmem:[%s4603_s9 + $0x60] sm:$0xff] %v779_v3  ;;  %v3318_v12 = vpop.f32.mrb[28].mxu0  ;;  %v730_v20 = vmul.f32 %v3317_v8, %v705_v18 }
 0x1c3   : > { %v3319_v24 = vpop.f32.mrb[29].mxu0 }
 0x1c4   : > { %v3320_v32 = vadd.f32 %v3319_v24, %v3318_v12  ;;  %747 = vst [vmem:[%s4607_s11 + $0x68] sm:$0xff] %v730_v20  ;;  %v780_v7 = vadd.f32 %v764_v4, %v730_v20 }
 0x1c6   : > { %v731_v19 = vmul.f32 %v3320_v32, %v710_v2  ;;  %796 = vst [vmem:[%s4603_s9 + $0x68] sm:$0xff] %v780_v7  ;;  %v3321_v14 = vpop.f32.mrb[30].mxu0 }
 0x1c7   : > { %v3322_v29 = vpop.f32.mrb[31].mxu0 }
 0x1c8   : > { %748 = vst [vmem:[%s4607_s11 + $0x70] sm:$0xff] %v731_v19  ;;  %v781_v26 = vadd.f32 %v765_v13, %v731_v19  ;;  %v3323_v1 = vadd.f32 %v3322_v29, %v3321_v14 }
 0x1ca   : > { %797 = vst [vmem:[%s4603_s9 + $0x70] sm:$0xff] %v781_v26  ;;  %v732_v31 = vmul.f32 %v3323_v1, %v715_v25 }
 0x1cc   : > { %749 = vst [vmem:[%s4607_s11 + $0x78] sm:$0xff] %v732_v31  ;;  %v782_v6 = vadd.f32 %v766_v34, %v732_v31 }
 0x1ce   : > { %798 = vst [vmem:[%s4603_s9 + $0x78] sm:$0xff] %v782_v6 }
 0x1dd   : > { %v4656_v3 = vpop.f32.mrb[0].mxu1 }
 0x1de   : > { %v4658_v8 = vpop.f32.mrb[1].mxu1  ;;  %1109 = vst [vmem:[#allocation7 + $0x8] sm:$0xff] (!%p3230_p8), %v4656_v3 }
 0x1df   : > { %1108 = vst [vmem:[#allocation7] sm:$0xff] (!%p3230_p8), %v4658_v8 }
 0x1e5   : > { %v4660_v4 = vpop.f32.mrb[2].mxu1 }
 0x1e6   : > { %v4662_v18 = vpop.f32.mrb[3].mxu1  ;;  %1111 = vst [vmem:[#allocation7 + $0x18] sm:$0xff] (!%p3230_p8), %v4660_v4 }
 0x1e7   : > { %1110 = vst [vmem:[#allocation7 + $0x10] sm:$0xff] (!%p3230_p8), %v4662_v18 }
 0x1ed   : > { %v4664_v12 = vpop.f32.mrb[4].mxu1 }
 0x1ee   : > { %v4666_v20 = vpop.f32.mrb[5].mxu1  ;;  %1113 = vst [vmem:[#allocation7 + $0x28] sm:$0xff] (!%p3230_p8), %v4664_v12 }
 0x1ef   : > { %1112 = vst [vmem:[#allocation7 + $0x20] sm:$0xff] (!%p3230_p8), %v4666_v20 }
 0x1f5   : > { %v4668_v24 = vpop.f32.mrb[6].mxu1 }
 0x1f6   : > { %v4670_v2 = vpop.f32.mrb[7].mxu1  ;;  %1115 = vst [vmem:[#allocation7 + $0x38] sm:$0xff] (!%p3230_p8), %v4668_v24 }
 0x1f7   : > { %1114 = vst [vmem:[#allocation7 + $0x30] sm:$0xff] (!%p3230_p8), %v4670_v2 }
 0x1fd   : > { %v4672_v32 = vpop.f32.mrb[8].mxu1 }
 0x1fe   : > { %v4674_v7 = vpop.f32.mrb[9].mxu1  ;;  %1117 = vst [vmem:[#allocation7 + $0x48] sm:$0xff] (!%p3230_p8), %v4672_v32 }
 0x1ff   : > { %1116 = vst [vmem:[#allocation7 + $0x40] sm:$0xff] (!%p3230_p8), %v4674_v7 }
 0x205   : > { %v4676_v13 = vpop.f32.mrb[10].mxu1 }
 0x206   : > { %v4678_v19 = vpop.f32.mrb[11].mxu1  ;;  %1119 = vst [vmem:[#allocation7 + $0x58] sm:$0xff] (!%p3230_p8), %v4676_v13 }
 0x207   : > { %1118 = vst [vmem:[#allocation7 + $0x50] sm:$0xff] (!%p3230_p8), %v4678_v19 }
 0x20d   : > { %v4680_v14 = vpop.f32.mrb[12].mxu1 }
 0x20e   : > { %v4682_v29 = vpop.f32.mrb[13].mxu1  ;;  %1121 = vst [vmem:[#allocation7 + $0x68] sm:$0xff] (!%p3230_p8), %v4680_v14 }
 0x20f   : > { %1120 = vst [vmem:[#allocation7 + $0x60] sm:$0xff] (!%p3230_p8), %v4682_v29 }
 0x215   : > { %v4684_v25 = vpop.f32.mrb[14].mxu1 }
 0x216   : > { %v4686_v26 = vpop.f32.mrb[15].mxu1  ;;  %1123 = vst [vmem:[#allocation7 + $0x78] sm:$0xff] (!%p3230_p8), %v4684_v25 }
 0x217   : > { %1122 = vst [vmem:[#allocation7 + $0x70] sm:$0xff] (!%p3230_p8), %v4686_v26 }
 0x219   : > { %v4688_v1 = vpop.f32.mrb[16].mxu1 }
 0x21a   : > { %v4690_v34 = vpop.f32.mrb[17].mxu1  ;;  %1125 = vst [vmem:[#allocation7 + $0x88] sm:$0xff] (!%p3230_p8), %v4688_v1 }
 0x21b   : > { %1124 = vst [vmem:[#allocation7 + $0x80] sm:$0xff] (!%p3230_p8), %v4690_v34 }
 0x21d   : > { %v4692_v31 = vpop.f32.mrb[18].mxu1 }
 0x21e   : > { %v4694_v6 = vpop.f32.mrb[19].mxu1  ;;  %1127 = vst [vmem:[#allocation7 + $0x98] sm:$0xff] (!%p3230_p8), %v4692_v31 }
 0x21f   : > { %1126 = vst [vmem:[#allocation7 + $0x90] sm:$0xff] (!%p3230_p8), %v4694_v6 }
 0x221   : > { %v4696_v30 = vpop.f32.mrb[20].mxu1 }
 0x222   : > { %v4698_v27 = vpop.f32.mrb[21].mxu1  ;;  %1129 = vst [vmem:[#allocation7 + $0xa8] sm:$0xff] (!%p3230_p8), %v4696_v30 }
 0x223   : > { %1128 = vst [vmem:[#allocation7 + $0xa0] sm:$0xff] (!%p3230_p8), %v4698_v27 }
 0x225   : > { %v4700_v28 = vpop.f32.mrb[22].mxu1 }
 0x226   : > { %v4702_v22 = vpop.f32.mrb[23].mxu1  ;;  %1131 = vst [vmem:[#allocation7 + $0xb8] sm:$0xff] (!%p3230_p8), %v4700_v28 }
 0x227   : > { %1130 = vst [vmem:[#allocation7 + $0xb0] sm:$0xff] (!%p3230_p8), %v4702_v22 }
 0x229   : > { %v4704_v23 = vpop.f32.mrb[24].mxu1 }
 0x22a   : > { %v4706_v17 = vpop.f32.mrb[25].mxu1  ;;  %1133 = vst [vmem:[#allocation7 + $0xc8] sm:$0xff] (!%p3230_p8), %v4704_v23 }
 0x22b   : > { %1132 = vst [vmem:[#allocation7 + $0xc0] sm:$0xff] (!%p3230_p8), %v4706_v17 }
 0x22d   : > { %v4708_v21 = vpop.f32.mrb[26].mxu1 }
 0x22e   : > { %v4710_v15 = vpop.f32.mrb[27].mxu1  ;;  %1135 = vst [vmem:[#allocation7 + $0xd8] sm:$0xff] (!%p3230_p8), %v4708_v21 }
 0x22f   : > { %1134 = vst [vmem:[#allocation7 + $0xd0] sm:$0xff] (!%p3230_p8), %v4710_v15 }
 0x230   : > { %1107 = sbr.rel (%p3230_p8) target bundleno = 568 (0x238), region = 52 }
 0x231   : > { %v4712_v16 = vpop.f32.mrb[28].mxu1 }
 0x232   : > { %v4714_v11 = vpop.f32.mrb[29].mxu1  ;;  %1137 = vst [vmem:[#allocation7 + $0xe8] sm:$0xff] (!%p3230_p8), %v4712_v16 }
 0x233   : > { %1136 = vst [vmem:[#allocation7 + $0xe0] sm:$0xff] (!%p3230_p8), %v4714_v11 }
 0x235   : > { %v4716_v5 = vpop.f32.mrb[30].mxu1 }
 0x236   : > { %v4718_v10 = vpop.f32.mrb[31].mxu1  ;;  %1139 = vst [vmem:[#allocation7 + $0xf8] sm:$0xff] (!%p3230_p8), %v4716_v5 }
 0x237   : > { %1138 = vst [vmem:[#allocation7 + $0xf0] sm:$0xff] %v4718_v10 }
 0x238 PF: > { %1143 = sbr.rel (%p220_p5) target bundleno = 587 (0x24b), region = 56  ;;  %v1144_v9 = vld [vmem:[#allocation7] sm:$0xff] (!%p220_p5)  ;;  %v1145_v0 = vld [vmem:[#allocation7 + $0x8] sm:$0xff] (!%p220_p5)  ;;  %v1146_v63 = vld [vmem:[#allocation7 + $0x10] sm:$0xff] (!%p220_p5) }
 0x239   : > { %v1176_v62 = vadd.f32 (!%p220_p5), %v1144_v9, %v4658_v8  ;;  %v1177_v61 = vadd.f32 (!%p220_p5), %v4656_v3, %v1145_v0  ;;  %v1178_v60 = vadd.f32 (!%p220_p5), %v1146_v63, %v4662_v18  ;;  %v1147_v59 = vld [vmem:[#allocation7 + $0x18] sm:$0xff] (!%p220_p5)  ;;  %v1148_v58 = vld [vmem:[#allocation7 + $0x20] sm:$0xff] (!%p220_p5)  ;;  %v1149_v57 = vld [vmem:[#allocation7 + $0x28] sm:$0xff] (!%p220_p5) }
 0x23a   : > { %v1179_v56 = vadd.f32 (!%p220_p5), %v4660_v4, %v1147_v59  ;;  %v1180_v55 = vadd.f32 (!%p220_p5), %v1148_v58, %v4666_v20  ;;  %v1181_v54 = vadd.f32 (!%p220_p5), %v4664_v12, %v1149_v57  ;;  %v1150_v53 = vld [vmem:[#allocation7 + $0x30] sm:$0xff] (!%p220_p5)  ;;  %v1151_v52 = vld [vmem:[#allocation7 + $0x38] sm:$0xff] (!%p220_p5)  ;;  %v1152_v51 = vld [vmem:[#allocation7 + $0x40] sm:$0xff] (!%p220_p5) }
 0x23b   : > { %1208 = vst [vmem:[#allocation7] sm:$0xff] (!%p220_p5), %v1176_v62  ;;  %1209 = vst [vmem:[#allocation7 + $0x8] sm:$0xff] (!%p220_p5), %v1177_v61  ;;  %v1182_v9 = vadd.f32 (!%p220_p5), %v1150_v53, %v4670_v2  ;;  %v1183_v0 = vadd.f32 (!%p220_p5), %v4668_v24, %v1151_v52  ;;  %v1184_v63 = vadd.f32 (!%p220_p5), %v1152_v51, %v4674_v7  ;;  %v1153_v3 = vld [vmem:[#allocation7 + $0x48] sm:$0xff] (!%p220_p5)  ;;  %v1154_v8 = vld [vmem:[#allocation7 + $0x50] sm:$0xff] (!%p220_p5) }
 0x23c   : > { %1210 = vst [vmem:[#allocation7 + $0x10] sm:$0xff] (!%p220_p5), %v1178_v60  ;;  %v1155_v18 = vld [vmem:[#allocation7 + $0x58] sm:$0xff] (!%p220_p5)  ;;  %1211 = vst [vmem:[#allocation7 + $0x18] sm:$0xff] (!%p220_p5), %v1179_v56  ;;  %v1185_v57 = vadd.f32 (!%p220_p5), %v4672_v32, %v1153_v3  ;;  %v1186_v58 = vadd.f32 (!%p220_p5), %v1154_v8, %v4678_v19  ;;  %v1156_v61 = vld [vmem:[#allocation7 + $0x60] sm:$0xff] (!%p220_p5) }
 0x23d   : > { %1212 = vst [vmem:[#allocation7 + $0x20] sm:$0xff] (!%p220_p5), %v1180_v55  ;;  %1213 = vst [vmem:[#allocation7 + $0x28] sm:$0xff] (!%p220_p5), %v1181_v54  ;;  %v1187_v59 = vadd.f32 (!%p220_p5), %v4676_v13, %v1155_v18  ;;  %v1157_v60 = vld [vmem:[#allocation7 + $0x68] sm:$0xff] (!%p220_p5)  ;;  %v1158_v62 = vld [vmem:[#allocation7 + $0x70] sm:$0xff] (!%p220_p5)  ;;  %v1188_v51 = vadd.f32 (!%p220_p5), %v1156_v61, %v4682_v29 }
 0x23e   : > { %1214 = vst [vmem:[#allocation7 + $0x30] sm:$0xff] (!%p220_p5), %v1182_v9  ;;  %1215 = vst [vmem:[#allocation7 + $0x38] sm:$0xff] (!%p220_p5), %v1183_v0  ;;  %v1189_v52 = vadd.f32 (!%p220_p5), %v4680_v14, %v1157_v60  ;;  %v1190_v53 = vadd.f32 (!%p220_p5), %v1158_v62, %v4686_v26  ;;  %v1159_v55 = vld [vmem:[#allocation7 + $0x78] sm:$0xff] (!%p220_p5)  ;;  %v1160_v54 = vld [vmem:[#allocation7 + $0x80] sm:$0xff] (!%p220_p5) }
 0x23f   : > { %1216 = vst [vmem:[#allocation7 + $0x40] sm:$0xff] %v1184_v63  ;;  %v1161_v56 = vld [vmem:[#allocation7 + $0x88] sm:$0xff]  ;;  %1217 = vst [vmem:[#allocation7 + $0x48] sm:$0xff] %v1185_v57  ;;  %v1191_v4 = vadd.f32 %v4684_v25, %v1159_v55  ;;  %v1192_v12 = vadd.f32 %v1160_v54, %v4690_v34  ;;  %v1162_v24 = vld [vmem:[#allocation7 + $0x90] sm:$0xff] }
 0x240   : > { %1218 = vst [vmem:[#allocation7 + $0x50] sm:$0xff] %v1186_v58  ;;  %1219 = vst [vmem:[#allocation7 + $0x58] sm:$0xff] %v1187_v59  ;;  %v1193_v20 = vadd.f32 %v4688_v1, %v1161_v56  ;;  %v1163_v2 = vld [vmem:[#allocation7 + $0x98] sm:$0xff]  ;;  %v1164_v32 = vld [vmem:[#allocation7 + $0xa0] sm:$0xff]  ;;  %v1194_v7 = vadd.f32 %v1162_v24, %v4694_v6 }
 0x241   : > { %1220 = vst [vmem:[#allocation7 + $0x60] sm:$0xff] %v1188_v51  ;;  %1221 = vst [vmem:[#allocation7 + $0x68] sm:$0xff] %v1189_v52  ;;  %v1195_v13 = vadd.f32 %v4692_v31, %v1163_v2  ;;  %v1196_v19 = vadd.f32 %v1164_v32, %v4698_v27  ;;  %v1165_v14 = vld [vmem:[#allocation7 + $0xa8] sm:$0xff]  ;;  %v1166_v29 = vld [vmem:[#allocation7 + $0xb0] sm:$0xff] }
 0x242   : > { %1222 = vst [vmem:[#allocation7 + $0x70] sm:$0xff] %v1190_v53  ;;  %v1167_v26 = vld [vmem:[#allocation7 + $0xb8] sm:$0xff]  ;;  %1223 = vst [vmem:[#allocation7 + $0x78] sm:$0xff] %v1191_v4  ;;  %v1197_v25 = vadd.f32 %v4696_v30, %v1165_v14  ;;  %v1198_v1 = vadd.f32 %v1166_v29, %v4702_v22  ;;  %v1168_v9 = vld [vmem:[#allocation7 + $0xc0] sm:$0xff] }
 0x243   : > { %1224 = vst [vmem:[#allocation7 + $0x80] sm:$0xff] %v1192_v12  ;;  %1225 = vst [vmem:[#allocation7 + $0x88] sm:$0xff] %v1193_v20  ;;  %v1199_v34 = vadd.f32 %v4700_v28, %v1167_v26  ;;  %v1169_v0 = vld [vmem:[#allocation7 + $0xc8] sm:$0xff]  ;;  %v1170_v63 = vld [vmem:[#allocation7 + $0xd0] sm:$0xff]  ;;  %v1200_v27 = vadd.f32 %v1168_v9, %v4706_v17 }
 0x244   : > { %1226 = vst [vmem:[#allocation7 + $0x90] sm:$0xff] %v1194_v7  ;;  %1227 = vst [vmem:[#allocation7 + $0x98] sm:$0xff] %v1195_v13  ;;  %v1201_v31 = vadd.f32 %v4704_v23, %v1169_v0  ;;  %v1202_v6 = vadd.f32 %v1170_v63, %v4710_v15  ;;  %v1171_v3 = vld [vmem:[#allocation7 + $0xd8] sm:$0xff]  ;;  %v1172_v8 = vld [vmem:[#allocation7 + $0xe0] sm:$0xff] }
 0x245   : > { %1228 = vst [vmem:[#allocation7 + $0xa0] sm:$0xff] %v1196_v19  ;;  %v1173_v18 = vld [vmem:[#allocation7 + $0xe8] sm:$0xff]  ;;  %1229 = vst [vmem:[#allocation7 + $0xa8] sm:$0xff] %v1197_v25  ;;  %v1203_v22 = vadd.f32 %v4708_v21, %v1171_v3  ;;  %v1204_v28 = vadd.f32 %v1172_v8, %v4714_v11  ;;  %v1174_v57 = vld [vmem:[#allocation7 + $0xf0] sm:$0xff] }
 0x246   : > { %1230 = vst [vmem:[#allocation7 + $0xb0] sm:$0xff] %v1198_v1  ;;  %1231 = vst [vmem:[#allocation7 + $0xb8] sm:$0xff] %v1199_v34  ;;  %v1205_v30 = vadd.f32 %v4712_v16, %v1173_v18  ;;  %v1175_v58 = vld [vmem:[#allocation7 + $0xf8] sm:$0xff]  ;;  %v1206_v17 = vadd.f32 %v1174_v57, %v4718_v10 }
 0x247   : > { %1232 = vst [vmem:[#allocation7 + $0xc0] sm:$0xff] %v1200_v27  ;;  %1233 = vst [vmem:[#allocation7 + $0xc8] sm:$0xff] %v1201_v31  ;;  %v1207_v15 = vadd.f32 %v4716_v5, %v1175_v58 }
 0x248   : > { %1234 = vst [vmem:[#allocation7 + $0xd0] sm:$0xff] %v1202_v6  ;;  %1235 = vst [vmem:[#allocation7 + $0xd8] sm:$0xff] %v1203_v22 }
 0x249   : > { %1236 = vst [vmem:[#allocation7 + $0xe0] sm:$0xff] %v1204_v28  ;;  %1237 = vst [vmem:[#allocation7 + $0xe8] sm:$0xff] %v1205_v30 }
 0x24a   : > { %1238 = vst [vmem:[#allocation7 + $0xf0] sm:$0xff] %v1206_v17  ;;  %1239 = vst [vmem:[#allocation7 + $0xf8] sm:$0xff] %v1207_v15 }
 0x24b PF: > { %p3232_p11 = scmp.ne.s32.totalorder %s3993_s18, 1 }
 0x24c   : > { %v1246_v11 = vld [vmem:[%s5392_s3 + $0x10] sm:$0xff] (!%p3232_p11)  ;;  %v1244_v16 = vld [vmem:[%s5392_s3] sm:$0xff] (!%p3232_p11)  ;;  %v1247_v5 = vld [vmem:[%s5392_s3 + $0x18] sm:$0xff] (!%p3232_p11)  ;;  %v4016_v10 = vmov (!%p3232_p11), 0  }
 0x24d   : > { %1243 = sbr.rel (%p3232_p11) target bundleno = 784 (0x310), region = 60  ;;  %3878 = vset.pattern.permute.xlu1 (!%p3232_p11), %v4016_v10  ;;  %3877 = vset.pattern.permute.xlu0 (!%p3232_p11), %v4016_v10  ;;  %v1278_v21 = vmul.f32 (!%p3232_p11), 0.5, %v1246_v11  ;;  %v1276_v23 = vmul.f32 (!%p3232_p11), 0.5, %v1244_v16  ;;  %v1245_v59 = vld [vmem:[%s5392_s3 + $0x8] sm:$0xff] (!%p3232_p11)  ;;  %v1279_v61 = vmul.f32 (!%p3232_p11), 0.5, %v1247_v5  ;;  %v1248_v51 = vld [vmem:[%s5392_s3 + $0x20] sm:$0xff] (!%p3232_p11) }
 0x24e   : > { %v1277_v60 = vmul.f32 (!%p3232_p11), 0.5, %v1245_v59  ;;  %v1249_v62 = vld [vmem:[%s5392_s3 + $0x28] sm:$0xff] (!%p3232_p11)  ;;  %v1280_v53 = vmul.f32 (!%p3232_p11), 0.5, %v1248_v51  ;;  %v1251_v55 = vld [vmem:[%s5392_s3 + $0x38] sm:$0xff] (!%p3232_p11)  ;;  %v1250_v54 = vld [vmem:[%s5392_s3 + $0x30] sm:$0xff] (!%p3232_p11) }
 0x24f   : > { %1352 = vperm.xlu1 (!%p3232_p11), %3878, %v1278_v21   ;;  %1342 = vperm.xlu0 (!%p3232_p11), %3877, %v1276_v23   ;;  %v1281_v52 = vmul.f32 (!%p3232_p11), 0.5, %v1249_v62  ;;  %v1283_v56 = vmul.f32 (!%p3232_p11), 0.5, %v1251_v55  ;;  %v1282_v4 = vmul.f32 (!%p3232_p11), 0.5, %v1250_v54  ;;  %v1253_v12 = vld [vmem:[%s5392_s3 + $0x48] sm:$0xff] (!%p3232_p11)  ;;  %v1252_v20 = vld [vmem:[%s5392_s3 + $0x40] sm:$0xff] (!%p3232_p11)  ;;  %v1255_v32 = vld [vmem:[%s5392_s3 + $0x58] sm:$0xff] (!%p3232_p11) }
 0x250   : > { %v1285_v24 = vmul.f32 (!%p3232_p11), 0.5, %v1253_v12  ;;  %v1284_v2 = vmul.f32 (!%p3232_p11), 0.5, %v1252_v20  ;;  %v1254_v7 = vld [vmem:[%s5392_s3 + $0x50] sm:$0xff] (!%p3232_p11)  ;;  %v1287_v13 = vmul.f32 (!%p3232_p11), 0.5, %v1255_v32  ;;  %v1257_v14 = vld [vmem:[%s5392_s3 + $0x68] sm:$0xff] (!%p3232_p11)  ;;  %v1256_v29 = vld [vmem:[%s5392_s3 + $0x60] sm:$0xff] (!%p3232_p11) }
 0x251   : > { %v1286_v19 = vmul.f32 (!%p3232_p11), 0.5, %v1254_v7  ;;  %v1289_v26 = vmul.f32 (!%p3232_p11), 0.5, %v1257_v14  ;;  %v1288_v25 = vmul.f32 (!%p3232_p11), 0.5, %v1256_v29  ;;  %v1259_v1 = vld [vmem:[%s5392_s3 + $0x78] sm:$0xff] (!%p3232_p11)  ;;  %v1258_v34 = vld [vmem:[%s5392_s3 + $0x70] sm:$0xff] (!%p3232_p11)  ;;  %v1261_v63 = vld [vmem:[%s5392_s3 + $0x88] sm:$0xff] (!%p3232_p11) }
 0x252   : > { %v1291_v9 = vmul.f32 (!%p3232_p11), 0.5, %v1259_v1  ;;  %v1290_v0 = vmul.f32 (!%p3232_p11), 0.5, %v1258_v34  ;;  %v1260_v27 = vld [vmem:[%s5392_s3 + $0x80] sm:$0xff] (!%p3232_p11)  ;;  %v1293_v31 = vmul.f32 (!%p3232_p11), 0.5, %v1261_v63  ;;  %v1263_v3 = vld [vmem:[%s5392_s3 + $0x98] sm:$0xff] (!%p3232_p11)  ;;  %v1262_v8 = vld [vmem:[%s5392_s3 + $0x90] sm:$0xff] (!%p3232_p11) }
 0x253   : > { %1357 = vperm.xlu1 (!%p3232_p11), %3878, %v1279_v61   ;;  %1347 = vperm.xlu0 (!%p3232_p11), %3877, %v1277_v60   ;;  %v1292_v6 = vmul.f32 (!%p3232_p11), 0.5, %v1260_v27  ;;  %v1295_v18 = vmul.f32 (!%p3232_p11), 0.5, %v1263_v3  ;;  %v1294_v22 = vmul.f32 (!%p3232_p11), 0.5, %v1262_v8  ;;  %v1265_v28 = vld [vmem:[%s5392_s3 + $0xa8] sm:$0xff] (!%p3232_p11)  ;;  %v1264_v30 = vld [vmem:[%s5392_s3 + $0xa0] sm:$0xff] (!%p3232_p11)  ;;  %v1267_v17 = vld [vmem:[%s5392_s3 + $0xb8] sm:$0xff] (!%p3232_p11) }
 0x254   : > { %v1297_v57 = vmul.f32 0.5, %v1265_v28  ;;  %v1296_v58 = vmul.f32 0.5, %v1264_v30  ;;  %v1266_v15 = vld [vmem:[%s5392_s3 + $0xb0] sm:$0xff]  ;;  %v1299_v11 = vmul.f32 0.5, %v1267_v17  ;;  %v1269_v5 = vld [vmem:[%s5392_s3 + $0xc8] sm:$0xff]  ;;  %v1268_v10 = vld [vmem:[%s5392_s3 + $0xc0] sm:$0xff] }
 0x255   : > { %v1298_v16 = vmul.f32 0.5, %v1266_v15  ;;  %v1301_v21 = vmul.f32 0.5, %v1269_v5  ;;  %v1300_v23 = vmul.f32 0.5, %v1268_v10  ;;  %v1271_v59 = vld [vmem:[%s5392_s3 + $0xd8] sm:$0xff]  ;;  %v1270_v61 = vld [vmem:[%s5392_s3 + $0xd0] sm:$0xff]  ;;  %v1273_v51 = vld [vmem:[%s5392_s3 + $0xe8] sm:$0xff] }
 0x256   : > { %v1303_v60 = vmul.f32 0.5, %v1271_v59  ;;  %v1302_v62 = vmul.f32 0.5, %v1270_v61  ;;  %v1275_v54 = vld [vmem:[%s5392_s3 + $0xf8] sm:$0xff]  ;;  %v1310_v20 = vld [vmem:[#allocation7 + $0x10] sm:$0xff]  ;;  %v1564_v7 = vld [vmem:[#allocation8] sm:$0xff] }
 0x257   : > { %1367 = vperm.xlu1 %3878, %v1281_v52   ;;  %1362 = vperm.xlu0 %3877, %v1280_v53   ;;  %v1272_v52 = vld [vmem:[%s5392_s3 + $0xe0] sm:$0xff]  ;;  %v1305_v53 = vmul.f32 0.5, %v1273_v51  ;;  %v1311_v29 = vld [vmem:[#allocation7 + $0x18] sm:$0xff] }
 0x258   : > { %v1304_v55 = vmul.f32 0.5, %v1272_v52  ;;  %v1567_v34 = vld [vmem:[#allocation8 + $0x18] sm:$0xff]  ;;  %v1312_v3 = vld [vmem:[#allocation7 + $0x20] sm:$0xff] }
 0x259   : > { %v1568_v30 = vld [vmem:[#allocation8 + $0x20] sm:$0xff]  ;;  %v1315_v15 = vld [vmem:[#allocation7 + $0x38] sm:$0xff] }
 0x25a   : > { %v1571_v10 = vld [vmem:[#allocation8 + $0x38] sm:$0xff]  ;;  %v1316_v51 = vld [vmem:[#allocation7 + $0x40] sm:$0xff] }
 0x25b   : > { %1377 = vperm.xlu1 %3878, %v1283_v56   ;;  %1372 = vperm.xlu0 %3877, %v1282_v4   ;;  %v1274_v56 = vld [vmem:[%s5392_s3 + $0xf0] sm:$0xff]  ;;  %v1307_v4 = vmul.f32 0.5, %v1275_v54 }
 0x25c   : > { %v1306_v12 = vmul.f32 0.5, %v1274_v56  ;;  %v1572_v56 = vld [vmem:[#allocation8 + $0x40] sm:$0xff] }
 0x25f   : > { %1387 = vperm.xlu1 %3878, %v1285_v24   ;;  %1382 = vperm.xlu0 %3877, %v1284_v2   ;;  %v1308_v24 = vld [vmem:[#allocation7] sm:$0xff]  ;;  %v1566_v2 = vld [vmem:[#allocation8 + $0x10] sm:$0xff] }
 0x263   : > { %1397 = vperm.xlu1 %3878, %v1287_v13   ;;  %1392 = vperm.xlu0 %3877, %v1286_v19  }
 0x267   : > { %1407 = vperm.xlu1 %3878, %v1289_v26   ;;  %1402 = vperm.xlu0 %3877, %v1288_v25   ;;  %v1309_v26 = vld [vmem:[#allocation7 + $0x8] sm:$0xff] }
 0x26b   : > { %1417 = vperm.xlu1 %3878, %v1291_v9   ;;  %1412 = vperm.xlu0 %3877, %v1290_v0   ;;  %v1565_v0 = vld [vmem:[#allocation8 + $0x8] sm:$0xff] }
 0x26f   : > { %1427 = vperm.xlu1 %3878, %v1293_v31   ;;  %1422 = vperm.xlu0 %3877, %v1292_v6   ;;  %v1313_v6 = vld [vmem:[#allocation7 + $0x28] sm:$0xff] }
 0x273   : > { %1437 = vperm.xlu1 %3878, %v1295_v18   ;;  %1432 = vperm.xlu0 %3877, %v1294_v22   ;;  %v1569_v22 = vld [vmem:[#allocation8 + $0x28] sm:$0xff] }
 0x277   : > { %1447 = vperm.xlu1 %3878, %v1297_v57   ;;  %1442 = vperm.xlu0 %3877, %v1296_v58  }
 0x27b   : > { %1457 = vperm.xlu1 %3878, %v1299_v11   ;;  %1452 = vperm.xlu0 %3877, %v1298_v16   ;;  %v1314_v11 = vld [vmem:[#allocation7 + $0x30] sm:$0xff] }
 0x27f   : > { %1467 = vperm.xlu1 %3878, %v1301_v21   ;;  %1462 = vperm.xlu0 %3877, %v1300_v23   ;;  %v1570_v23 = vld [vmem:[#allocation8 + $0x30] sm:$0xff] }
 0x283   : > { %1477 = vperm.xlu1 %3878, %v1303_v60   ;;  %1472 = vperm.xlu0 %3877, %v1302_v62   ;;  %v1317_v62 = vld [vmem:[#allocation7 + $0x48] sm:$0xff] }
 0x287   : > { %1487 = vperm.xlu1 %3878, %v1305_v53   ;;  %1482 = vperm.xlu0 %3877, %v1304_v55   ;;  %v1573_v55 = vld [vmem:[#allocation8 + $0x48] sm:$0xff] }
 0x28b   : > { %1497 = vperm.xlu1 %3878, %v1307_v4   ;;  %1492 = vperm.xlu0 %3877, %v1306_v12  }
 0x2ce   : > { %v1353_v32 = vpop.permute.xlu1 %1352  ;;  %v1343_v13 = vpop.permute.xlu0 %1342 }
 0x2cf   : > { %v1502_v19 = vmul.f32 %v1353_v32, %v1310_v20  ;;  %v1500_v14 = vmul.f32 %v1343_v13, %v1308_v24  ;;  %v1319_v24 = vld [vmem:[#allocation7 + $0x58] sm:$0xff] }
 0x2d0   : > { %v1575_v13 = vld [vmem:[#allocation8 + $0x58] sm:$0xff] }
 0x2d1   : > { %1534 = vst [vmem:[#allocation6 + $0x10] sm:$0xff] %v1502_v19  ;;  %v1598_v25 = vadd.f32 %v1566_v2, %v1502_v19  ;;  %1532 = vst [vmem:[#allocation6] sm:$0xff] %v1500_v14  ;;  %v1596_v1 = vadd.f32 %v1564_v7, %v1500_v14  ;;  %v1318_v2 = vld [vmem:[#allocation7 + $0x50] sm:$0xff] }
 0x2d2   : > { %v1358_v9 = vpop.permute.xlu1 %1357  ;;  %v1348_v63 = vpop.permute.xlu0 %1347  ;;  %v1574_v14 = vld [vmem:[#allocation8 + $0x50] sm:$0xff] }
 0x2d3   : > { %1630 = vst [vmem:[#allocation8 + $0x10] sm:$0xff] %v1598_v25  ;;  %1628 = vst [vmem:[#allocation8] sm:$0xff] %v1596_v1  ;;  %v1503_v27 = vmul.f32 %v1358_v9, %v1311_v29  ;;  %v1501_v31 = vmul.f32 %v1348_v63, %v1309_v26  ;;  %v1321_v1 = vld [vmem:[#allocation7 + $0x68] sm:$0xff] }
 0x2d4   : > { %v1577_v63 = vld [vmem:[#allocation8 + $0x68] sm:$0xff] }
 0x2d5   : > { %1535 = vst [vmem:[#allocation6 + $0x18] sm:$0xff] %v1503_v27  ;;  %v1599_v8 = vadd.f32 %v1567_v34, %v1503_v27  ;;  %1533 = vst [vmem:[#allocation6 + $0x8] sm:$0xff] %v1501_v31  ;;  %v1597_v18 = vadd.f32 %v1565_v0, %v1501_v31  ;;  %v1320_v34 = vld [vmem:[#allocation7 + $0x60] sm:$0xff] }
 0x2d6   : > { %v1368_v28 = vpop.permute.xlu1 %1367  ;;  %v1363_v57 = vpop.permute.xlu0 %1362  ;;  %v1576_v31 = vld [vmem:[#allocation8 + $0x60] sm:$0xff] }
 0x2d7   : > { %1631 = vst [vmem:[#allocation8 + $0x18] sm:$0xff] %v1599_v8  ;;  %1629 = vst [vmem:[#allocation8 + $0x8] sm:$0xff] %v1597_v18  ;;  %v1505_v58 = vmul.f32 %v1368_v28, %v1313_v6  ;;  %v1504_v17 = vmul.f32 %v1363_v57, %v1312_v3  ;;  %v1323_v18 = vld [vmem:[#allocation7 + $0x78] sm:$0xff] }
 0x2d8   : > { %v1579_v57 = vld [vmem:[#allocation8 + $0x78] sm:$0xff] }
 0x2d9   : > { %1537 = vst [vmem:[#allocation6 + $0x28] sm:$0xff] %v1505_v58  ;;  %v1601_v16 = vadd.f32 %v1569_v22, %v1505_v58  ;;  %1536 = vst [vmem:[#allocation6 + $0x20] sm:$0xff] %v1504_v17  ;;  %v1600_v5 = vadd.f32 %v1568_v30, %v1504_v17  ;;  %v1322_v22 = vld [vmem:[#allocation7 + $0x70] sm:$0xff] }
 0x2da   : > { %v1378_v21 = vpop.permute.xlu1 %1377  ;;  %v1373_v59 = vpop.permute.xlu0 %1372  ;;  %v1578_v17 = vld [vmem:[#allocation8 + $0x70] sm:$0xff] }
 0x2db   : > { %1633 = vst [vmem:[#allocation8 + $0x28] sm:$0xff] %v1601_v16  ;;  %1632 = vst [vmem:[#allocation8 + $0x20] sm:$0xff] %v1600_v5  ;;  %v1507_v61 = vmul.f32 %v1378_v21, %v1315_v15  ;;  %v1506_v60 = vmul.f32 %v1373_v59, %v1314_v11  ;;  %v1325_v5 = vld [vmem:[#allocation7 + $0x88] sm:$0xff] }
 0x2dc   : > { %v1581_v59 = vld [vmem:[#allocation8 + $0x88] sm:$0xff] }
 0x2dd   : > { %1539 = vst [vmem:[#allocation6 + $0x38] sm:$0xff] %v1507_v61  ;;  %v1603_v52 = vadd.f32 %v1571_v10, %v1507_v61  ;;  %1538 = vst [vmem:[#allocation6 + $0x30] sm:$0xff] %v1506_v60  ;;  %v1602_v53 = vadd.f32 %v1570_v23, %v1506_v60  ;;  %v1324_v10 = vld [vmem:[#allocation7 + $0x80] sm:$0xff] }
 0x2de   : > { %v1388_v54 = vpop.permute.xlu1 %1387  ;;  %v1383_v4 = vpop.permute.xlu0 %1382  ;;  %v1580_v60 = vld [vmem:[#allocation8 + $0x80] sm:$0xff] }
 0x2df   : > { %1635 = vst [vmem:[#allocation8 + $0x38] sm:$0xff] %v1603_v52  ;;  %1634 = vst [vmem:[#allocation8 + $0x30] sm:$0xff] %v1602_v53  ;;  %v1509_v12 = vmul.f32 %v1388_v54, %v1317_v62  ;;  %v1508_v20 = vmul.f32 %v1383_v4, %v1316_v51  ;;  %v1327_v53 = vld [vmem:[#allocation7 + $0x98] sm:$0xff] }
 0x2e0   : > { %v1583_v4 = vld [vmem:[#allocation8 + $0x98] sm:$0xff] }
 0x2e1   : > { %1541 = vst [vmem:[#allocation6 + $0x48] sm:$0xff] %v1509_v12  ;;  %v1605_v32 = vadd.f32 %v1573_v55, %v1509_v12  ;;  %1540 = vst [vmem:[#allocation6 + $0x40] sm:$0xff] %v1508_v20  ;;  %v1604_v7 = vadd.f32 %v1572_v56, %v1508_v20  ;;  %v1326_v55 = vld [vmem:[#allocation7 + $0x90] sm:$0xff] }
 0x2e2   : > { %v1398_v19 = vpop.permute.xlu1 %1397  ;;  %v1393_v29 = vpop.permute.xlu0 %1392  ;;  %v1582_v20 = vld [vmem:[#allocation8 + $0x90] sm:$0xff] }
 0x2e3   : > { %1637 = vst [vmem:[#allocation8 + $0x48] sm:$0xff] %v1605_v32  ;;  %1636 = vst [vmem:[#allocation8 + $0x40] sm:$0xff] %v1604_v7  ;;  %v1511_v26 = vmul.f32 %v1398_v19, %v1319_v24  ;;  %v1510_v25 = vmul.f32 %v1393_v29, %v1318_v2  ;;  %v1329_v7 = vld [vmem:[#allocation7 + $0xa8] sm:$0xff] }
 0x2e4   : > { %v1585_v29 = vld [vmem:[#allocation8 + $0xa8] sm:$0xff] }
 0x2e5   : > { %1543 = vst [vmem:[#allocation6 + $0x58] sm:$0xff] %v1511_v26  ;;  %v1607_v9 = vadd.f32 %v1575_v13, %v1511_v26  ;;  %1542 = vst [vmem:[#allocation6 + $0x50] sm:$0xff] %v1510_v25  ;;  %v1606_v0 = vadd.f32 %v1574_v14, %v1510_v25  ;;  %v1328_v13 = vld [vmem:[#allocation7 + $0xa0] sm:$0xff] }
 0x2e6   : > { %v1408_v27 = vpop.permute.xlu1 %1407  ;;  %v1403_v6 = vpop.permute.xlu0 %1402  ;;  %v1584_v25 = vld [vmem:[#allocation8 + $0xa0] sm:$0xff] }
 0x2e7   : > { %1639 = vst [vmem:[#allocation8 + $0x58] sm:$0xff] %v1607_v9  ;;  %1638 = vst [vmem:[#allocation8 + $0x50] sm:$0xff] %v1606_v0  ;;  %v1513_v3 = vmul.f32 %v1408_v27, %v1321_v1  ;;  %v1512_v8 = vmul.f32 %v1403_v6, %v1320_v34  ;;  %v1331_v0 = vld [vmem:[#allocation7 + $0xb8] sm:$0xff] }
 0x2e8   : > { %v1587_v6 = vld [vmem:[#allocation8 + $0xb8] sm:$0xff] }
 0x2e9   : > { %1545 = vst [vmem:[#allocation6 + $0x68] sm:$0xff] %v1513_v3  ;;  %v1609_v28 = vadd.f32 %v1577_v63, %v1513_v3  ;;  %1544 = vst [vmem:[#allocation6 + $0x60] sm:$0xff] %v1512_v8  ;;  %v1608_v30 = vadd.f32 %v1576_v31, %v1512_v8  ;;  %v1330_v63 = vld [vmem:[#allocation7 + $0xb0] sm:$0xff] }
 0x2ea   : > { %v1418_v58 = vpop.permute.xlu1 %1417  ;;  %v1413_v15 = vpop.permute.xlu0 %1412  ;;  %v1586_v8 = vld [vmem:[#allocation8 + $0xb0] sm:$0xff] }
 0x2eb   : > { %1641 = vst [vmem:[#allocation8 + $0x68] sm:$0xff] %v1609_v28  ;;  %1640 = vst [vmem:[#allocation8 + $0x60] sm:$0xff] %v1608_v30  ;;  %v1515_v11 = vmul.f32 %v1418_v58, %v1323_v18  ;;  %v1514_v16 = vmul.f32 %v1413_v15, %v1322_v22  ;;  %v1333_v30 = vld [vmem:[#allocation7 + $0xc8] sm:$0xff] }
 0x2ec   : > { %v1589_v15 = vld [vmem:[#allocation8 + $0xc8] sm:$0xff] }
 0x2ed   : > { %1547 = vst [vmem:[#allocation6 + $0x78] sm:$0xff] %v1515_v11  ;;  %v1611_v21 = vadd.f32 %v1579_v57, %v1515_v11  ;;  %1546 = vst [vmem:[#allocation6 + $0x70] sm:$0xff] %v1514_v16  ;;  %v1610_v23 = vadd.f32 %v1578_v17, %v1514_v16  ;;  %v1332_v57 = vld [vmem:[#allocation7 + $0xc0] sm:$0xff] }
 0x2ee   : > { %v1428_v61 = vpop.permute.xlu1 %1427  ;;  %v1423_v62 = vpop.permute.xlu0 %1422  ;;  %v1588_v16 = vld [vmem:[#allocation8 + $0xc0] sm:$0xff] }
 0x2ef   : > { %1643 = vst [vmem:[#allocation8 + $0x78] sm:$0xff] %v1611_v21  ;;  %1642 = vst [vmem:[#allocation8 + $0x70] sm:$0xff] %v1610_v23  ;;  %v1517_v51 = vmul.f32 %v1428_v61, %v1325_v5  ;;  %v1516_v52 = vmul.f32 %v1423_v62, %v1324_v10  ;;  %v1335_v23 = vld [vmem:[#allocation7 + $0xd8] sm:$0xff] }
 0x2f0   : > { %v1591_v62 = vld [vmem:[#allocation8 + $0xd8] sm:$0xff] }
 0x2f1   : > { %1549 = vst [vmem:[#allocation6 + $0x88] sm:$0xff] %v1517_v51  ;;  %v1613_v54 = vadd.f32 %v1581_v59, %v1517_v51  ;;  %1548 = vst [vmem:[#allocation6 + $0x80] sm:$0xff] %v1516_v52  ;;  %v1612_v56 = vadd.f32 %v1580_v60, %v1516_v52  ;;  %v1334_v59 = vld [vmem:[#allocation7 + $0xd0] sm:$0xff] }
 0x2f2   : > { %v1438_v12 = vpop.permute.xlu1 %1437  ;;  %v1433_v24 = vpop.permute.xlu0 %1432  ;;  %v1590_v52 = vld [vmem:[#allocation8 + $0xd0] sm:$0xff] }
 0x2f3   : > { %1645 = vst [vmem:[#allocation8 + $0x88] sm:$0xff] %v1613_v54  ;;  %1644 = vst [vmem:[#allocation8 + $0x80] sm:$0xff] %v1612_v56  ;;  %v1519_v2 = vmul.f32 %v1438_v12, %v1327_v53  ;;  %v1518_v32 = vmul.f32 %v1433_v24, %v1326_v55  ;;  %v1337_v56 = vld [vmem:[#allocation7 + $0xe8] sm:$0xff] }
 0x2f4   : > { %v1593_v24 = vld [vmem:[#allocation8 + $0xe8] sm:$0xff] }
 0x2f5   : > { %1551 = vst [vmem:[#allocation6 + $0x98] sm:$0xff] %v1519_v2  ;;  %v1615_v19 = vadd.f32 %v1583_v4, %v1519_v2  ;;  %1550 = vst [vmem:[#allocation6 + $0x90] sm:$0xff] %v1518_v32  ;;  %v1614_v14 = vadd.f32 %v1582_v20, %v1518_v32  ;;  %v1336_v4 = vld [vmem:[#allocation7 + $0xe0] sm:$0xff] }
 0x2f6   : > { %v1448_v26 = vpop.permute.xlu1 %1447  ;;  %v1443_v1 = vpop.permute.xlu0 %1442  ;;  %v1592_v32 = vld [vmem:[#allocation8 + $0xe0] sm:$0xff] }
 0x2f7   : > { %1647 = vst [vmem:[#allocation8 + $0x98] sm:$0xff] %v1615_v19  ;;  %1646 = vst [vmem:[#allocation8 + $0x90] sm:$0xff] %v1614_v14  ;;  %v1521_v34 = vmul.f32 %v1448_v26, %v1329_v7  ;;  %v1520_v9 = vmul.f32 %v1443_v1, %v1328_v13  ;;  %v1339_v14 = vld [vmem:[#allocation7 + $0xf8] sm:$0xff] }
 0x2f8   : > { %v1595_v1 = vld [vmem:[#allocation8 + $0xf8] sm:$0xff] }
 0x2f9   : > { %1553 = vst [vmem:[#allocation6 + $0xa8] sm:$0xff] %v1521_v34  ;;  %v1617_v27 = vadd.f32 %v1585_v29, %v1521_v34  ;;  %1552 = vst [vmem:[#allocation6 + $0xa0] sm:$0xff] %v1520_v9  ;;  %v1616_v31 = vadd.f32 %v1584_v25, %v1520_v9  ;;  %v1338_v29 = vld [vmem:[#allocation7 + $0xf0] sm:$0xff] }
 0x2fa   : > { %v1458_v3 = vpop.permute.xlu1 %1457  ;;  %v1453_v18 = vpop.permute.xlu0 %1452  ;;  %v1594_v9 = vld [vmem:[#allocation8 + $0xf0] sm:$0xff] }
 0x2fb   : > { %1649 = vst [vmem:[#allocation8 + $0xa8] sm:$0xff] %v1617_v27  ;;  %1648 = vst [vmem:[#allocation8 + $0xa0] sm:$0xff] %v1616_v31  ;;  %v1523_v22 = vmul.f32 %v1458_v3, %v1331_v0  ;;  %v1522_v28 = vmul.f32 %v1453_v18, %v1330_v63 }
 0x2fd   : > { %1555 = vst [vmem:[#allocation6 + $0xb8] sm:$0xff] %v1523_v22  ;;  %v1619_v58 = vadd.f32 %v1587_v6, %v1523_v22  ;;  %1554 = vst [vmem:[#allocation6 + $0xb0] sm:$0xff] %v1522_v28  ;;  %v1618_v17 = vadd.f32 %v1586_v8, %v1522_v28 }
 0x2fe   : > { %v1468_v11 = vpop.permute.xlu1 %1467  ;;  %v1463_v5 = vpop.permute.xlu0 %1462 }
 0x2ff   : > { %1651 = vst [vmem:[#allocation8 + $0xb8] sm:$0xff] %v1619_v58  ;;  %1650 = vst [vmem:[#allocation8 + $0xb0] sm:$0xff] %v1618_v17  ;;  %v1525_v10 = vmul.f32 %v1468_v11, %v1333_v30  ;;  %v1524_v21 = vmul.f32 %v1463_v5, %v1332_v57 }
 0x301   : > { %1557 = vst [vmem:[#allocation6 + $0xc8] sm:$0xff] %v1525_v10  ;;  %v1621_v61 = vadd.f32 %v1589_v15, %v1525_v10  ;;  %1556 = vst [vmem:[#allocation6 + $0xc0] sm:$0xff] %v1524_v21  ;;  %v1620_v60 = vadd.f32 %v1588_v16, %v1524_v21 }
 0x302   : > { %v1478_v51 = vpop.permute.xlu1 %1477  ;;  %v1473_v53 = vpop.permute.xlu0 %1472 }
 0x303   : > { %1653 = vst [vmem:[#allocation8 + $0xc8] sm:$0xff] %v1621_v61  ;;  %1652 = vst [vmem:[#allocation8 + $0xc0] sm:$0xff] %v1620_v60  ;;  %v1527_v55 = vmul.f32 %v1478_v51, %v1335_v23  ;;  %v1526_v54 = vmul.f32 %v1473_v53, %v1334_v59 }
 0x305   : > { %1559 = vst [vmem:[#allocation6 + $0xd8] sm:$0xff] %v1527_v55  ;;  %v1623_v12 = vadd.f32 %v1591_v62, %v1527_v55  ;;  %1558 = vst [vmem:[#allocation6 + $0xd0] sm:$0xff] %v1526_v54  ;;  %v1622_v20 = vadd.f32 %v1590_v52, %v1526_v54 }
 0x306   : > { %v1488_v2 = vpop.permute.xlu1 %1487  ;;  %v1483_v7 = vpop.permute.xlu0 %1482 }
 0x307   : > { %1655 = vst [vmem:[#allocation8 + $0xd8] sm:$0xff] %v1623_v12  ;;  %1654 = vst [vmem:[#allocation8 + $0xd0] sm:$0xff] %v1622_v20  ;;  %v1529_v13 = vmul.f32 %v1488_v2, %v1337_v56  ;;  %v1528_v19 = vmul.f32 %v1483_v7, %v1336_v4 }
 0x309   : > { %1561 = vst [vmem:[#allocation6 + $0xe8] sm:$0xff] %v1529_v13  ;;  %v1625_v26 = vadd.f32 %v1593_v24, %v1529_v13  ;;  %1560 = vst [vmem:[#allocation6 + $0xe0] sm:$0xff] %v1528_v19  ;;  %v1624_v25 = vadd.f32 %v1592_v32, %v1528_v19 }
 0x30a   : > { %v1498_v34 = vpop.permute.xlu1 %1497  ;;  %v1493_v0 = vpop.permute.xlu0 %1492 }
 0x30b   : > { %1657 = vst [vmem:[#allocation8 + $0xe8] sm:$0xff] %v1625_v26  ;;  %1656 = vst [vmem:[#allocation8 + $0xe0] sm:$0xff] %v1624_v25  ;;  %v1531_v63 = vmul.f32 %v1498_v34, %v1339_v14  ;;  %v1530_v27 = vmul.f32 %v1493_v0, %v1338_v29 }
 0x30d   : > { %1563 = vst [vmem:[#allocation6 + $0xf8] sm:$0xff] %v1531_v63  ;;  %v1627_v31 = vadd.f32 %v1595_v1, %v1531_v63  ;;  %1562 = vst [vmem:[#allocation6 + $0xf0] sm:$0xff] %v1530_v27  ;;  %v1626_v6 = vadd.f32 %v1594_v9, %v1530_v27 }
 0x30f   : > { %1659 = vst [vmem:[#allocation8 + $0xf8] sm:$0xff] %v1627_v31  ;;  %1658 = vst [vmem:[#allocation8 + $0xf0] sm:$0xff] %v1626_v6 }
 0x310 PF: > { %p3233_p13 = scmp.eq.s32.totalorder %s5520_s14, 0 }
 0x311   : > { %2020 = vxpose.xlu0.b32.start [1/16] (!%p3233_p13), %v4346_v33, 128  ;;  %v5474_v3 = vld [vmem:[#allocation15_spill] sm:$0xff] (!%p3233_p13)  ;;  %v1681_v18 = vld [vmem:[#allocation3 + $0x88] sm:$0xff] (!%p3233_p13)  ;;  %v1682_v57 = vld [vmem:[#allocation3 + $0x90] sm:$0xff] (!%p3233_p13)  ;;  %s4889_s14 = scalar_lea.vmem (!%p3233_p13), [#allocation6], %s4167_s10  ;;  %s4985_s11 = scalar_lea.vmem (!%p3233_p13), [#allocation4], %s4167_s10 }
 0x312   : > { %1663 = sbr.rel (%p3233_p13) target bundleno = 1436 (0x59c), region = 64  ;;  %2052 = vxpose.xlu1.b32.start [1/16] (!%p3233_p13), %v5474_v3, 128  ;;  %v1680_v8 = vld [vmem:[#allocation3 + $0x80] sm:$0xff] (!%p3233_p13)  ;;  %v1665_v30 = vld [vmem:[#allocation3 + $0x8] sm:$0xff] (!%p3233_p13)  ;;  %v1683_v58 = vld [vmem:[#allocation3 + $0x98] sm:$0xff] (!%p3233_p13)  ;;  %1760 = vmatprep.mubr.f32.mxu0 (!%p3233_p13), %v5474_v3  ;;  %s4989_s15 = scalar_lea.vmem (!%p3233_p13), [#allocation2], %s4167_s10 }
 0x313   : > { %v1664_v22 = vld [vmem:[#allocation3] sm:$0xff] (!%p3233_p13)  ;;  %v3724_v28 = vpack.c.bf16 (!%p3233_p13), %v1681_v18, %v1680_v8  ;;  %v3728_v15 = vpack.c.bf16 (!%p3233_p13), %v1683_v58, %v1682_v57  ;;  %v1666_v11 = vld [vmem:[#allocation3 + $0x10] sm:$0xff] (!%p3233_p13)  ;;  %v1667_v16 = vld [vmem:[#allocation3 + $0x18] sm:$0xff] (!%p3233_p13)  ;;  %p3234_p1 = scmp.ne.s32.totalorder (!%p3233_p13), %s3993_s18, 0 }
 0x314   : > { %v3726_v17 = vpack.c.bf16 (!%p3233_p13), %v1665_v30, %v1664_v22  ;;  %v2004_v5 = vld [vmem:[%s4889_s14] sm:$0xff] (!%p3233_p13)  ;;  %v2005_v10 = vld [vmem:[%s4889_s14 + $0x8] sm:$0xff] (!%p3233_p13)  ;;  %v2006_v61 = vld [vmem:[%s4889_s14 + $0x10] sm:$0xff] (!%p3233_p13)  ;;  %v3730_v60 = vpack.c.bf16 (!%p3233_p13), %v1667_v16, %v1666_v11 }
 0x315   : > { %3725 = vmatprep.subr.bf16.mxu0 (!%p3233_p13), %v3724_v28  ;;  %v1684_v21 = vld [vmem:[#allocation3 + $0xa0] sm:$0xff] (!%p3233_p13)  ;;  %v1685_v23 = vld [vmem:[#allocation3 + $0xa8] sm:$0xff] (!%p3233_p13)  ;;  %2021 = vxpose.xlu0.b32.cont [2/16] (!%p3233_p13), %v4352_v35, 128  ;;  %v3756_v59 = vpack.c.bf16 (!%p3233_p13), %v2005_v10, %v2004_v5  ;;  %v2007_v62 = vld [vmem:[%s4889_s14 + $0x18] sm:$0xff] (!%p3233_p13) }
 0x316   : > { %2053 = vxpose.xlu1.b32.cont [2/16] (!%p3233_p13), %v4355_v36, 128  ;;  %3727 = vmatpush3.bf16.msra.mxu0 (!%p3233_p13), %v3726_v17  ;;  %v3732_v51 = vpack.c.bf16 (!%p3233_p13), %v1685_v23, %v1684_v21  ;;  %v1668_v52 = vld [vmem:[#allocation3 + $0x20] sm:$0xff] (!%p3233_p13)  ;;  %v1669_v53 = vld [vmem:[#allocation3 + $0x28] sm:$0xff] (!%p3233_p13)  ;;  %v3760_v55 = vpack.c.bf16 (!%p3233_p13), %v2007_v62, %v2006_v61  ;;  %v1686_v56 = vld [vmem:[#allocation3 + $0xb0] sm:$0xff] (!%p3233_p13) }
 0x317   : > { %3729 = vmatprep.subr.bf16.mxu0 (!%p3233_p13), %v3728_v15  ;;  %3757 = vmatprep.subr.bf16.mxu1 (!%p3233_p13), %v3756_v59  ;;  %v2008_v54 = vld [vmem:[%s4889_s14 + $0x20] sm:$0xff] (!%p3233_p13)  ;;  %v1687_v4 = vld [vmem:[#allocation3 + $0xb8] sm:$0xff] (!%p3233_p13)  ;;  %v2009_v12 = vld [vmem:[%s4889_s14 + $0x28] sm:$0xff] (!%p3233_p13)  ;;  %v3734_v20 = vpack.c.bf16 (!%p3233_p13), %v1669_v53, %v1668_v52 }
 0x318   : > { %3759 = vmatpush3.bf16.msra.mxu1 (!%p3233_p13), %v3756_v59  ;;  %v1670_v24 = vld [vmem:[#allocation3 + $0x30] sm:$0xff] (!%p3233_p13)  ;;  %v3764_v2 = vpack.c.bf16 (!%p3233_p13), %v2009_v12, %v2008_v54  ;;  %v3736_v32 = vpack.c.bf16 (!%p3233_p13), %v1687_v4, %v1686_v56  ;;  %v1671_v7 = vld [vmem:[#allocation3 + $0x38] sm:$0xff] (!%p3233_p13)  ;;  %v1688_v14 = vld [vmem:[#allocation3 + $0xc0] sm:$0xff] (!%p3233_p13) }
 0x319   : > { %2022 = vxpose.xlu0.b32.cont [3/16] %v4358_v37, 128  ;;  %3761 = vmatprep.subr.bf16.mxu1 %v3760_v55  ;;  %v2010_v13 = vld [vmem:[%s4889_s14 + $0x30] sm:$0xff]  ;;  %v2011_v19 = vld [vmem:[%s4889_s14 + $0x38] sm:$0xff]  ;;  %v1689_v29 = vld [vmem:[#allocation3 + $0xc8] sm:$0xff]  ;;  %v3738_v26 = vpack.c.bf16 %v1671_v7, %v1670_v24 }
 0x31a   : > { %2054 = vxpose.xlu1.b32.cont [3/16] %v4361_v38, 128  ;;  %3731 = vmatpush3.bf16.msra.mxu0 %v3730_v60  ;;  %v1672_v25 = vld [vmem:[#allocation3 + $0x40] sm:$0xff]  ;;  %v3768_v1 = vpack.c.bf16 %v2011_v19, %v2010_v13  ;;  %v3740_v34 = vpack.c.bf16 %v1689_v29, %v1688_v14  ;;  %v1673_v9 = vld [vmem:[#allocation3 + $0x48] sm:$0xff]  ;;  %v1690_v27 = vld [vmem:[#allocation3 + $0xd0] sm:$0xff] }
 0x31b   : > { %3733 = vmatprep.subr.bf16.mxu0 %v3732_v51  ;;  %v2012_v0 = vld [vmem:[%s4889_s14 + $0x40] sm:$0xff]  ;;  %v2013_v63 = vld [vmem:[%s4889_s14 + $0x48] sm:$0xff]  ;;  %v1691_v31 = vld [vmem:[#allocation3 + $0xd8] sm:$0xff]  ;;  %v3742_v6 = vpack.c.bf16 %v1673_v9, %v1672_v25 }
 0x31c   : > { %3763 = vmatpush3.bf16.msra.mxu1 %v3760_v55  ;;  %v1674_v3 = vld [vmem:[#allocation3 + $0x50] sm:$0xff]  ;;  %v3772_v8 = vpack.c.bf16 %v2013_v63, %v2012_v0  ;;  %v3744_v18 = vpack.c.bf16 %v1691_v31, %v1690_v27  ;;  %v1675_v22 = vld [vmem:[#allocation3 + $0x58] sm:$0xff]  ;;  %v1692_v57 = vld [vmem:[#allocation3 + $0xe0] sm:$0xff] }
 0x31d   : > { %2023 = vxpose.xlu0.b32.cont [4/16] %v4366_v39, 128  ;;  %3765 = vmatprep.subr.bf16.mxu1 %v3764_v2  ;;  %v2014_v28 = vld [vmem:[%s4889_s14 + $0x50] sm:$0xff]  ;;  %v2015_v30 = vld [vmem:[%s4889_s14 + $0x58] sm:$0xff]  ;;  %v1693_v58 = vld [vmem:[#allocation3 + $0xe8] sm:$0xff]  ;;  %v3746_v17 = vpack.c.bf16 %v1675_v22, %v1674_v3 }
 0x31e   : > { %2055 = vxpose.xlu1.b32.cont [4/16] %v4369_v40, 128  ;;  %3735 = vmatpush3.bf16.msra.mxu0 %v3734_v20  ;;  %v1676_v15 = vld [vmem:[#allocation3 + $0x60] sm:$0xff]  ;;  %v3776_v11 = vpack.c.bf16 %v2015_v30, %v2014_v28  ;;  %v3748_v16 = vpack.c.bf16 %v1693_v58, %v1692_v57  ;;  %v1677_v5 = vld [vmem:[#allocation3 + $0x68] sm:$0xff]  ;;  %v1694_v23 = vld [vmem:[#allocation3 + $0xf0] sm:$0xff] }
 0x31f   : > { %3737 = vmatprep.subr.bf16.mxu0 %v3736_v32  ;;  %v2016_v10 = vld [vmem:[%s4889_s14 + $0x60] sm:$0xff]  ;;  %v2017_v21 = vld [vmem:[%s4889_s14 + $0x68] sm:$0xff]  ;;  %v1695_v59 = vld [vmem:[#allocation3 + $0xf8] sm:$0xff]  ;;  %v3750_v61 = vpack.c.bf16 %v1677_v5, %v1676_v15 }
 0x320   : > { %3767 = vmatpush3.bf16.msra.mxu1 %v3764_v2  ;;  %v1678_v60 = vld [vmem:[#allocation3 + $0x70] sm:$0xff]  ;;  %v3780_v62 = vpack.c.bf16 %v2017_v21, %v2016_v10  ;;  %v3752_v51 = vpack.c.bf16 %v1695_v59, %v1694_v23  ;;  %v1679_v52 = vld [vmem:[#allocation3 + $0x78] sm:$0xff]  ;;  %v5475_v4 = vld [vmem:[#allocation16_spill] sm:$0xff] }
 0x321   : > { %2024 = vxpose.xlu0.b32.cont [5/16] %v4372_v41, 128  ;;  %3769 = vmatprep.subr.bf16.mxu1 %v3768_v1  ;;  %v2018_v53 = vld [vmem:[%s4889_s14 + $0x70] sm:$0xff]  ;;  %v2019_v55 = vld [vmem:[%s4889_s14 + $0x78] sm:$0xff]  ;;  %v3754_v54 = vpack.c.bf16 %v1679_v52, %v1678_v60  ;;  %v5478_v24 = vld [vmem:[#allocation19_spill] sm:$0xff] }
 0x322   : > { %2056 = vxpose.xlu1.b32.cont [5/16] %v4376_v42, 128  ;;  %3739 = vmatpush3.bf16.msra.mxu0 %v3738_v26  ;;  %v3784_v56 = vpack.c.bf16 %v2019_v55, %v2018_v53  ;;  %v5476_v12 = vld [vmem:[#allocation17_spill] sm:$0xff]  ;;  %v5477_v20 = vld [vmem:[#allocation18_spill] sm:$0xff]  ;;  %v5479_v2 = vld [vmem:[#allocation20_spill] sm:$0xff] }
 0x323   : > { %3741 = vmatprep.subr.bf16.mxu0 %v3740_v34  ;;  %v5480_v32 = vld [vmem:[#allocation21_spill] sm:$0xff]  ;;  %v5481_v7 = vld [vmem:[#allocation22_spill] sm:$0xff]  ;;  %v5500_v14 = vld [vmem:[#allocation40_spill] sm:$0xff] }
 0x324   : > { %3771 = vmatpush3.bf16.msra.mxu1 %v3768_v1  ;;  %v5498_v13 = vld [vmem:[#allocation38_spill] sm:$0xff]  ;;  %v5499_v19 = vld [vmem:[#allocation41_spill] sm:$0xff]  ;;  %v5501_v29 = vld [vmem:[#allocation43_spill] sm:$0xff] }
 0x325   : > { %2025 = vxpose.xlu0.b32.cont [6/16] %v4379_v43, 128  ;;  %3773 = vmatprep.subr.bf16.mxu1 %v3772_v8  ;;  %v5502_v26 = vld [vmem:[#allocation42_spill] sm:$0xff]  ;;  %v5503_v25 = vld [vmem:[#allocation45_spill] sm:$0xff]  ;;  %v5504_v1 = vld [vmem:[#allocation44_spill] sm:$0xff] }
 0x326   : > { %2057 = vxpose.xlu1.b32.cont [6/16] %v4382_v44, 128  ;;  %3743 = vmatpush3.bf16.msra.mxu0 %v3742_v6 }
 0x327   : > { %3745 = vmatprep.subr.bf16.mxu0 %v3744_v18 }
 0x328   : > { %3775 = vmatpush3.bf16.msra.mxu1 %v3772_v8 }
 0x329   : > { %2026 = vxpose.xlu0.b32.cont [7/16] %v4385_v45, 128  ;;  %3777 = vmatprep.subr.bf16.mxu1 %v3776_v11 }
 0x32a   : > { %2058 = vxpose.xlu1.b32.cont [7/16] %v4388_v46, 128  ;;  %3747 = vmatpush3.bf16.msra.mxu0 %v3746_v17 }
 0x32b   : > { %3749 = vmatprep.subr.bf16.mxu0 %v3748_v16 }
 0x32c   : > { %3779 = vmatpush3.bf16.msra.mxu1 %v3776_v11 }
 0x32d   : > { %2027 = vxpose.xlu0.b32.cont [8/16] %v4391_v47, 128  ;;  %3781 = vmatprep.subr.bf16.mxu1 %v3780_v62 }
 0x32e   : > { %2059 = vxpose.xlu1.b32.cont [8/16] %v4394_v48, 128  ;;  %3751 = vmatpush3.bf16.msra.mxu0 %v3750_v61 }
 0x32f   : > { %3753 = vmatprep.subr.bf16.mxu0 %v3752_v51 }
 0x330   : > { %3783 = vmatpush3.bf16.msra.mxu1 %v3780_v62 }
 0x331   : > { %2028 = vxpose.xlu0.b32.cont [9/16] %v4397_v49, 128  ;;  %3785 = vmatprep.subr.bf16.mxu1 %v3784_v56 }
 0x332   : > { %2060 = vxpose.xlu1.b32.cont [9/16] %v4400_v50, 128  ;;  %3755 = vmatpush3.bf16.msra.mxu0 %v3754_v54 }
 0x334   : > { %3787 = vmatpush3.bf16.msra.mxu1 %v3784_v56 }
 0x335   : > { %2029 = vxpose.xlu0.b32.cont [10/16] %v5475_v4, 128  ;;  %1761 = vmatmul.mubr.f32.vlgmr.msra.gmra.mrb[0].mxu0 %v4346_v33  ;;  %v5482_v33 = vld [vmem:[#allocation23_spill] sm:$0xff] }
 0x336   : > { %2061 = vxpose.xlu1.b32.cont [10/16] %v5476_v12, 128  ;;  %1765 = vmatprep.mubr.f32.mxu0 %v4355_v36  ;;  %v5483_v36 = vld [vmem:[#allocation24_spill] sm:$0xff] }
 0x339   : > { %2030 = vxpose.xlu0.b32.cont [11/16] %v5477_v20, 128  ;;  %1766 = vmatmul.mubr.f32.gmra.mrb[2].mxu0 %v4352_v35  ;;  %v5484_v35 = vld [vmem:[#allocation25_spill] sm:$0xff] }
 0x33a   : > { %2062 = vxpose.xlu1.b32.cont [11/16] %v5478_v24, 128  ;;  %1770 = vmatprep.mubr.f32.mxu0 %v4361_v38  ;;  %v5485_v38 = vld [vmem:[#allocation26_spill] sm:$0xff] }
 0x33d   : > { %2031 = vxpose.xlu0.b32.cont [12/16] %v5479_v2, 128  ;;  %1771 = vmatmul.mubr.f32.gmra.mrb[4].mxu0 %v4358_v37  ;;  %v5486_v37 = vld [vmem:[#allocation27_spill] sm:$0xff] }
 0x33e   : > { %2063 = vxpose.xlu1.b32.cont [12/16] %v5480_v32, 128  ;;  %1775 = vmatprep.mubr.f32.mxu0 %v4369_v40  ;;  %v5487_v40 = vld [vmem:[#allocation28_spill] sm:$0xff] }
 0x341   : > { %2032 = vxpose.xlu0.b32.cont [13/16] %v5481_v7, 128  ;;  %1776 = vmatmul.mubr.f32.gmra.mrb[6].mxu0 %v4366_v39  ;;  %v5488_v39 = vld [vmem:[#allocation29_spill] sm:$0xff] }
 0x342   : > { %2064 = vxpose.xlu1.b32.cont [13/16] %v5482_v33, 128  ;;  %1780 = vmatprep.mubr.f32.mxu0 %v4376_v42  ;;  %v5489_v42 = vld [vmem:[#allocation31_spill] sm:$0xff] }
 0x345   : > { %2033 = vxpose.xlu0.b32.cont [14/16] %v5483_v36, 128  ;;  %1781 = vmatmul.mubr.f32.gmra.mrb[8].mxu0 %v4372_v41  ;;  %v4017_v41 = vmov 0  }
 0x346   : > { %2065 = vxpose.xlu1.b32.cont [14/16] %v5484_v35, 128  ;;  %1785 = vmatprep.mubr.f32.mxu0 %v4382_v44  ;;  %v5491_v44 = vld [vmem:[#allocation30_spill] sm:$0xff] }
 0x349   : > { %2034 = vxpose.xlu0.b32.cont [15/16] %v5485_v38, 128  ;;  %1786 = vmatmul.mubr.f32.gmra.mrb[10].mxu0 %v4379_v43  ;;  %v5490_v43 = vld [vmem:[#allocation32_spill] sm:$0xff] }
 0x34a   : > { %2066 = vxpose.xlu1.b32.cont [15/16] %v5486_v37, 128  ;;  %1790 = vmatprep.mubr.f32.mxu0 %v4388_v46  ;;  %v5493_v46 = vld [vmem:[#allocation35_spill] sm:$0xff] }
 0x34d   : > { %2035 = vxpose.xlu0.b32.end [16/16] %v5487_v40, 128  ;;  %1791 = vmatmul.mubr.f32.gmra.mrb[12].mxu0 %v4385_v45  ;;  %v5492_v45 = vld [vmem:[#allocation33_spill] sm:$0xff] }
 0x34e   : > { %2067 = vxpose.xlu1.b32.end [16/16] %v5488_v39, 128  ;;  %1795 = vmatprep.mubr.f32.mxu0 %v4394_v48  ;;  %v5495_v48 = vld [vmem:[#allocation37_spill] sm:$0xff] }
 0x351   : > { %1796 = vmatmul.mubr.f32.gmra.mrb[14].mxu0 %v4391_v47  ;;  %v5494_v47 = vld [vmem:[#allocation34_spill] sm:$0xff] }
 0x352   : > { %1800 = vmatprep.mubr.f32.mxu0 %v4400_v50  ;;  %v5497_v50 = vld [vmem:[#allocation39_spill] sm:$0xff] }
 0x355   : > { %1801 = vmatmul.mubr.f32.gmra.mrb[16].mxu0 %v4397_v49  ;;  %v5496_v49 = vld [vmem:[#allocation36_spill] sm:$0xff] }
 0x356   : > { %1805 = vmatprep.mubr.f32.mxu0 %v5476_v12 }
 0x359   : > { %1806 = vmatmul.mubr.f32.gmra.mrb[18].mxu0 %v5475_v4 }
 0x35a   : > { %1810 = vmatprep.mubr.f32.mxu0 %v5478_v24 }
 0x35d   : > { %1811 = vmatmul.mubr.f32.gmra.mrb[20].mxu0 %v5477_v20 }
 0x35e   : > { %1815 = vmatprep.mubr.f32.mxu0 %v5480_v32 }
 0x361   : > { %1816 = vmatmul.mubr.f32.gmra.mrb[22].mxu0 %v5479_v2  ;;  %v1955_v2 = vld [vmem:[%s4985_s11] sm:$0xff] }
 0x362   : > { %1820 = vmatprep.mubr.f32.mxu0 %v5482_v33 }
 0x365   : > { %1821 = vmatmul.mubr.f32.gmra.mrb[24].mxu0 %v5481_v7 }
 0x366   : > { %1825 = vmatprep.mubr.f32.mxu0 %v5484_v35 }
 0x369   : > { %1826 = vmatmul.mubr.f32.gmra.mrb[26].mxu0 %v5483_v36 }
 0x36a   : > { %1830 = vmatprep.mubr.f32.mxu0 %v5486_v37  ;;  %v1956_v37 = vld [vmem:[%s4985_s11 + $0x8] sm:$0xff] }
 0x36c   : > { %3880 = vset.pattern.permute.xlu1 %v4017_v41 }
 0x36d   : > { %1831 = vmatmul.mubr.f32.gmra.mrb[28].mxu0 %v5485_v38  ;;  %1848 = vperm.xlu1 %3880, %v5489_v42  }
 0x36e   : > { %1835 = vmatprep.mubr.f32.mxu0 %v5488_v39 }
 0x371   : > { %1836 = vmatmul.mubr.f32.gmra.mrb[30].mxu0 %v5487_v40  ;;  %1853 = vperm.xlu1 %3880, %v5490_v43  }
 0x375   : > { %1858 = vperm.xlu1 %3880, %v5492_v45  }
 0x376   : > { %3879 = vset.pattern.permute.xlu0 %v4017_v41 }
 0x377   : > { %1843 = vperm.xlu0 %3879, %v5491_v44   ;;  %v1957_v44 = vld [vmem:[%s4985_s11 + $0x10] sm:$0xff] }
 0x379   : > { %1863 = vperm.xlu1 %3880, %v5494_v47  }
 0x37b   : > { %1868 = vperm.xlu0 %3879, %v5493_v46  }
 0x37d   : > { %1873 = vperm.xlu1 %3880, %v5496_v49  }
 0x37f   : > { %1878 = vperm.xlu0 %3879, %v5495_v48  }
 0x381   : > { %1883 = vperm.xlu1 %3880, %v5498_v13   ;;  %v1958_v13 = vld [vmem:[%s4985_s11 + $0x18] sm:$0xff] }
 0x383   : > { %1888 = vperm.xlu0 %3879, %v5497_v50  }
 0x385   : > { %1893 = vperm.xlu1 %3880, %v5500_v14  }
 0x387   : > { %1898 = vperm.xlu0 %3879, %v5499_v19  }
 0x389   : > { %1903 = vperm.xlu1 %3880, %v5502_v26  }
 0x38b   : > { %1908 = vperm.xlu0 %3879, %v5501_v29  }
 0x38d   : > { %1913 = vperm.xlu1 %3880, %v5504_v1   ;;  %v1959_v1 = vld [vmem:[%s4985_s11 + $0x20] sm:$0xff] }
 0x38f   : > { %1918 = vperm.xlu0 %3879, %v5503_v25  }
 0x391   : > { %v2036_v34 = vpop.trf.xlu0 }
 0x392   : > { %v2068_v9 = vpop.trf.xlu1  ;;  %3612 = vmatprep.mubr.f32.mxu1 %v2036_v34 }
 0x395   : > { %v2037_v0 = vpop.trf.xlu0 }
 0x396   : > { %3613 = vmatmul.mubr.f32.vlgmr.msra.gmra.mrb[0].mxu1 %v2037_v0  ;;  %v2069_v63 = vpop.trf.xlu1 }
 0x399   : > { %v2038_v27 = vpop.trf.xlu0 }
 0x39a   : > { %3615 = vmatprep.mubr.f32.mxu1 %v2038_v27  ;;  %v2070_v6 = vpop.trf.xlu1 }
 0x39d   : > { %v2039_v31 = vpop.trf.xlu0 }
 0x39e   : > { %3616 = vmatmul.mubr.f32.gmra.mrb[2].mxu1 %v2039_v31  ;;  %v2071_v8 = vpop.trf.xlu1 }
 0x3a1   : > { %v2040_v3 = vpop.trf.xlu0 }
 0x3a2   : > { %3618 = vmatprep.mubr.f32.mxu1 %v2040_v3  ;;  %v2072_v28 = vpop.trf.xlu1 }
 0x3a5   : > { %v2041_v18 = vpop.trf.xlu0 }
 0x3a6   : > { %3619 = vmatmul.mubr.f32.gmra.mrb[4].mxu1 %v2041_v18  ;;  %v2073_v57 = vpop.trf.xlu1 }
 0x3a9   : > { %v2042_v22 = vpop.trf.xlu0 }
 0x3aa   : > { %3621 = vmatprep.mubr.f32.mxu1 %v2042_v22  ;;  %v2074_v15 = vpop.trf.xlu1 }
 0x3ad   : > { %v2043_v30 = vpop.trf.xlu0 }
 0x3ae   : > { %3622 = vmatmul.mubr.f32.gmra.mrb[6].mxu1 %v2043_v30  ;;  %v2075_v16 = vpop.trf.xlu1 }
 0x3b1   : > { %v2044_v58 = vpop.trf.xlu0 }
 0x3b2   : > { %3624 = vmatprep.mubr.f32.mxu1 %v2044_v58  ;;  %v2076_v21 = vpop.trf.xlu1 }
 0x3b5   : > { %v2045_v17 = vpop.trf.xlu0 }
 0x3b6   : > { %3625 = vmatmul.mubr.f32.gmra.mrb[8].mxu1 %v2045_v17  ;;  %v2077_v59 = vpop.trf.xlu1 }
 0x3b9   : > { %v2046_v11 = vpop.trf.xlu0 }
 0x3ba   : > { %3627 = vmatprep.mubr.f32.mxu1 %v2046_v11  ;;  %v2078_v62 = vpop.trf.xlu1 }
 0x3bd   : > { %v2047_v5 = vpop.trf.xlu0 }
 0x3be   : > { %3628 = vmatmul.mubr.f32.gmra.mrb[10].mxu1 %v2047_v5  ;;  %v2079_v51 = vpop.trf.xlu1 }
 0x3c1   : > { %v2048_v10 = vpop.trf.xlu0 }
 0x3c2   : > { %3630 = vmatprep.mubr.f32.mxu1 %v2048_v10  ;;  %v2080_v52 = vpop.trf.xlu1  ;;  %v1962_v10 = vld [vmem:[%s4985_s11 + $0x38] sm:$0xff] }
 0x3c5   : > { %v2049_v23 = vpop.trf.xlu0 }
 0x3c6   : > { %3631 = vmatmul.mubr.f32.gmra.mrb[12].mxu1 %v2049_v23  ;;  %v2081_v53 = vpop.trf.xlu1 }
 0x3c9   : > { %v2050_v61 = vpop.trf.xlu0 }
 0x3ca   : > { %3633 = vmatprep.mubr.f32.mxu1 %v2050_v61  ;;  %v2082_v55 = vpop.trf.xlu1 }
 0x3cd   : > { %v2051_v60 = vpop.trf.xlu0 }
 0x3ce   : > { %3634 = vmatmul.mubr.f32.gmra.mrb[14].mxu1 %v2051_v60  ;;  %v2083_v54 = vpop.trf.xlu1 }
 0x3cf   : > { %3636 = vmatprep.mubr.f32.mxu1 %v2068_v9 }
 0x3d2   : > { %3637 = vmatmul.mubr.f32.gmra.mrb[16].mxu1 %v2069_v63 }
 0x3d3   : > { %3639 = vmatprep.mubr.f32.mxu1 %v2070_v6  ;;  %v1960_v6 = vld [vmem:[%s4985_s11 + $0x28] sm:$0xff] }
 0x3d6   : > { %3640 = vmatmul.mubr.f32.gmra.mrb[18].mxu1 %v2071_v8 }
 0x3d7   : > { %3642 = vmatprep.mubr.f32.mxu1 %v2072_v28 }
 0x3da   : > { %3643 = vmatmul.mubr.f32.gmra.mrb[20].mxu1 %v2073_v57  ;;  %v1961_v57 = vld [vmem:[%s4985_s11 + $0x30] sm:$0xff] }
 0x3db   : > { %3645 = vmatprep.mubr.f32.mxu1 %v2074_v15 }
 0x3de   : > { %3646 = vmatmul.mubr.f32.gmra.mrb[22].mxu1 %v2075_v16 }
 0x3df   : > { %3648 = vmatprep.mubr.f32.mxu1 %v2076_v21 }
 0x3e2   : > { %3649 = vmatmul.mubr.f32.gmra.mrb[24].mxu1 %v2077_v59 }
 0x3e3   : > { %3651 = vmatprep.mubr.f32.mxu1 %v2078_v62 }
 0x3e6   : > { %3652 = vmatmul.mubr.f32.gmra.mrb[26].mxu1 %v2079_v51  ;;  %v1963_v51 = vld [vmem:[%s4985_s11 + $0x40] sm:$0xff] }
 0x3e7   : > { %3654 = vmatprep.mubr.f32.mxu1 %v2080_v52 }
 0x3ea   : > { %3655 = vmatmul.mubr.f32.gmra.mrb[28].mxu1 %v2081_v53 }
 0x3eb   : > { %3657 = vmatprep.mubr.f32.mxu1 %v2082_v55 }
 0x3ec   : > { %v1849_v56 = vpop.permute.xlu1 %1848 }
 0x3ee   : > { %3658 = vmatmul.mubr.f32.gmra.mrb[30].mxu1 %v2083_v54 }
 0x3f0   : > { %v1854_v38 = vpop.permute.xlu1 %1853 }
 0x3f4   : > { %v1859_v47 = vpop.permute.xlu1 %1858 }
 0x3f6   : > { %v1844_v20 = vpop.permute.xlu0 %1843 }
 0x3f8   : > { %v1864_v34 = vpop.permute.xlu1 %1863 }
 0x3fa   : > { %v1869_v3 = vpop.permute.xlu0 %1868 }
 0x3fc   : > { %v1874_v58 = vpop.permute.xlu1 %1873 }
 0x3fe   : > { %v1879_v21 = vpop.permute.xlu0 %1878 }
 0x400   : > { %v1884_v52 = vpop.permute.xlu1 %1883 }
 0x408   : > { %v3404_v4 = vpop.f32.mrb[0].mxu0 }
 0x409   : > { %v3405_v12 = vpop.f32.mrb[1].mxu0 }
 0x40a   : > { %v3406_v24 = vadd.f32 %v3405_v12, %v3404_v4  ;;  %v1964_v12 = vld [vmem:[%s4985_s11 + $0x48] sm:$0xff] }
 0x40c   : > { %v1921_v32 = vmul.f32 %v3406_v24, %v1844_v20  ;;  %v3407_v7 = vpop.f32.mrb[2].mxu0  ;;  %v1889_v20 = vpop.permute.xlu0 %1888 }
 0x40d   : > { %v3408_v33 = vpop.f32.mrb[3].mxu0 }
 0x40e   : > { %1938 = vst [vmem:[%s4989_s15] sm:$0xff] %v1921_v32  ;;  %v1971_v36 = vadd.f32 %v1955_v2, %v1921_v32  ;;  %v3409_v35 = vadd.f32 %v3408_v33, %v3407_v7 }
 0x410   : > { %1987 = vst [vmem:[%s4985_s11] sm:$0xff] %v1971_v36  ;;  %v1922_v40 = vmul.f32 %v3409_v35, %v1849_v56  ;;  %v3410_v39 = vpop.f32.mrb[4].mxu0  ;;  %v1965_v36 = vld [vmem:[%s4985_s11 + $0x50] sm:$0xff]  ;;  %v1894_v35 = vpop.permute.xlu1 %1893 }
 0x411   : > { %v3411_v41 = vpop.f32.mrb[5].mxu0 }
 0x412   : > { %1939 = vst [vmem:[%s4989_s15 + $0x8] sm:$0xff] %v1922_v40  ;;  %v1972_v42 = vadd.f32 %v1956_v37, %v1922_v40  ;;  %v3412_v43 = vadd.f32 %v3411_v41, %v3410_v39 }
 0x414   : > { %1988 = vst [vmem:[%s4985_s11 + $0x8] sm:$0xff] %v1972_v42  ;;  %v1923_v45 = vmul.f32 %v3412_v43, %v1854_v38  ;;  %v3413_v46 = vpop.f32.mrb[6].mxu0  ;;  %v1966_v42 = vld [vmem:[%s4985_s11 + $0x58] sm:$0xff]  ;;  %v1899_v43 = vpop.permute.xlu0 %1898 }
 0x415   : > { %v3414_v48 = vpop.f32.mrb[7].mxu0 }
 0x416   : > { %1940 = vst [vmem:[%s4989_s15 + $0x10] sm:$0xff] %v1923_v45  ;;  %v1973_v49 = vadd.f32 %v1957_v44, %v1923_v45  ;;  %v3415_v50 = vadd.f32 %v3414_v48, %v3413_v46 }
 0x418   : > { %1989 = vst [vmem:[%s4985_s11 + $0x10] sm:$0xff] %v1973_v49  ;;  %v1924_v19 = vmul.f32 %v3415_v50, %v1859_v47  ;;  %v3416_v14 = vpop.f32.mrb[8].mxu0  ;;  %v1967_v49 = vld [vmem:[%s4985_s11 + $0x60] sm:$0xff]  ;;  %v1904_v50 = vpop.permute.xlu1 %1903 }
 0x419   : > { %v3417_v29 = vpop.f32.mrb[9].mxu0 }
 0x41a   : > { %1941 = vst [vmem:[%s4989_s15 + $0x18] sm:$0xff] %v1924_v19  ;;  %v1974_v26 = vadd.f32 %v1958_v13, %v1924_v19  ;;  %v3418_v25 = vadd.f32 %v3417_v29, %v3416_v14 }
 0x41c   : > { %1990 = vst [vmem:[%s4985_s11 + $0x18] sm:$0xff] %v1974_v26  ;;  %v3419_v9 = vpop.f32.mrb[10].mxu0  ;;  %v1925_v0 = vmul.f32 %v3418_v25, %v1864_v34  ;;  %v1968_v25 = vld [vmem:[%s4985_s11 + $0x68] sm:$0xff] }
 0x41d   : > { %v3420_v63 = vpop.f32.mrb[11].mxu0 }
 0x41e   : > { %1942 = vst [vmem:[%s4989_s15 + $0x20] sm:$0xff] %v1925_v0  ;;  %v1975_v27 = vadd.f32 %v1959_v1, %v1925_v0  ;;  %v3421_v31 = vadd.f32 %v3420_v63, %v3419_v9  ;;  %v1909_v1 = vpop.permute.xlu0 %1908  ;;  %v1914_v63 = vpop.permute.xlu1 %1913 }
 0x420   : > { %1991 = vst [vmem:[%s4985_s11 + $0x20] sm:$0xff] %v1975_v27  ;;  %v3422_v8 = vpop.f32.mrb[12].mxu0  ;;  %v1926_v18 = vmul.f32 %v3421_v31, %v1869_v3 }
 0x421   : > { %v3423_v22 = vpop.f32.mrb[13].mxu0 }
 0x422   : > { %v3424_v28 = vadd.f32 %v3423_v22, %v3422_v8  ;;  %1943 = vst [vmem:[%s4989_s15 + $0x28] sm:$0xff] %v1926_v18  ;;  %v1976_v30 = vadd.f32 %v1960_v6, %v1926_v18  ;;  %v1969_v6 = vld [vmem:[%s4985_s11 + $0x70] sm:$0xff]  ;;  %v1919_v22 = vpop.permute.xlu0 %1918 }
 0x424   : > { %v3425_v17 = vpop.f32.mrb[14].mxu0  ;;  %v1927_v15 = vmul.f32 %v3424_v28, %v1874_v58  ;;  %1992 = vst [vmem:[%s4985_s11 + $0x28] sm:$0xff] %v1976_v30 }
 0x425   : > { %v3426_v11 = vpop.f32.mrb[15].mxu0 }
 0x426   : > { %1944 = vst [vmem:[%s4989_s15 + $0x30] sm:$0xff] %v1927_v15  ;;  %v1977_v16 = vadd.f32 %v1961_v57, %v1927_v15  ;;  %v3427_v5 = vadd.f32 %v3426_v11, %v3425_v17  ;;  %v1970_v57 = vld [vmem:[%s4985_s11 + $0x78] sm:$0xff] }
 0x428   : > { %1993 = vst [vmem:[%s4985_s11 + $0x30] sm:$0xff] %v1977_v16  ;;  %v3428_v23 = vpop.f32.mrb[16].mxu0  ;;  %v1928_v59 = vmul.f32 %v3427_v5, %v1879_v21 }
 0x429   : > { %v3429_v61 = vpop.f32.mrb[17].mxu0 }
 0x42a   : > { %v3430_v60 = vadd.f32 %v3429_v61, %v3428_v23  ;;  %1945 = vst [vmem:[%s4989_s15 + $0x38] sm:$0xff] %v1928_v59  ;;  %v1978_v62 = vadd.f32 %v1962_v10, %v1928_v59 }
 0x42c   : > { %v3431_v53 = vpop.f32.mrb[18].mxu0  ;;  %v1929_v55 = vmul.f32 %v3430_v60, %v1884_v52  ;;  %1994 = vst [vmem:[%s4985_s11 + $0x38] sm:$0xff] %v1978_v62 }
 0x42d   : > { %v3432_v54 = vpop.f32.mrb[19].mxu0 }
 0x42e   : > { %1946 = vst [vmem:[%s4989_s15 + $0x40] sm:$0xff] %v1929_v55  ;;  %v1979_v56 = vadd.f32 %v1963_v51, %v1929_v55  ;;  %v3433_v4 = vadd.f32 %v3432_v54, %v3431_v53 }
 0x430   : > { %1995 = vst [vmem:[%s4985_s11 + $0x40] sm:$0xff] %v1979_v56  ;;  %v3434_v24 = vpop.f32.mrb[20].mxu0  ;;  %v1930_v2 = vmul.f32 %v3433_v4, %v1889_v20 }
 0x431   : > { %v3435_v32 = vpop.f32.mrb[21].mxu0 }
 0x432   : > { %v3436_v7 = vadd.f32 %v3435_v32, %v3434_v24  ;;  %1947 = vst [vmem:[%s4989_s15 + $0x48] sm:$0xff] %v1930_v2  ;;  %v1980_v33 = vadd.f32 %v1964_v12, %v1930_v2 }
 0x434   : > { %v3437_v38 = vpop.f32.mrb[22].mxu0  ;;  %v1931_v37 = vmul.f32 %v3436_v7, %v1894_v35  ;;  %1996 = vst [vmem:[%s4985_s11 + $0x48] sm:$0xff] %v1980_v33 }
 0x435   : > { %v3438_v40 = vpop.f32.mrb[23].mxu0 }
 0x436   : > { %1948 = vst [vmem:[%s4989_s15 + $0x50] sm:$0xff] %v1931_v37  ;;  %v1981_v39 = vadd.f32 %v1965_v36, %v1931_v37  ;;  %v3439_v41 = vadd.f32 %v3438_v40, %v3437_v38 }
 0x438   : > { %1997 = vst [vmem:[%s4985_s11 + $0x50] sm:$0xff] %v1981_v39  ;;  %v3440_v44 = vpop.f32.mrb[24].mxu0  ;;  %v1932_v45 = vmul.f32 %v3439_v41, %v1899_v43 }
 0x439   : > { %v3441_v46 = vpop.f32.mrb[25].mxu0 }
 0x43a   : > { %v3442_v47 = vadd.f32 %v3441_v46, %v3440_v44  ;;  %1949 = vst [vmem:[%s4989_s15 + $0x58] sm:$0xff] %v1932_v45  ;;  %v1982_v48 = vadd.f32 %v1966_v42, %v1932_v45 }
 0x43c   : > { %v3443_v13 = vpop.f32.mrb[26].mxu0  ;;  %v1933_v19 = vmul.f32 %v3442_v47, %v1904_v50  ;;  %1998 = vst [vmem:[%s4985_s11 + $0x58] sm:$0xff] %v1982_v48 }
 0x43d   : > { %v3444_v14 = vpop.f32.mrb[27].mxu0 }
 0x43e   : > { %1950 = vst [vmem:[%s4989_s15 + $0x60] sm:$0xff] %v1933_v19  ;;  %v1983_v29 = vadd.f32 %v1967_v49, %v1933_v19  ;;  %v3445_v26 = vadd.f32 %v3444_v14, %v3443_v13 }
 0x440   : > { %1999 = vst [vmem:[%s4985_s11 + $0x60] sm:$0xff] %v1983_v29  ;;  %v3446_v34 = vpop.f32.mrb[28].mxu0  ;;  %v1934_v9 = vmul.f32 %v3445_v26, %v1909_v1 }
 0x441   : > { %v3447_v0 = vpop.f32.mrb[29].mxu0 }
 0x442   : > { %v3448_v27 = vadd.f32 %v3447_v0, %v3446_v34  ;;  %1951 = vst [vmem:[%s4989_s15 + $0x68] sm:$0xff] %v1934_v9  ;;  %v1984_v31 = vadd.f32 %v1968_v25, %v1934_v9 }
 0x444   : > { %v1935_v3 = vmul.f32 %v3448_v27, %v1914_v63  ;;  %2000 = vst [vmem:[%s4985_s11 + $0x68] sm:$0xff] %v1984_v31  ;;  %v3449_v8 = vpop.f32.mrb[30].mxu0 }
 0x445   : > { %v3450_v18 = vpop.f32.mrb[31].mxu0 }
 0x446   : > { %1952 = vst [vmem:[%s4989_s15 + $0x70] sm:$0xff] %v1935_v3  ;;  %v1985_v28 = vadd.f32 %v1969_v6, %v1935_v3  ;;  %v3451_v30 = vadd.f32 %v3450_v18, %v3449_v8 }
 0x448   : > { %2001 = vst [vmem:[%s4985_s11 + $0x70] sm:$0xff] %v1985_v28  ;;  %v1936_v58 = vmul.f32 %v3451_v30, %v1919_v22 }
 0x44a   : > { %1953 = vst [vmem:[%s4989_s15 + $0x78] sm:$0xff] %v1936_v58  ;;  %v1986_v17 = vadd.f32 %v1970_v57, %v1936_v58 }
 0x44c   : > { %2002 = vst [vmem:[%s4985_s11 + $0x78] sm:$0xff] %v1986_v17 }
 0x469   : > { %v5038_v15 = vpop.f32.mrb[0].mxu1 }
 0x46a   : > { %v5040_v11 = vpop.f32.mrb[1].mxu1  ;;  %2313 = vst [vmem:[#allocation7 + $0x8] sm:$0xff] (!%p3234_p1), %v5038_v15 }
 0x46b   : > { %2312 = vst [vmem:[#allocation7] sm:$0xff] (!%p3234_p1), %v5040_v11 }
 0x471   : > { %v5042_v16 = vpop.f32.mrb[2].mxu1 }
 0x472   : > { %v5044_v5 = vpop.f32.mrb[3].mxu1  ;;  %2315 = vst [vmem:[#allocation7 + $0x18] sm:$0xff] (!%p3234_p1), %v5042_v16 }
 0x473   : > { %2314 = vst [vmem:[#allocation7 + $0x10] sm:$0xff] (!%p3234_p1), %v5044_v5 }
 0x479   : > { %v5046_v10 = vpop.f32.mrb[4].mxu1 }
 0x47a   : > { %v5048_v21 = vpop.f32.mrb[5].mxu1  ;;  %2317 = vst [vmem:[#allocation7 + $0x28] sm:$0xff] (!%p3234_p1), %v5046_v10 }
 0x47b   : > { %2316 = vst [vmem:[#allocation7 + $0x20] sm:$0xff] (!%p3234_p1), %v5048_v21 }
 0x481   : > { %v5050_v23 = vpop.f32.mrb[6].mxu1 }
 0x482   : > { %v5052_v59 = vpop.f32.mrb[7].mxu1  ;;  %2319 = vst [vmem:[#allocation7 + $0x38] sm:$0xff] (!%p3234_p1), %v5050_v23 }
 0x483   : > { %2318 = vst [vmem:[#allocation7 + $0x30] sm:$0xff] (!%p3234_p1), %v5052_v59 }
 0x489   : > { %v5054_v61 = vpop.f32.mrb[8].mxu1 }
 0x48a   : > { %v5056_v60 = vpop.f32.mrb[9].mxu1  ;;  %2321 = vst [vmem:[#allocation7 + $0x48] sm:$0xff] (!%p3234_p1), %v5054_v61 }
 0x48b   : > { %2320 = vst [vmem:[#allocation7 + $0x40] sm:$0xff] (!%p3234_p1), %v5056_v60 }
 0x491   : > { %v5058_v62 = vpop.f32.mrb[10].mxu1 }
 0x492   : > { %v5060_v51 = vpop.f32.mrb[11].mxu1  ;;  %2323 = vst [vmem:[#allocation7 + $0x58] sm:$0xff] (!%p3234_p1), %v5058_v62 }
 0x493   : > { %2322 = vst [vmem:[#allocation7 + $0x50] sm:$0xff] (!%p3234_p1), %v5060_v51 }
 0x499   : > { %v5062_v52 = vpop.f32.mrb[12].mxu1 }
 0x49a   : > { %v5064_v53 = vpop.f32.mrb[13].mxu1  ;;  %2325 = vst [vmem:[#allocation7 + $0x68] sm:$0xff] (!%p3234_p1), %v5062_v52 }
 0x49b   : > { %2324 = vst [vmem:[#allocation7 + $0x60] sm:$0xff] (!%p3234_p1), %v5064_v53 }
 0x4a1   : > { %v5066_v55 = vpop.f32.mrb[14].mxu1 }
 0x4a2   : > { %v5068_v54 = vpop.f32.mrb[15].mxu1  ;;  %2327 = vst [vmem:[#allocation7 + $0x78] sm:$0xff] (!%p3234_p1), %v5066_v55 }
 0x4a3   : > { %2326 = vst [vmem:[#allocation7 + $0x70] sm:$0xff] (!%p3234_p1), %v5068_v54 }
 0x4a5   : > { %v5070_v56 = vpop.f32.mrb[16].mxu1 }
 0x4a6   : > { %v5072_v4 = vpop.f32.mrb[17].mxu1  ;;  %2329 = vst [vmem:[#allocation7 + $0x88] sm:$0xff] (!%p3234_p1), %v5070_v56 }
 0x4a7   : > { %2328 = vst [vmem:[#allocation7 + $0x80] sm:$0xff] (!%p3234_p1), %v5072_v4 }
 0x4a9   : > { %v5074_v12 = vpop.f32.mrb[18].mxu1 }
 0x4aa   : > { %v5076_v20 = vpop.f32.mrb[19].mxu1  ;;  %2331 = vst [vmem:[#allocation7 + $0x98] sm:$0xff] (!%p3234_p1), %v5074_v12 }
 0x4ab   : > { %2330 = vst [vmem:[#allocation7 + $0x90] sm:$0xff] (!%p3234_p1), %v5076_v20 }
 0x4ad   : > { %v5078_v24 = vpop.f32.mrb[20].mxu1 }
 0x4ae   : > { %v5080_v2 = vpop.f32.mrb[21].mxu1  ;;  %2333 = vst [vmem:[#allocation7 + $0xa8] sm:$0xff] (!%p3234_p1), %v5078_v24 }
 0x4af   : > { %2332 = vst [vmem:[#allocation7 + $0xa0] sm:$0xff] (!%p3234_p1), %v5080_v2 }
 0x4b1   : > { %v5082_v32 = vpop.f32.mrb[22].mxu1 }
 0x4b2   : > { %v5084_v7 = vpop.f32.mrb[23].mxu1  ;;  %2335 = vst [vmem:[#allocation7 + $0xb8] sm:$0xff] (!%p3234_p1), %v5082_v32 }
 0x4b3   : > { %2334 = vst [vmem:[#allocation7 + $0xb0] sm:$0xff] (!%p3234_p1), %v5084_v7 }
 0x4b5   : > { %v5086_v33 = vpop.f32.mrb[24].mxu1 }
 0x4b6   : > { %v5088_v36 = vpop.f32.mrb[25].mxu1  ;;  %2337 = vst [vmem:[#allocation7 + $0xc8] sm:$0xff] (!%p3234_p1), %v5086_v33 }
 0x4b7   : > { %2336 = vst [vmem:[#allocation7 + $0xc0] sm:$0xff] (!%p3234_p1), %v5088_v36 }
 0x4b9   : > { %v5090_v35 = vpop.f32.mrb[26].mxu1 }
 0x4ba   : > { %v5092_v38 = vpop.f32.mrb[27].mxu1  ;;  %2339 = vst [vmem:[#allocation7 + $0xd8] sm:$0xff] (!%p3234_p1), %v5090_v35 }
 0x4bb   : > { %2338 = vst [vmem:[#allocation7 + $0xd0] sm:$0xff] (!%p3234_p1), %v5092_v38 }
 0x4bc   : > { %2311 = sbr.rel (%p3234_p1) target bundleno = 1220 (0x4c4), region = 68 }
 0x4bd   : > { %v5094_v37 = vpop.f32.mrb[28].mxu1 }
 0x4be   : > { %v5096_v40 = vpop.f32.mrb[29].mxu1  ;;  %2341 = vst [vmem:[#allocation7 + $0xe8] sm:$0xff] (!%p3234_p1), %v5094_v37 }
 0x4bf   : > { %2340 = vst [vmem:[#allocation7 + $0xe0] sm:$0xff] (!%p3234_p1), %v5096_v40 }
 0x4c1   : > { %v5098_v39 = vpop.f32.mrb[30].mxu1 }
 0x4c2   : > { %v5100_v41 = vpop.f32.mrb[31].mxu1  ;;  %2343 = vst [vmem:[#allocation7 + $0xf8] sm:$0xff] (!%p3234_p1), %v5098_v39 }
 0x4c3   : > { %2342 = vst [vmem:[#allocation7 + $0xf0] sm:$0xff] %v5100_v41 }
 0x4c4 PF: > { %2347 = sbr.rel (%p220_p5) target bundleno = 1239 (0x4d7), region = 72  ;;  %v2348_v42 = vld [vmem:[#allocation7] sm:$0xff] (!%p220_p5)  ;;  %v2349_v43 = vld [vmem:[#allocation7 + $0x8] sm:$0xff] (!%p220_p5)  ;;  %v2350_v44 = vld [vmem:[#allocation7 + $0x10] sm:$0xff] (!%p220_p5) }
 0x4c5   : > { %v2380_v45 = vadd.f32 (!%p220_p5), %v2348_v42, %v5040_v11  ;;  %v2381_v46 = vadd.f32 (!%p220_p5), %v5038_v15, %v2349_v43  ;;  %v2382_v47 = vadd.f32 (!%p220_p5), %v2350_v44, %v5044_v5  ;;  %v2351_v48 = vld [vmem:[#allocation7 + $0x18] sm:$0xff] (!%p220_p5)  ;;  %v2352_v49 = vld [vmem:[#allocation7 + $0x20] sm:$0xff] (!%p220_p5)  ;;  %v2353_v50 = vld [vmem:[#allocation7 + $0x28] sm:$0xff] (!%p220_p5) }
 0x4c6   : > { %v2383_v13 = vadd.f32 (!%p220_p5), %v5042_v16, %v2351_v48  ;;  %v2384_v19 = vadd.f32 (!%p220_p5), %v2352_v49, %v5048_v21  ;;  %v2385_v14 = vadd.f32 (!%p220_p5), %v5046_v10, %v2353_v50  ;;  %v2354_v29 = vld [vmem:[#allocation7 + $0x30] sm:$0xff] (!%p220_p5)  ;;  %v2355_v26 = vld [vmem:[#allocation7 + $0x38] sm:$0xff] (!%p220_p5)  ;;  %v2356_v25 = vld [vmem:[#allocation7 + $0x40] sm:$0xff] (!%p220_p5) }
 0x4c7   : > { %2412 = vst [vmem:[#allocation7] sm:$0xff] (!%p220_p5), %v2380_v45  ;;  %2413 = vst [vmem:[#allocation7 + $0x8] sm:$0xff] (!%p220_p5), %v2381_v46  ;;  %v2386_v1 = vadd.f32 (!%p220_p5), %v2354_v29, %v5052_v59  ;;  %v2387_v34 = vadd.f32 (!%p220_p5), %v5050_v23, %v2355_v26  ;;  %v2388_v9 = vadd.f32 (!%p220_p5), %v2356_v25, %v5056_v60  ;;  %v2357_v0 = vld [vmem:[#allocation7 + $0x48] sm:$0xff] (!%p220_p5)  ;;  %v2358_v63 = vld [vmem:[#allocation7 + $0x50] sm:$0xff] (!%p220_p5) }
 0x4c8   : > { %2414 = vst [vmem:[#allocation7 + $0x10] sm:$0xff] (!%p220_p5), %v2382_v47  ;;  %v2359_v27 = vld [vmem:[#allocation7 + $0x58] sm:$0xff] (!%p220_p5)  ;;  %2415 = vst [vmem:[#allocation7 + $0x18] sm:$0xff] (!%p220_p5), %v2383_v13  ;;  %v2389_v31 = vadd.f32 (!%p220_p5), %v5054_v61, %v2357_v0  ;;  %v2390_v6 = vadd.f32 (!%p220_p5), %v2358_v63, %v5060_v51  ;;  %v2360_v8 = vld [vmem:[#allocation7 + $0x60] sm:$0xff] (!%p220_p5) }
 0x4c9   : > { %2416 = vst [vmem:[#allocation7 + $0x20] sm:$0xff] (!%p220_p5), %v2384_v19  ;;  %2417 = vst [vmem:[#allocation7 + $0x28] sm:$0xff] (!%p220_p5), %v2385_v14  ;;  %v2391_v3 = vadd.f32 (!%p220_p5), %v5058_v62, %v2359_v27  ;;  %v2361_v18 = vld [vmem:[#allocation7 + $0x68] sm:$0xff] (!%p220_p5)  ;;  %v2362_v22 = vld [vmem:[#allocation7 + $0x70] sm:$0xff] (!%p220_p5)  ;;  %v2392_v28 = vadd.f32 (!%p220_p5), %v2360_v8, %v5064_v53 }
 0x4ca   : > { %2418 = vst [vmem:[#allocation7 + $0x30] sm:$0xff] (!%p220_p5), %v2386_v1  ;;  %2419 = vst [vmem:[#allocation7 + $0x38] sm:$0xff] (!%p220_p5), %v2387_v34  ;;  %v2393_v30 = vadd.f32 (!%p220_p5), %v5062_v52, %v2361_v18  ;;  %v2394_v57 = vadd.f32 (!%p220_p5), %v2362_v22, %v5068_v54  ;;  %v2363_v58 = vld [vmem:[#allocation7 + $0x78] sm:$0xff] (!%p220_p5)  ;;  %v2364_v17 = vld [vmem:[#allocation7 + $0x80] sm:$0xff] (!%p220_p5) }
 0x4cb   : > { %2420 = vst [vmem:[#allocation7 + $0x40] sm:$0xff] %v2388_v9  ;;  %v2365_v15 = vld [vmem:[#allocation7 + $0x88] sm:$0xff]  ;;  %2421 = vst [vmem:[#allocation7 + $0x48] sm:$0xff] %v2389_v31  ;;  %v2395_v11 = vadd.f32 %v5066_v55, %v2363_v58  ;;  %v2396_v16 = vadd.f32 %v2364_v17, %v5072_v4  ;;  %v2366_v10 = vld [vmem:[#allocation7 + $0x90] sm:$0xff] }
 0x4cc   : > { %2422 = vst [vmem:[#allocation7 + $0x50] sm:$0xff] %v2390_v6  ;;  %2423 = vst [vmem:[#allocation7 + $0x58] sm:$0xff] %v2391_v3  ;;  %v2397_v5 = vadd.f32 %v5070_v56, %v2365_v15  ;;  %v2367_v21 = vld [vmem:[#allocation7 + $0x98] sm:$0xff]  ;;  %v2368_v23 = vld [vmem:[#allocation7 + $0xa0] sm:$0xff]  ;;  %v2398_v59 = vadd.f32 %v2366_v10, %v5076_v20 }
 0x4cd   : > { %2424 = vst [vmem:[#allocation7 + $0x60] sm:$0xff] %v2392_v28  ;;  %2425 = vst [vmem:[#allocation7 + $0x68] sm:$0xff] %v2393_v30  ;;  %v2399_v61 = vadd.f32 %v5074_v12, %v2367_v21  ;;  %v2400_v60 = vadd.f32 %v2368_v23, %v5080_v2  ;;  %v2369_v62 = vld [vmem:[#allocation7 + $0xa8] sm:$0xff]  ;;  %v2370_v51 = vld [vmem:[#allocation7 + $0xb0] sm:$0xff] }
 0x4ce   : > { %2426 = vst [vmem:[#allocation7 + $0x70] sm:$0xff] %v2394_v57  ;;  %v2371_v52 = vld [vmem:[#allocation7 + $0xb8] sm:$0xff]  ;;  %2427 = vst [vmem:[#allocation7 + $0x78] sm:$0xff] %v2395_v11  ;;  %v2401_v53 = vadd.f32 %v5078_v24, %v2369_v62  ;;  %v2402_v55 = vadd.f32 %v2370_v51, %v5084_v7  ;;  %v2372_v56 = vld [vmem:[#allocation7 + $0xc0] sm:$0xff] }
 0x4cf   : > { %2428 = vst [vmem:[#allocation7 + $0x80] sm:$0xff] %v2396_v16  ;;  %2429 = vst [vmem:[#allocation7 + $0x88] sm:$0xff] %v2397_v5  ;;  %v2403_v54 = vadd.f32 %v5082_v32, %v2371_v52  ;;  %v2373_v4 = vld [vmem:[#allocation7 + $0xc8] sm:$0xff]  ;;  %v2374_v42 = vld [vmem:[#allocation7 + $0xd0] sm:$0xff]  ;;  %v2404_v12 = vadd.f32 %v2372_v56, %v5088_v36 }
 0x4d0   : > { %2430 = vst [vmem:[#allocation7 + $0x90] sm:$0xff] %v2398_v59  ;;  %2431 = vst [vmem:[#allocation7 + $0x98] sm:$0xff] %v2399_v61  ;;  %v2405_v20 = vadd.f32 %v5086_v33, %v2373_v4  ;;  %v2406_v2 = vadd.f32 %v2374_v42, %v5092_v38  ;;  %v2375_v43 = vld [vmem:[#allocation7 + $0xd8] sm:$0xff]  ;;  %v2376_v44 = vld [vmem:[#allocation7 + $0xe0] sm:$0xff] }
 0x4d1   : > { %2432 = vst [vmem:[#allocation7 + $0xa0] sm:$0xff] %v2400_v60  ;;  %v2377_v45 = vld [vmem:[#allocation7 + $0xe8] sm:$0xff]  ;;  %2433 = vst [vmem:[#allocation7 + $0xa8] sm:$0xff] %v2401_v53  ;;  %v2407_v24 = vadd.f32 %v5090_v35, %v2375_v43  ;;  %v2408_v32 = vadd.f32 %v2376_v44, %v5096_v40  ;;  %v2378_v46 = vld [vmem:[#allocation7 + $0xf0] sm:$0xff] }
 0x4d2   : > { %2434 = vst [vmem:[#allocation7 + $0xb0] sm:$0xff] %v2402_v55  ;;  %2435 = vst [vmem:[#allocation7 + $0xb8] sm:$0xff] %v2403_v54  ;;  %v2409_v7 = vadd.f32 %v5094_v37, %v2377_v45  ;;  %v2379_v47 = vld [vmem:[#allocation7 + $0xf8] sm:$0xff]  ;;  %v2410_v33 = vadd.f32 %v2378_v46, %v5100_v41 }
 0x4d3   : > { %2436 = vst [vmem:[#allocation7 + $0xc0] sm:$0xff] %v2404_v12  ;;  %2437 = vst [vmem:[#allocation7 + $0xc8] sm:$0xff] %v2405_v20  ;;  %v2411_v36 = vadd.f32 %v5098_v39, %v2379_v47 }
 0x4d4   : > { %2438 = vst [vmem:[#allocation7 + $0xd0] sm:$0xff] %v2406_v2  ;;  %2439 = vst [vmem:[#allocation7 + $0xd8] sm:$0xff] %v2407_v24 }
 0x4d5   : > { %2440 = vst [vmem:[#allocation7 + $0xe0] sm:$0xff] %v2408_v32  ;;  %2441 = vst [vmem:[#allocation7 + $0xe8] sm:$0xff] %v2409_v7 }
 0x4d6   : > { %2442 = vst [vmem:[#allocation7 + $0xf0] sm:$0xff] %v2410_v33  ;;  %2443 = vst [vmem:[#allocation7 + $0xf8] sm:$0xff] %v2411_v36 }
 0x4d7 PF: > { %p3236_p2 = scmp.ne.s32.totalorder %s3993_s18, 1 }
 0x4d8   : > { %v2450_v35 = vld [vmem:[%s5392_s3 + $0x10] sm:$0xff] (!%p3236_p2)  ;;  %v2448_v38 = vld [vmem:[%s5392_s3] sm:$0xff] (!%p3236_p2)  ;;  %v2451_v37 = vld [vmem:[%s5392_s3 + $0x18] sm:$0xff] (!%p3236_p2)  ;;  %v4018_v40 = vmov (!%p3236_p2), 0  }
 0x4d9   : > { %2447 = sbr.rel (%p3236_p2) target bundleno = 1436 (0x59c), region = 76  ;;  %3882 = vset.pattern.permute.xlu1 (!%p3236_p2), %v4018_v40  ;;  %3881 = vset.pattern.permute.xlu0 (!%p3236_p2), %v4018_v40  ;;  %v2482_v39 = vmul.f32 (!%p3236_p2), 0.5, %v2450_v35  ;;  %v2480_v41 = vmul.f32 (!%p3236_p2), 0.5, %v2448_v38  ;;  %v2449_v48 = vld [vmem:[%s5392_s3 + $0x8] sm:$0xff] (!%p3236_p2)  ;;  %v2483_v49 = vmul.f32 (!%p3236_p2), 0.5, %v2451_v37  ;;  %v2452_v19 = vld [vmem:[%s5392_s3 + $0x20] sm:$0xff] (!%p3236_p2) }
 0x4da   : > { %v2481_v50 = vmul.f32 (!%p3236_p2), 0.5, %v2449_v48  ;;  %v2453_v13 = vld [vmem:[%s5392_s3 + $0x28] sm:$0xff] (!%p3236_p2)  ;;  %v2484_v29 = vmul.f32 (!%p3236_p2), 0.5, %v2452_v19  ;;  %v2455_v26 = vld [vmem:[%s5392_s3 + $0x38] sm:$0xff] (!%p3236_p2)  ;;  %v2454_v25 = vld [vmem:[%s5392_s3 + $0x30] sm:$0xff] (!%p3236_p2) }
 0x4db   : > { %2556 = vperm.xlu1 (!%p3236_p2), %3882, %v2482_v39   ;;  %2546 = vperm.xlu0 (!%p3236_p2), %3881, %v2480_v41   ;;  %v2485_v14 = vmul.f32 (!%p3236_p2), 0.5, %v2453_v13  ;;  %v2487_v1 = vmul.f32 (!%p3236_p2), 0.5, %v2455_v26  ;;  %v2486_v34 = vmul.f32 (!%p3236_p2), 0.5, %v2454_v25  ;;  %v2457_v9 = vld [vmem:[%s5392_s3 + $0x48] sm:$0xff] (!%p3236_p2)  ;;  %v2456_v0 = vld [vmem:[%s5392_s3 + $0x40] sm:$0xff] (!%p3236_p2)  ;;  %v2459_v31 = vld [vmem:[%s5392_s3 + $0x58] sm:$0xff] (!%p3236_p2) }
 0x4dc   : > { %v2489_v63 = vmul.f32 (!%p3236_p2), 0.5, %v2457_v9  ;;  %v2488_v27 = vmul.f32 (!%p3236_p2), 0.5, %v2456_v0  ;;  %v2458_v6 = vld [vmem:[%s5392_s3 + $0x50] sm:$0xff] (!%p3236_p2)  ;;  %v2491_v3 = vmul.f32 (!%p3236_p2), 0.5, %v2459_v31  ;;  %v2461_v18 = vld [vmem:[%s5392_s3 + $0x68] sm:$0xff] (!%p3236_p2)  ;;  %v2460_v22 = vld [vmem:[%s5392_s3 + $0x60] sm:$0xff] (!%p3236_p2) }
 0x4dd   : > { %v2490_v8 = vmul.f32 (!%p3236_p2), 0.5, %v2458_v6  ;;  %v2493_v28 = vmul.f32 (!%p3236_p2), 0.5, %v2461_v18  ;;  %v2492_v30 = vmul.f32 (!%p3236_p2), 0.5, %v2460_v22  ;;  %v2463_v57 = vld [vmem:[%s5392_s3 + $0x78] sm:$0xff] (!%p3236_p2)  ;;  %v2462_v58 = vld [vmem:[%s5392_s3 + $0x70] sm:$0xff] (!%p3236_p2)  ;;  %v2465_v11 = vld [vmem:[%s5392_s3 + $0x88] sm:$0xff] (!%p3236_p2) }
 0x4de   : > { %v2495_v17 = vmul.f32 (!%p3236_p2), 0.5, %v2463_v57  ;;  %v2494_v15 = vmul.f32 (!%p3236_p2), 0.5, %v2462_v58  ;;  %v2464_v16 = vld [vmem:[%s5392_s3 + $0x80] sm:$0xff] (!%p3236_p2)  ;;  %v2497_v5 = vmul.f32 (!%p3236_p2), 0.5, %v2465_v11  ;;  %v2467_v21 = vld [vmem:[%s5392_s3 + $0x98] sm:$0xff] (!%p3236_p2)  ;;  %v2466_v23 = vld [vmem:[%s5392_s3 + $0x90] sm:$0xff] (!%p3236_p2) }
 0x4df   : > { %2561 = vperm.xlu1 (!%p3236_p2), %3882, %v2483_v49   ;;  %2551 = vperm.xlu0 (!%p3236_p2), %3881, %v2481_v50   ;;  %v2496_v10 = vmul.f32 (!%p3236_p2), 0.5, %v2464_v16  ;;  %v2499_v59 = vmul.f32 (!%p3236_p2), 0.5, %v2467_v21  ;;  %v2498_v61 = vmul.f32 (!%p3236_p2), 0.5, %v2466_v23  ;;  %v2469_v60 = vld [vmem:[%s5392_s3 + $0xa8] sm:$0xff] (!%p3236_p2)  ;;  %v2468_v62 = vld [vmem:[%s5392_s3 + $0xa0] sm:$0xff] (!%p3236_p2)  ;;  %v2471_v53 = vld [vmem:[%s5392_s3 + $0xb8] sm:$0xff] (!%p3236_p2) }
 0x4e0   : > { %v2501_v51 = vmul.f32 0.5, %v2469_v60  ;;  %v2500_v52 = vmul.f32 0.5, %v2468_v62  ;;  %v2470_v55 = vld [vmem:[%s5392_s3 + $0xb0] sm:$0xff]  ;;  %v2503_v54 = vmul.f32 0.5, %v2471_v53  ;;  %v2473_v4 = vld [vmem:[%s5392_s3 + $0xc8] sm:$0xff]  ;;  %v2472_v42 = vld [vmem:[%s5392_s3 + $0xc0] sm:$0xff] }
 0x4e1   : > { %v2502_v56 = vmul.f32 0.5, %v2470_v55  ;;  %v2505_v12 = vmul.f32 0.5, %v2473_v4  ;;  %v2504_v20 = vmul.f32 0.5, %v2472_v42  ;;  %v2475_v2 = vld [vmem:[%s5392_s3 + $0xd8] sm:$0xff]  ;;  %v2474_v43 = vld [vmem:[%s5392_s3 + $0xd0] sm:$0xff]  ;;  %v2477_v24 = vld [vmem:[%s5392_s3 + $0xe8] sm:$0xff] }
 0x4e2   : > { %v2507_v44 = vmul.f32 0.5, %v2475_v2  ;;  %v2506_v45 = vmul.f32 0.5, %v2474_v43  ;;  %v2476_v32 = vld [vmem:[%s5392_s3 + $0xe0] sm:$0xff]  ;;  %v2509_v7 = vmul.f32 0.5, %v2477_v24  ;;  %v2479_v47 = vld [vmem:[%s5392_s3 + $0xf8] sm:$0xff]  ;;  %v2478_v33 = vld [vmem:[%s5392_s3 + $0xf0] sm:$0xff] }
 0x4e3   : > { %2571 = vperm.xlu1 %3882, %v2485_v14   ;;  %2566 = vperm.xlu0 %3881, %v2484_v29   ;;  %v2508_v46 = vmul.f32 0.5, %v2476_v32  ;;  %v2511_v36 = vmul.f32 0.5, %v2479_v47  ;;  %v2510_v35 = vmul.f32 0.5, %v2478_v33  ;;  %v2514_v38 = vld [vmem:[#allocation7 + $0x10] sm:$0xff]  ;;  %v2512_v37 = vld [vmem:[#allocation7] sm:$0xff]  ;;  %v2515_v13 = vld [vmem:[#allocation7 + $0x18] sm:$0xff] }
 0x4e4   : > { %v2770_v40 = vld [vmem:[#allocation8 + $0x10] sm:$0xff]  ;;  %v2768_v41 = vld [vmem:[#allocation8] sm:$0xff]  ;;  %v2513_v19 = vld [vmem:[#allocation7 + $0x8] sm:$0xff] }
 0x4e5   : > { %v2771_v26 = vld [vmem:[#allocation8 + $0x18] sm:$0xff]  ;;  %v2772_v18 = vld [vmem:[#allocation8 + $0x20] sm:$0xff]  ;;  %v2518_v58 = vld [vmem:[#allocation7 + $0x30] sm:$0xff] }
 0x4e6   : > { %v2519_v57 = vld [vmem:[#allocation7 + $0x38] sm:$0xff]  ;;  %v2776_v53 = vld [vmem:[#allocation8 + $0x40] sm:$0xff]  ;;  %v2522_v42 = vld [vmem:[#allocation7 + $0x50] sm:$0xff] }
 0x4e7   : > { %2581 = vperm.xlu1 %3882, %v2487_v1   ;;  %2576 = vperm.xlu0 %3881, %v2486_v34   ;;  %v2769_v1 = vld [vmem:[#allocation8 + $0x8] sm:$0xff]  ;;  %v2775_v11 = vld [vmem:[#allocation8 + $0x38] sm:$0xff] }
 0x4e8   : > { %v2523_v4 = vld [vmem:[#allocation7 + $0x58] sm:$0xff] }
 0x4e9   : > { %v2779_v2 = vld [vmem:[#allocation8 + $0x58] sm:$0xff] }
 0x4eb   : > { %2591 = vperm.xlu1 %3882, %v2489_v63   ;;  %2586 = vperm.xlu0 %3881, %v2488_v27   ;;  %v2517_v63 = vld [vmem:[#allocation7 + $0x28] sm:$0xff]  ;;  %v2516_v27 = vld [vmem:[#allocation7 + $0x20] sm:$0xff] }
 0x4ef   : > { %2601 = vperm.xlu1 %3882, %v2491_v3   ;;  %2596 = vperm.xlu0 %3881, %v2490_v8   ;;  %v2773_v3 = vld [vmem:[#allocation8 + $0x28] sm:$0xff] }
 0x4f3   : > { %2611 = vperm.xlu1 %3882, %v2493_v28   ;;  %2606 = vperm.xlu0 %3881, %v2492_v30  }
 0x4f7   : > { %2621 = vperm.xlu1 %3882, %v2495_v17   ;;  %2616 = vperm.xlu0 %3881, %v2494_v15  }
 0x4fb   : > { %2631 = vperm.xlu1 %3882, %v2497_v5   ;;  %2626 = vperm.xlu0 %3881, %v2496_v10   ;;  %v2774_v5 = vld [vmem:[#allocation8 + $0x30] sm:$0xff] }
 0x4ff   : > { %2641 = vperm.xlu1 %3882, %v2499_v59   ;;  %2636 = vperm.xlu0 %3881, %v2498_v61   ;;  %v2521_v59 = vld [vmem:[#allocation7 + $0x48] sm:$0xff]  ;;  %v2520_v61 = vld [vmem:[#allocation7 + $0x40] sm:$0xff] }
 0x503   : > { %2651 = vperm.xlu1 %3882, %v2501_v51   ;;  %2646 = vperm.xlu0 %3881, %v2500_v52   ;;  %v2777_v51 = vld [vmem:[#allocation8 + $0x48] sm:$0xff] }
 0x507   : > { %2661 = vperm.xlu1 %3882, %v2503_v54   ;;  %2656 = vperm.xlu0 %3881, %v2502_v56  }
 0x50b   : > { %2671 = vperm.xlu1 %3882, %v2505_v12   ;;  %2666 = vperm.xlu0 %3881, %v2504_v20  }
 0x50f   : > { %2681 = vperm.xlu1 %3882, %v2507_v44   ;;  %2676 = vperm.xlu0 %3881, %v2506_v45   ;;  %v2778_v44 = vld [vmem:[#allocation8 + $0x50] sm:$0xff] }
 0x513   : > { %2691 = vperm.xlu1 %3882, %v2509_v7   ;;  %2686 = vperm.xlu0 %3881, %v2508_v46   ;;  %v2525_v7 = vld [vmem:[#allocation7 + $0x68] sm:$0xff]  ;;  %v2524_v46 = vld [vmem:[#allocation7 + $0x60] sm:$0xff] }
 0x517   : > { %2701 = vperm.xlu1 %3882, %v2511_v36   ;;  %2696 = vperm.xlu0 %3881, %v2510_v35   ;;  %v2781_v36 = vld [vmem:[#allocation8 + $0x68] sm:$0xff] }
 0x55a   : > { %v2557_v39 = vpop.permute.xlu1 %2556  ;;  %v2547_v48 = vpop.permute.xlu0 %2546 }
 0x55b   : > { %v2706_v49 = vmul.f32 %v2557_v39, %v2514_v38  ;;  %v2704_v50 = vmul.f32 %v2547_v48, %v2512_v37  ;;  %v2780_v38 = vld [vmem:[#allocation8 + $0x60] sm:$0xff]  ;;  %v2526_v48 = vld [vmem:[#allocation7 + $0x70] sm:$0xff] }
 0x55d   : > { %2738 = vst [vmem:[#allocation5 + $0x10] sm:$0xff] %v2706_v49  ;;  %v2802_v14 = vadd.f32 %v2770_v40, %v2706_v49  ;;  %2736 = vst [vmem:[#allocation5] sm:$0xff] %v2704_v50  ;;  %v2800_v29 = vadd.f32 %v2768_v41, %v2704_v50  ;;  %v2527_v41 = vld [vmem:[#allocation7 + $0x78] sm:$0xff] }
 0x55e   : > { %v2562_v25 = vpop.permute.xlu1 %2561  ;;  %v2552_v34 = vpop.permute.xlu0 %2551 }
 0x55f   : > { %2834 = vst [vmem:[#allocation8 + $0x10] sm:$0xff] %v2802_v14  ;;  %2832 = vst [vmem:[#allocation8] sm:$0xff] %v2800_v29  ;;  %v2707_v9 = vmul.f32 %v2562_v25, %v2515_v13  ;;  %v2705_v0 = vmul.f32 %v2552_v34, %v2513_v19  ;;  %v2783_v13 = vld [vmem:[#allocation8 + $0x78] sm:$0xff]  ;;  %v2782_v14 = vld [vmem:[#allocation8 + $0x70] sm:$0xff] }
 0x560   : > { %v2528_v34 = vld [vmem:[#allocation7 + $0x80] sm:$0xff] }
 0x561   : > { %2739 = vst [vmem:[#allocation5 + $0x18] sm:$0xff] %v2707_v9  ;;  %v2803_v31 = vadd.f32 %v2771_v26, %v2707_v9  ;;  %2737 = vst [vmem:[#allocation5 + $0x8] sm:$0xff] %v2705_v0  ;;  %v2801_v6 = vadd.f32 %v2769_v1, %v2705_v0  ;;  %v2529_v1 = vld [vmem:[#allocation7 + $0x88] sm:$0xff] }
 0x562   : > { %v2572_v8 = vpop.permute.xlu1 %2571  ;;  %v2567_v22 = vpop.permute.xlu0 %2566 }
 0x563   : > { %2835 = vst [vmem:[#allocation8 + $0x18] sm:$0xff] %v2803_v31  ;;  %2833 = vst [vmem:[#allocation8 + $0x8] sm:$0xff] %v2801_v6  ;;  %v2709_v28 = vmul.f32 %v2572_v8, %v2517_v63  ;;  %v2708_v30 = vmul.f32 %v2567_v22, %v2516_v27  ;;  %v2785_v63 = vld [vmem:[#allocation8 + $0x88] sm:$0xff]  ;;  %v2784_v31 = vld [vmem:[#allocation8 + $0x80] sm:$0xff] }
 0x564   : > { %v2530_v22 = vld [vmem:[#allocation7 + $0x90] sm:$0xff] }
 0x565   : > { %2741 = vst [vmem:[#allocation5 + $0x28] sm:$0xff] %v2709_v28  ;;  %v2805_v17 = vadd.f32 %v2773_v3, %v2709_v28  ;;  %2740 = vst [vmem:[#allocation5 + $0x20] sm:$0xff] %v2708_v30  ;;  %v2804_v15 = vadd.f32 %v2772_v18, %v2708_v30  ;;  %v2531_v18 = vld [vmem:[#allocation7 + $0x98] sm:$0xff] }
 0x566   : > { %v2582_v16 = vpop.permute.xlu1 %2581  ;;  %v2577_v10 = vpop.permute.xlu0 %2576 }
 0x567   : > { %2837 = vst [vmem:[#allocation8 + $0x28] sm:$0xff] %v2805_v17  ;;  %2836 = vst [vmem:[#allocation8 + $0x20] sm:$0xff] %v2804_v15  ;;  %v2711_v21 = vmul.f32 %v2582_v16, %v2519_v57  ;;  %v2710_v23 = vmul.f32 %v2577_v10, %v2518_v58  ;;  %v2787_v57 = vld [vmem:[#allocation8 + $0x98] sm:$0xff]  ;;  %v2786_v17 = vld [vmem:[#allocation8 + $0x90] sm:$0xff] }
 0x568   : > { %v2532_v10 = vld [vmem:[#allocation7 + $0xa0] sm:$0xff] }
 0x569   : > { %2743 = vst [vmem:[#allocation5 + $0x38] sm:$0xff] %v2711_v21  ;;  %v2807_v60 = vadd.f32 %v2775_v11, %v2711_v21  ;;  %2742 = vst [vmem:[#allocation5 + $0x30] sm:$0xff] %v2710_v23  ;;  %v2806_v62 = vadd.f32 %v2774_v5, %v2710_v23  ;;  %v2533_v5 = vld [vmem:[#allocation7 + $0xa8] sm:$0xff] }
 0x56a   : > { %v2592_v52 = vpop.permute.xlu1 %2591  ;;  %v2587_v55 = vpop.permute.xlu0 %2586 }
 0x56b   : > { %2839 = vst [vmem:[#allocation8 + $0x38] sm:$0xff] %v2807_v60  ;;  %2838 = vst [vmem:[#allocation8 + $0x30] sm:$0xff] %v2806_v62  ;;  %v2713_v54 = vmul.f32 %v2592_v52, %v2521_v59  ;;  %v2712_v56 = vmul.f32 %v2587_v55, %v2520_v61  ;;  %v2789_v59 = vld [vmem:[#allocation8 + $0xa8] sm:$0xff]  ;;  %v2788_v60 = vld [vmem:[#allocation8 + $0xa0] sm:$0xff] }
 0x56c   : > { %v2534_v55 = vld [vmem:[#allocation7 + $0xb0] sm:$0xff] }
 0x56d   : > { %2745 = vst [vmem:[#allocation5 + $0x48] sm:$0xff] %v2713_v54  ;;  %v2809_v12 = vadd.f32 %v2777_v51, %v2713_v54  ;;  %2744 = vst [vmem:[#allocation5 + $0x40] sm:$0xff] %v2712_v56  ;;  %v2808_v20 = vadd.f32 %v2776_v53, %v2712_v56  ;;  %v2535_v53 = vld [vmem:[#allocation7 + $0xb8] sm:$0xff] }
 0x56e   : > { %v2602_v43 = vpop.permute.xlu1 %2601  ;;  %v2597_v45 = vpop.permute.xlu0 %2596 }
 0x56f   : > { %2841 = vst [vmem:[#allocation8 + $0x48] sm:$0xff] %v2809_v12  ;;  %2840 = vst [vmem:[#allocation8 + $0x40] sm:$0xff] %v2808_v20  ;;  %v2715_v24 = vmul.f32 %v2602_v43, %v2523_v4  ;;  %v2714_v32 = vmul.f32 %v2597_v45, %v2522_v42  ;;  %v2791_v4 = vld [vmem:[#allocation8 + $0xb8] sm:$0xff]  ;;  %v2790_v12 = vld [vmem:[#allocation8 + $0xb0] sm:$0xff] }
 0x570   : > { %v2536_v45 = vld [vmem:[#allocation7 + $0xc0] sm:$0xff] }
 0x571   : > { %2747 = vst [vmem:[#allocation5 + $0x58] sm:$0xff] %v2715_v24  ;;  %v2811_v47 = vadd.f32 %v2779_v2, %v2715_v24  ;;  %2746 = vst [vmem:[#allocation5 + $0x50] sm:$0xff] %v2714_v32  ;;  %v2810_v33 = vadd.f32 %v2778_v44, %v2714_v32  ;;  %v2537_v44 = vld [vmem:[#allocation7 + $0xc8] sm:$0xff] }
 0x572   : > { %v2612_v35 = vpop.permute.xlu1 %2611  ;;  %v2607_v37 = vpop.permute.xlu0 %2606 }
 0x573   : > { %2843 = vst [vmem:[#allocation8 + $0x58] sm:$0xff] %v2811_v47  ;;  %2842 = vst [vmem:[#allocation8 + $0x50] sm:$0xff] %v2810_v33  ;;  %v2717_v40 = vmul.f32 %v2612_v35, %v2525_v7  ;;  %v2716_v39 = vmul.f32 %v2607_v37, %v2524_v46  ;;  %v2793_v7 = vld [vmem:[#allocation8 + $0xc8] sm:$0xff]  ;;  %v2792_v47 = vld [vmem:[#allocation8 + $0xc0] sm:$0xff] }
 0x574   : > { %v2538_v37 = vld [vmem:[#allocation7 + $0xd0] sm:$0xff] }
 0x575   : > { %2749 = vst [vmem:[#allocation5 + $0x68] sm:$0xff] %v2717_v40  ;;  %v2813_v49 = vadd.f32 %v2781_v36, %v2717_v40  ;;  %2748 = vst [vmem:[#allocation5 + $0x60] sm:$0xff] %v2716_v39  ;;  %v2812_v50 = vadd.f32 %v2780_v38, %v2716_v39  ;;  %v2539_v38 = vld [vmem:[#allocation7 + $0xd8] sm:$0xff] }
 0x576   : > { %v2622_v19 = vpop.permute.xlu1 %2621  ;;  %v2617_v29 = vpop.permute.xlu0 %2616 }
 0x577   : > { %2845 = vst [vmem:[#allocation8 + $0x68] sm:$0xff] %v2813_v49  ;;  %2844 = vst [vmem:[#allocation8 + $0x60] sm:$0xff] %v2812_v50  ;;  %v2719_v26 = vmul.f32 %v2622_v19, %v2527_v41  ;;  %v2718_v25 = vmul.f32 %v2617_v29, %v2526_v48  ;;  %v2795_v41 = vld [vmem:[#allocation8 + $0xd8] sm:$0xff]  ;;  %v2794_v49 = vld [vmem:[#allocation8 + $0xd0] sm:$0xff] }
 0x578   : > { %v2540_v29 = vld [vmem:[#allocation7 + $0xe0] sm:$0xff] }
 0x579   : > { %2751 = vst [vmem:[#allocation5 + $0x78] sm:$0xff] %v2719_v26  ;;  %v2815_v9 = vadd.f32 %v2783_v13, %v2719_v26  ;;  %2750 = vst [vmem:[#allocation5 + $0x70] sm:$0xff] %v2718_v25  ;;  %v2814_v0 = vadd.f32 %v2782_v14, %v2718_v25  ;;  %v2541_v14 = vld [vmem:[#allocation7 + $0xe8] sm:$0xff] }
 0x57a   : > { %v2632_v27 = vpop.permute.xlu1 %2631  ;;  %v2627_v6 = vpop.permute.xlu0 %2626 }
 0x57b   : > { %2847 = vst [vmem:[#allocation8 + $0x78] sm:$0xff] %v2815_v9  ;;  %2846 = vst [vmem:[#allocation8 + $0x70] sm:$0xff] %v2814_v0  ;;  %v2721_v3 = vmul.f32 %v2632_v27, %v2529_v1  ;;  %v2720_v8 = vmul.f32 %v2627_v6, %v2528_v34  ;;  %v2797_v1 = vld [vmem:[#allocation8 + $0xe8] sm:$0xff]  ;;  %v2796_v9 = vld [vmem:[#allocation8 + $0xe0] sm:$0xff] }
 0x57c   : > { %v2542_v6 = vld [vmem:[#allocation7 + $0xf0] sm:$0xff] }
 0x57d   : > { %2753 = vst [vmem:[#allocation5 + $0x88] sm:$0xff] %v2721_v3  ;;  %v2817_v28 = vadd.f32 %v2785_v63, %v2721_v3  ;;  %2752 = vst [vmem:[#allocation5 + $0x80] sm:$0xff] %v2720_v8  ;;  %v2816_v30 = vadd.f32 %v2784_v31, %v2720_v8  ;;  %v2543_v31 = vld [vmem:[#allocation7 + $0xf8] sm:$0xff] }
 0x57e   : > { %v2642_v58 = vpop.permute.xlu1 %2641  ;;  %v2637_v15 = vpop.permute.xlu0 %2636 }
 0x57f   : > { %2849 = vst [vmem:[#allocation8 + $0x88] sm:$0xff] %v2817_v28  ;;  %2848 = vst [vmem:[#allocation8 + $0x80] sm:$0xff] %v2816_v30  ;;  %v2723_v11 = vmul.f32 %v2642_v58, %v2531_v18  ;;  %v2722_v16 = vmul.f32 %v2637_v15, %v2530_v22  ;;  %v2799_v18 = vld [vmem:[#allocation8 + $0xf8] sm:$0xff]  ;;  %v2798_v28 = vld [vmem:[#allocation8 + $0xf0] sm:$0xff] }
 0x581   : > { %2755 = vst [vmem:[#allocation5 + $0x98] sm:$0xff] %v2723_v11  ;;  %v2819_v21 = vadd.f32 %v2787_v57, %v2723_v11  ;;  %2754 = vst [vmem:[#allocation5 + $0x90] sm:$0xff] %v2722_v16  ;;  %v2818_v23 = vadd.f32 %v2786_v17, %v2722_v16 }
 0x582   : > { %v2652_v61 = vpop.permute.xlu1 %2651  ;;  %v2647_v62 = vpop.permute.xlu0 %2646 }
 0x583   : > { %2851 = vst [vmem:[#allocation8 + $0x98] sm:$0xff] %v2819_v21  ;;  %2850 = vst [vmem:[#allocation8 + $0x90] sm:$0xff] %v2818_v23  ;;  %v2725_v51 = vmul.f32 %v2652_v61, %v2533_v5  ;;  %v2724_v52 = vmul.f32 %v2647_v62, %v2532_v10 }
 0x585   : > { %2757 = vst [vmem:[#allocation5 + $0xa8] sm:$0xff] %v2725_v51  ;;  %v2821_v54 = vadd.f32 %v2789_v59, %v2725_v51  ;;  %2756 = vst [vmem:[#allocation5 + $0xa0] sm:$0xff] %v2724_v52  ;;  %v2820_v56 = vadd.f32 %v2788_v60, %v2724_v52 }
 0x586   : > { %v2662_v42 = vpop.permute.xlu1 %2661  ;;  %v2657_v20 = vpop.permute.xlu0 %2656 }
 0x587   : > { %2853 = vst [vmem:[#allocation8 + $0xa8] sm:$0xff] %v2821_v54  ;;  %2852 = vst [vmem:[#allocation8 + $0xa0] sm:$0xff] %v2820_v56  ;;  %v2727_v2 = vmul.f32 %v2662_v42, %v2535_v53  ;;  %v2726_v43 = vmul.f32 %v2657_v20, %v2534_v55 }
 0x589   : > { %2759 = vst [vmem:[#allocation5 + $0xb8] sm:$0xff] %v2727_v2  ;;  %v2823_v24 = vadd.f32 %v2791_v4, %v2727_v2  ;;  %2758 = vst [vmem:[#allocation5 + $0xb0] sm:$0xff] %v2726_v43  ;;  %v2822_v32 = vadd.f32 %v2790_v12, %v2726_v43 }
 0x58a   : > { %v2672_v46 = vpop.permute.xlu1 %2671  ;;  %v2667_v33 = vpop.permute.xlu0 %2666 }
 0x58b   : > { %2855 = vst [vmem:[#allocation8 + $0xb8] sm:$0xff] %v2823_v24  ;;  %2854 = vst [vmem:[#allocation8 + $0xb0] sm:$0xff] %v2822_v32  ;;  %v2729_v36 = vmul.f32 %v2672_v46, %v2537_v44  ;;  %v2728_v35 = vmul.f32 %v2667_v33, %v2536_v45 }
 0x58d   : > { %2761 = vst [vmem:[#allocation5 + $0xc8] sm:$0xff] %v2729_v36  ;;  %v2825_v40 = vadd.f32 %v2793_v7, %v2729_v36  ;;  %2760 = vst [vmem:[#allocation5 + $0xc0] sm:$0xff] %v2728_v35  ;;  %v2824_v39 = vadd.f32 %v2792_v47, %v2728_v35 }
 0x58e   : > { %v2682_v48 = vpop.permute.xlu1 %2681  ;;  %v2677_v50 = vpop.permute.xlu0 %2676 }
 0x58f   : > { %2857 = vst [vmem:[#allocation8 + $0xc8] sm:$0xff] %v2825_v40  ;;  %2856 = vst [vmem:[#allocation8 + $0xc0] sm:$0xff] %v2824_v39  ;;  %v2731_v13 = vmul.f32 %v2682_v48, %v2539_v38  ;;  %v2730_v19 = vmul.f32 %v2677_v50, %v2538_v37 }
 0x591   : > { %2763 = vst [vmem:[#allocation5 + $0xd8] sm:$0xff] %v2731_v13  ;;  %v2827_v26 = vadd.f32 %v2795_v41, %v2731_v13  ;;  %2762 = vst [vmem:[#allocation5 + $0xd0] sm:$0xff] %v2730_v19  ;;  %v2826_v25 = vadd.f32 %v2794_v49, %v2730_v19 }
 0x592   : > { %v2692_v34 = vpop.permute.xlu1 %2691  ;;  %v2687_v0 = vpop.permute.xlu0 %2686 }
 0x593   : > { %2859 = vst [vmem:[#allocation8 + $0xd8] sm:$0xff] %v2827_v26  ;;  %2858 = vst [vmem:[#allocation8 + $0xd0] sm:$0xff] %v2826_v25  ;;  %v2733_v63 = vmul.f32 %v2692_v34, %v2541_v14  ;;  %v2732_v27 = vmul.f32 %v2687_v0, %v2540_v29 }
 0x595   : > { %2765 = vst [vmem:[#allocation5 + $0xe8] sm:$0xff] %v2733_v63  ;;  %v2829_v3 = vadd.f32 %v2797_v1, %v2733_v63  ;;  %2764 = vst [vmem:[#allocation5 + $0xe0] sm:$0xff] %v2732_v27  ;;  %v2828_v8 = vadd.f32 %v2796_v9, %v2732_v27 }
 0x596   : > { %v2702_v22 = vpop.permute.xlu1 %2701  ;;  %v2697_v30 = vpop.permute.xlu0 %2696 }
 0x597   : > { %2861 = vst [vmem:[#allocation8 + $0xe8] sm:$0xff] %v2829_v3  ;;  %2860 = vst [vmem:[#allocation8 + $0xe0] sm:$0xff] %v2828_v8  ;;  %v2735_v57 = vmul.f32 %v2702_v22, %v2543_v31  ;;  %v2734_v58 = vmul.f32 %v2697_v30, %v2542_v6 }
 0x599   : > { %2767 = vst [vmem:[#allocation5 + $0xf8] sm:$0xff] %v2735_v57  ;;  %v2831_v17 = vadd.f32 %v2799_v18, %v2735_v57  ;;  %2766 = vst [vmem:[#allocation5 + $0xf0] sm:$0xff] %v2734_v58  ;;  %v2830_v15 = vadd.f32 %v2798_v28, %v2734_v58 }
 0x59b   : > { %2863 = vst [vmem:[#allocation8 + $0xf8] sm:$0xff] %v2831_v17  ;;  %2862 = vst [vmem:[#allocation8 + $0xf0] sm:$0xff] %v2830_v15 }
 0x59c PF: > { %p2864_p3 = scmp.eq.s32.totalorder %s3997_s19, 1  ;;  %p2865_p12 = scmp.eq.s32.totalorder %s3993_s18, 1 }
 0x59e   : > { %p2866_p0 = pnand %p2865_p12, %p2864_p3 }
 0x59f   : > { %v5271_v11 = vld [vmem:[%s5391_s2] ss:$0 sm:$0xff] (!%p2866_p0)  ;;  %v2872_v23 = vld [vmem:[#allocation4 + $0x8] sm:$0xff] (!%p2866_p0)  ;;  %v2873_v61 = vld [vmem:[#allocation4 + $0x10] sm:$0xff] (!%p2866_p0) }
 0x5a0   : > { %2869 = sbr.rel (%p2866_p0) target bundleno = 1485 (0x5cd), region = 80  ;;  %v2871_v16 = vld [vmem:[#allocation4] sm:$0xff] (!%p2866_p0)  ;;  %v2974_v59 = vld [vmem:[#allocation8 + $0x8] sm:$0xff] (!%p2866_p0)  ;;  %v2910_v60 = vadd.f32 (!%p2866_p0), %v5271_v11, %v2872_v23  ;;  %v2911_v51 = vadd.f32 (!%p2866_p0), %v5271_v11, %v2873_v61  ;;  %v2975_v52 = vld [vmem:[#allocation8 + $0x10] sm:$0xff] (!%p2866_p0) }
 0x5a1   : > { %v2973_v5 = vld [vmem:[#allocation8] sm:$0xff] (!%p2866_p0)  ;;  %v2909_v10 = vadd.f32 (!%p2866_p0), %v5271_v11, %v2871_v16  ;;  %v3006_v62 = vadd.f32 (!%p2866_p0), %v5271_v11, %v2974_v59  ;;  %v2874_v53 = vld [vmem:[#allocation4 + $0x18] sm:$0xff] (!%p2866_p0)  ;;  %v3007_v4 = vadd.f32 (!%p2866_p0), %v5271_v11, %v2975_v52  ;;  %v2876_v2 = vld [vmem:[#allocation4 + $0x28] sm:$0xff] (!%p2866_p0) }
 0x5a2   : > { %v3005_v21 = vadd.f32 (!%p2866_p0), %v5271_v11, %v2973_v5  ;;  %v2976_v55 = vld [vmem:[#allocation8 + $0x18] sm:$0xff] (!%p2866_p0)  ;;  %v2912_v42 = vadd.f32 (!%p2866_p0), %v5271_v11, %v2874_v53  ;;  %v2875_v12 = vld [vmem:[#allocation4 + $0x20] sm:$0xff] (!%p2866_p0)  ;;  %v2942_v43 = vmax.f32 (!%p2866_p0), %v2910_v60, 0.0  ;;  %v2943_v45 = vmax.f32 (!%p2866_p0), %v2911_v51, 0.0  ;;  %v2978_v32 = vld [vmem:[#allocation8 + $0x28] sm:$0xff] (!%p2866_p0) }
 0x5a3   : > { %v2941_v54 = vmax.f32 (!%p2866_p0), %v2909_v10, 0.0  ;;  %v2977_v20 = vld [vmem:[#allocation8 + $0x20] sm:$0xff] (!%p2866_p0)  ;;  %v3038_v44 = vmax.f32 (!%p2866_p0), %v3006_v62, 0.0  ;;  %v3008_v24 = vadd.f32 (!%p2866_p0), %v5271_v11, %v2976_v55  ;;  %v2877_v7 = vld [vmem:[#allocation4 + $0x30] sm:$0xff] (!%p2866_p0)  ;;  %v3039_v47 = vmax.f32 (!%p2866_p0), %v3007_v4, 0.0  ;;  %v2878_v41 = vld [vmem:[#allocation4 + $0x38] sm:$0xff] (!%p2866_p0) }
 0x5a4   : > { %v3037_v56 = vmax.f32 (!%p2866_p0), %v3005_v21, 0.0  ;;  %v2944_v33 = vmax.f32 (!%p2866_p0), %v2912_v42, 0.0  ;;  %v2913_v36 = vadd.f32 (!%p2866_p0), %v5271_v11, %v2875_v12  ;;  %v2979_v35 = vld [vmem:[#allocation8 + $0x30] sm:$0xff] (!%p2866_p0)  ;;  %v3009_v40 = vadd.f32 (!%p2866_p0), %v5271_v11, %v2977_v20  ;;  %v2980_v48 = vld [vmem:[#allocation8 + $0x38] sm:$0xff] (!%p2866_p0)  ;;  %v2879_v14 = vld [vmem:[#allocation4 + $0x40] sm:$0xff] (!%p2866_p0) }
 0x5a5   : > { %v3070_v38 = vadd.f32 (!%p2866_p0), %v3038_v44, %v2942_v43  ;;  %v3040_v37 = vmax.f32 (!%p2866_p0), %v3008_v24, 0.0  ;;  %v2914_v39 = vadd.f32 (!%p2866_p0), %v5271_v11, %v2876_v2  ;;  %v3071_v49 = vadd.f32 (!%p2866_p0), %v3039_v47, %v2943_v45  ;;  %v2981_v29 = vld [vmem:[#allocation8 + $0x40] sm:$0xff] (!%p2866_p0)  ;;  %v2880_v9 = vld [vmem:[#allocation4 + $0x48] sm:$0xff] (!%p2866_p0)  ;;  %v2881_v28 = vld [vmem:[#allocation4 + $0x50] sm:$0xff] (!%p2866_p0) }
 0x5a6   : > { %v3069_v46 = vadd.f32 (!%p2866_p0), %v3037_v56, %v2941_v54  ;;  %v2945_v50 = vmax.f32 (!%p2866_p0), %v2913_v36, 0.0  ;;  %v3010_v13 = vadd.f32 (!%p2866_p0), %v5271_v11, %v2978_v32  ;;  %v2915_v19 = vadd.f32 (!%p2866_p0), %v5271_v11, %v2877_v7  ;;  %v2982_v6 = vld [vmem:[#allocation8 + $0x48] sm:$0xff] (!%p2866_p0)  ;;  %v2983_v30 = vld [vmem:[#allocation8 + $0x50] sm:$0xff] (!%p2866_p0)  ;;  %v2882_v16 = vld [vmem:[#allocation4 + $0x58] sm:$0xff] (!%p2866_p0) }
 0x5a7   : > { %3102 = vst [vmem:[#allocation12 + $0x8] sm:$0xff] %v3070_v38  ;;  %v3072_v26 = vadd.f32 %v3040_v37, %v2944_v33  ;;  %v3041_v25 = vmax.f32 %v3009_v40, 0.0  ;;  %v2946_v1 = vmax.f32 %v2914_v39, 0.0  ;;  %v3011_v34 = vadd.f32 %v5271_v11, %v2979_v35  ;;  %3103 = vst [vmem:[#allocation12 + $0x10] sm:$0xff] %v3071_v49  ;;  %v2984_v5 = vld [vmem:[#allocation8 + $0x58] sm:$0xff]  ;;  %v2883_v61 = vld [vmem:[#allocation4 + $0x60] sm:$0xff] }
 0x5a8   : > { %3101 = vst [vmem:[#allocation12] sm:$0xff] %v3069_v46  ;;  %v3042_v0 = vmax.f32 %v3010_v13, 0.0  ;;  %v2947_v63 = vmax.f32 %v2915_v19, 0.0  ;;  %v2916_v27 = vadd.f32 %v5271_v11, %v2878_v41  ;;  %v3012_v31 = vadd.f32 %v5271_v11, %v2980_v48  ;;  %v2985_v60 = vld [vmem:[#allocation8 + $0x60] sm:$0xff]  ;;  %v2884_v55 = vld [vmem:[#allocation4 + $0x68] sm:$0xff]  ;;  %v2885_v45 = vld [vmem:[#allocation4 + $0x70] sm:$0xff] }
 0x5a9   : > { %3104 = vst [vmem:[#allocation12 + $0x18] sm:$0xff] %v3072_v26  ;;  %v3073_v3 = vadd.f32 %v3041_v25, %v2945_v50  ;;  %v3043_v8 = vmax.f32 %v3011_v34, 0.0  ;;  %v2917_v18 = vadd.f32 %v5271_v11, %v2879_v14  ;;  %v3013_v22 = vadd.f32 %v5271_v11, %v2981_v29  ;;  %v2986_v12 = vld [vmem:[#allocation8 + $0x68] sm:$0xff]  ;;  %v2987_v24 = vld [vmem:[#allocation8 + $0x70] sm:$0xff]  ;;  %v2886_v33 = vld [vmem:[#allocation4 + $0x78] sm:$0xff] }
 0x5aa   : > { %v3074_v57 = vadd.f32 %v3042_v0, %v2946_v1  ;;  %v2948_v58 = vmax.f32 %v2916_v27, 0.0  ;;  %v3044_v17 = vmax.f32 %v3012_v31, 0.0  ;;  %v2918_v15 = vadd.f32 %v5271_v11, %v2880_v9  ;;  %v2988_v36 = vld [vmem:[#allocation8 + $0x78] sm:$0xff]  ;;  %v2887_v39 = vld [vmem:[#allocation4 + $0x80] sm:$0xff]  ;;  %v2888_v19 = vld [vmem:[#allocation4 + $0x88] sm:$0xff] }
 0x5ab   : > { %3105 = vst [vmem:[#allocation12 + $0x20] sm:$0xff] %v3073_v3  ;;  %v3075_v10 = vadd.f32 %v3043_v8, %v2947_v63  ;;  %v2949_v21 = vmax.f32 %v2917_v18, 0.0  ;;  %v3045_v23 = vmax.f32 %v3013_v22, 0.0  ;;  %v3014_v59 = vadd.f32 %v5271_v11, %v2982_v6  ;;  %v2989_v41 = vld [vmem:[#allocation8 + $0x80] sm:$0xff]  ;;  %v2990_v1 = vld [vmem:[#allocation8 + $0x88] sm:$0xff]  ;;  %v2889_v27 = vld [vmem:[#allocation4 + $0x90] sm:$0xff] }
 0x5ac   : > { %3106 = vst [vmem:[#allocation12 + $0x28] sm:$0xff] %v3074_v57  ;;  %v3076_v62 = vadd.f32 %v3044_v17, %v2948_v58  ;;  %v2950_v51 = vmax.f32 %v2918_v15, 0.0  ;;  %v2919_v52 = vadd.f32 %v5271_v11, %v2881_v28  ;;  %v3015_v53 = vadd.f32 %v5271_v11, %v2983_v30  ;;  %v2991_v31 = vld [vmem:[#allocation8 + $0x90] sm:$0xff]  ;;  %v2890_v22 = vld [vmem:[#allocation4 + $0x98] sm:$0xff]  ;;  %v2891_v15 = vld [vmem:[#allocation4 + $0xa0] sm:$0xff] }
 0x5ad   : > { %3107 = vst [vmem:[#allocation12 + $0x30] sm:$0xff] %v3075_v10  ;;  %v3077_v54 = vadd.f32 %v3045_v23, %v2949_v21  ;;  %v3046_v56 = vmax.f32 %v3014_v59, 0.0  ;;  %v2920_v4 = vadd.f32 %v5271_v11, %v2882_v16  ;;  %v3016_v42 = vadd.f32 %v5271_v11, %v2984_v5  ;;  %v2992_v28 = vld [vmem:[#allocation8 + $0x98] sm:$0xff]  ;;  %v2993_v16 = vld [vmem:[#allocation8 + $0xa0] sm:$0xff]  ;;  %v2892_v59 = vld [vmem:[#allocation4 + $0xa8] sm:$0xff] }
 0x5ae   : > { %3108 = vst [vmem:[#allocation12 + $0x38] sm:$0xff] %v3076_v62  ;;  %v2951_v20 = vmax.f32 %v2919_v52, 0.0  ;;  %v3047_v2 = vmax.f32 %v3015_v53, 0.0  ;;  %v2921_v43 = vadd.f32 %v5271_v11, %v2883_v61  ;;  %v3017_v44 = vadd.f32 %v5271_v11, %v2985_v60  ;;  %v2994_v52 = vld [vmem:[#allocation8 + $0xa8] sm:$0xff] }
 0x5af   : > { %3109 = vst [vmem:[#allocation12 + $0x40] sm:$0xff] %v3077_v54  ;;  %v3078_v32 = vadd.f32 %v3046_v56, %v2950_v51  ;;  %v2952_v7 = vmax.f32 %v2920_v4, 0.0  ;;  %v3048_v46 = vmax.f32 %v3016_v42, 0.0  ;;  %v2922_v47 = vadd.f32 %v5271_v11, %v2884_v55  ;;  %v2893_v4 = vld [vmem:[#allocation4 + $0xb0] sm:$0xff] }
 0x5b0   : > { %v3079_v35 = vadd.f32 %v3047_v2, %v2951_v20  ;;  %v2953_v38 = vmax.f32 %v2921_v43, 0.0  ;;  %v3049_v37 = vmax.f32 %v3017_v44, 0.0  ;;  %v3018_v40 = vadd.f32 %v5271_v11, %v2986_v12  ;;  %v2995_v42 = vld [vmem:[#allocation8 + $0xb0] sm:$0xff]  ;;  %v2894_v44 = vld [vmem:[#allocation4 + $0xb8] sm:$0xff] }
 0x5b1   : > { %3110 = vst [vmem:[#allocation12 + $0x48] sm:$0xff] %v3078_v32  ;;  %v3080_v48 = vadd.f32 %v3048_v46, %v2952_v7  ;;  %v2954_v49 = vmax.f32 %v2922_v47, 0.0  ;;  %v2923_v50 = vadd.f32 %v5271_v11, %v2885_v45  ;;  %v3019_v13 = vadd.f32 %v5271_v11, %v2987_v24  ;;  %v2996_v45 = vld [vmem:[#allocation8 + $0xb8] sm:$0xff]  ;;  %v2895_v47 = vld [vmem:[#allocation4 + $0xc0] sm:$0xff] }
 0x5b2   : > { %3111 = vst [vmem:[#allocation12 + $0x50] sm:$0xff] %v3079_v35  ;;  %v3081_v14 = vadd.f32 %v3049_v37, %v2953_v38  ;;  %v3050_v29 = vmax.f32 %v3018_v40, 0.0  ;;  %v2924_v26 = vadd.f32 %v5271_v11, %v2886_v33  ;;  %v3020_v25 = vadd.f32 %v5271_v11, %v2988_v36  ;;  %v2997_v33 = vld [vmem:[#allocation8 + $0xc0] sm:$0xff]  ;;  %v2896_v40 = vld [vmem:[#allocation4 + $0xc8] sm:$0xff] }
 0x5b3   : > { %3112 = vst [vmem:[#allocation12 + $0x58] sm:$0xff] %v3080_v48  ;;  %v2955_v34 = vmax.f32 %v2923_v50, 0.0  ;;  %v3051_v9 = vmax.f32 %v3019_v13, 0.0  ;;  %v2925_v0 = vadd.f32 %v5271_v11, %v2887_v39  ;;  %v3021_v63 = vadd.f32 %v5271_v11, %v2989_v41  ;;  %v2998_v50 = vld [vmem:[#allocation8 + $0xc8] sm:$0xff] }
 0x5b4   : > { %3113 = vst [vmem:[#allocation12 + $0x60] sm:$0xff] %v3081_v14  ;;  %v3082_v6 = vadd.f32 %v3050_v29, %v2954_v49  ;;  %v2956_v3 = vmax.f32 %v2924_v26, 0.0  ;;  %v3052_v8 = vmax.f32 %v3020_v25, 0.0  ;;  %v2926_v18 = vadd.f32 %v5271_v11, %v2888_v19  ;;  %v2897_v26 = vld [vmem:[#allocation4 + $0xd0] sm:$0xff] }
 0x5b5   : > { %v3083_v30 = vadd.f32 %v3051_v9, %v2955_v34  ;;  %v2957_v57 = vmax.f32 %v2925_v0, 0.0  ;;  %v3053_v58 = vmax.f32 %v3021_v63, 0.0  ;;  %v3022_v17 = vadd.f32 %v5271_v11, %v2990_v1  ;;  %v2999_v25 = vld [vmem:[#allocation8 + $0xd0] sm:$0xff]  ;;  %v2898_v63 = vld [vmem:[#allocation4 + $0xd8] sm:$0xff] }
 0x5b6   : > { %3114 = vst [vmem:[#allocation12 + $0x68] sm:$0xff] %v3082_v6  ;;  %v3084_v5 = vadd.f32 %v3052_v8, %v2956_v3  ;;  %v2958_v10 = vmax.f32 %v2926_v18, 0.0  ;;  %v2927_v21 = vadd.f32 %v5271_v11, %v2889_v27  ;;  %v3023_v23 = vadd.f32 %v5271_v11, %v2991_v31  ;;  %v3000_v27 = vld [vmem:[#allocation8 + $0xd8] sm:$0xff]  ;;  %v2899_v18 = vld [vmem:[#allocation4 + $0xe0] sm:$0xff] }
 0x5b7   : > { %3115 = vst [vmem:[#allocation12 + $0x70] sm:$0xff] %v3083_v30  ;;  %v3085_v61 = vadd.f32 %v3053_v58, %v2957_v57  ;;  %v3054_v60 = vmax.f32 %v3022_v17, 0.0  ;;  %v2928_v62 = vadd.f32 %v5271_v11, %v2890_v22  ;;  %v3024_v51 = vadd.f32 %v5271_v11, %v2992_v28  ;;  %v3001_v22 = vld [vmem:[#allocation8 + $0xe0] sm:$0xff]  ;;  %v2900_v17 = vld [vmem:[#allocation4 + $0xe8] sm:$0xff] }
 0x5b8   : > { %3116 = vst [vmem:[#allocation12 + $0x78] sm:$0xff] %v3084_v5  ;;  %v2959_v53 = vmax.f32 %v2927_v21, 0.0  ;;  %v3055_v55 = vmax.f32 %v3023_v23, 0.0  ;;  %v2929_v54 = vadd.f32 %v5271_v11, %v2891_v15  ;;  %v3025_v56 = vadd.f32 %v5271_v11, %v2993_v16  ;;  %v3002_v21 = vld [vmem:[#allocation8 + $0xe8] sm:$0xff] }
 0x5b9   : > { %3117 = vst [vmem:[#allocation12 + $0x80] sm:$0xff] %v3085_v61  ;;  %v3086_v12 = vadd.f32 %v3054_v60, %v2958_v10  ;;  %v2960_v20 = vmax.f32 %v2928_v62, 0.0  ;;  %v3056_v2 = vmax.f32 %v3024_v51, 0.0  ;;  %v2930_v43 = vadd.f32 %v5271_v11, %v2892_v59  ;;  %v2901_v62 = vld [vmem:[#allocation4 + $0xf0] sm:$0xff] }
 0x5ba   : > { %v3087_v24 = vadd.f32 %v3055_v55, %v2959_v53  ;;  %v2961_v32 = vmax.f32 %v2929_v54, 0.0  ;;  %v3057_v7 = vmax.f32 %v3025_v56, 0.0  ;;  %v3026_v46 = vadd.f32 %v5271_v11, %v2994_v52  ;;  %v3003_v51 = vld [vmem:[#allocation8 + $0xf0] sm:$0xff]  ;;  %v2902_v56 = vld [vmem:[#allocation4 + $0xf8] sm:$0xff] }
 0x5bb   : > { %3118 = vst [vmem:[#allocation12 + $0x88] sm:$0xff] %v3086_v12  ;;  %v3088_v36 = vadd.f32 %v3056_v2, %v2960_v20  ;;  %v2962_v35 = vmax.f32 %v2930_v43, 0.0  ;;  %v2931_v38 = vadd.f32 %v5271_v11, %v2893_v4  ;;  %v3027_v37 = vadd.f32 %v5271_v11, %v2995_v42  ;;  %v3004_v4 = vld [vmem:[#allocation8 + $0xf8] sm:$0xff] }
 0x5bc   : > { %3119 = vst [vmem:[#allocation12 + $0x90] sm:$0xff] %v3087_v24  ;;  %v3089_v39 = vadd.f32 %v3057_v7, %v2961_v32  ;;  %v3058_v41 = vmax.f32 %v3026_v46, 0.0  ;;  %v2932_v48 = vadd.f32 %v5271_v11, %v2894_v44  ;;  %v3028_v49 = vadd.f32 %v5271_v11, %v2996_v45 }
 0x5bd   : > { %3120 = vst [vmem:[#allocation12 + $0x98] sm:$0xff] %v3088_v36  ;;  %v2963_v13 = vmax.f32 %v2931_v38, 0.0  ;;  %v3059_v19 = vmax.f32 %v3027_v37, 0.0  ;;  %v2933_v14 = vadd.f32 %v5271_v11, %v2895_v47  ;;  %v3029_v29 = vadd.f32 %v5271_v11, %v2997_v33 }
 0x5be   : > { %3121 = vst [vmem:[#allocation12 + $0xa0] sm:$0xff] %v3089_v39  ;;  %v3090_v1 = vadd.f32 %v3058_v41, %v2962_v35  ;;  %v2964_v34 = vmax.f32 %v2932_v48, 0.0  ;;  %v3060_v9 = vmax.f32 %v3028_v49, 0.0  ;;  %v2934_v0 = vadd.f32 %v5271_v11, %v2896_v40 }
 0x5bf   : > { %v3091_v31 = vadd.f32 %v3059_v19, %v2963_v13  ;;  %v2965_v6 = vmax.f32 %v2933_v14, 0.0  ;;  %v3061_v3 = vmax.f32 %v3029_v29, 0.0  ;;  %v3030_v8 = vadd.f32 %v5271_v11, %v2998_v50 }
 0x5c0   : > { %3122 = vst [vmem:[#allocation12 + $0xa8] sm:$0xff] %v3090_v1  ;;  %v3092_v28 = vadd.f32 %v3060_v9, %v2964_v34  ;;  %v2966_v30 = vmax.f32 %v2934_v0, 0.0  ;;  %v2935_v57 = vadd.f32 %v5271_v11, %v2897_v26  ;;  %v3031_v58 = vadd.f32 %v5271_v11, %v2999_v25 }
 0x5c1   : > { %3123 = vst [vmem:[#allocation12 + $0xb0] sm:$0xff] %v3091_v31  ;;  %v3093_v15 = vadd.f32 %v3061_v3, %v2965_v6  ;;  %v3062_v16 = vmax.f32 %v3030_v8, 0.0  ;;  %v2936_v5 = vadd.f32 %v5271_v11, %v2898_v63  ;;  %v3032_v10 = vadd.f32 %v5271_v11, %v3000_v27 }
 0x5c2   : > { %3124 = vst [vmem:[#allocation12 + $0xb8] sm:$0xff] %v3092_v28  ;;  %v2967_v23 = vmax.f32 %v2935_v57, 0.0  ;;  %v3063_v59 = vmax.f32 %v3031_v58, 0.0  ;;  %v2937_v61 = vadd.f32 %v5271_v11, %v2899_v18  ;;  %v3033_v60 = vadd.f32 %v5271_v11, %v3001_v22 }
 0x5c3   : > { %3125 = vst [vmem:[#allocation12 + $0xc0] sm:$0xff] %v3093_v15  ;;  %v3094_v52 = vadd.f32 %v3062_v16, %v2966_v30  ;;  %v2968_v53 = vmax.f32 %v2936_v5, 0.0  ;;  %v3064_v55 = vmax.f32 %v3032_v10, 0.0  ;;  %v2938_v54 = vadd.f32 %v5271_v11, %v2900_v17 }
 0x5c4   : > { %v3095_v42 = vadd.f32 %v3063_v59, %v2967_v23  ;;  %v2969_v12 = vmax.f32 %v2937_v61, 0.0  ;;  %v3065_v20 = vmax.f32 %v3033_v60, 0.0  ;;  %v3034_v2 = vadd.f32 %v5271_v11, %v3002_v21 }
 0x5c5   : > { %3126 = vst [vmem:[#allocation12 + $0xc8] sm:$0xff] %v3094_v52  ;;  %v3096_v43 = vadd.f32 %v3064_v55, %v2968_v53  ;;  %v2970_v44 = vmax.f32 %v2938_v54, 0.0  ;;  %v2939_v45 = vadd.f32 %v5271_v11, %v2901_v62  ;;  %v3035_v24 = vadd.f32 %v5271_v11, %v3003_v51 }
 0x5c6   : > { %3127 = vst [vmem:[#allocation12 + $0xd0] sm:$0xff] %v3095_v42  ;;  %v3097_v32 = vadd.f32 %v3065_v20, %v2969_v12  ;;  %v3066_v7 = vmax.f32 %v3034_v2, 0.0  ;;  %v2940_v46 = vadd.f32 %v5271_v11, %v2902_v56  ;;  %v3036_v47 = vadd.f32 %v5271_v11, %v3004_v4 }
 0x5c7   : > { %3128 = vst [vmem:[#allocation12 + $0xd8] sm:$0xff] %v3096_v43  ;;  %v2971_v33 = vmax.f32 %v2939_v45, 0.0  ;;  %v3067_v36 = vmax.f32 %v3035_v24, 0.0 }
 0x5c8   : > { %3129 = vst [vmem:[#allocation12 + $0xe0] sm:$0xff] %v3097_v32  ;;  %v3098_v35 = vadd.f32 %v3066_v7, %v2970_v44  ;;  %v2972_v38 = vmax.f32 %v2940_v46, 0.0  ;;  %v3068_v37 = vmax.f32 %v3036_v47, 0.0 }
 0x5c9   : > { %v3099_v40 = vadd.f32 %v3067_v36, %v2971_v33 }
 0x5ca   : > { %3130 = vst [vmem:[#allocation12 + $0xe8] sm:$0xff] %v3098_v35  ;;  %v3100_v39 = vadd.f32 %v3068_v37, %v2972_v38 }
 0x5cb   : > { %3131 = vst [vmem:[#allocation12 + $0xf0] sm:$0xff] %v3099_v40 }
 0x5cc   : > { %3132 = vst [vmem:[#allocation12 + $0xf8] sm:$0xff] %v3100_v39 }
 0x5cd PF: > { %p5339_p4 = scmp.eq.s32.totalorder %s3218_s23, 3  ;;  %s4019_s19 = smov [#allocation12]  }
 0x5ce   : > { %s3139_s13 = sshll.u32 %s4019_s19, 4  ;;  %s3140_s13 = int_to_ptr.vmem [resolvable:$true] %s3139_s13 }
 0x5cf   : > { %s3913_s30 = scalar_lea.vmem %s3140_s13, 4096  ;;  %p3920_p9 = scmp.lt.s32.totalorder %s3140_s13, %s3140_s13 }
 0x5d0   : > { %p3914_p10 = scmp.ne.s32.totalorder %s3140_s13, %s3913_s30  ;;  %p3921_p7 = scmp.lt.s32.totalorder %s3913_s30, %s3913_s30 }
 0x5d2   : > { %p3915_p5 = pnand %p3914_p10, %p5339_p4  ;;  %p3922_p8 = por %p3921_p7, %p3920_p9 }
 0x5d4   : > { %p3916_p6 = pneg %p3915_p5 }
 0x5d6   : > { %p3923_p11 = pnand %p3922_p8, %p3916_p6 }
 0x5d8   : > { %3926 = shalt.err (!%p3923_p11)
}
 0x5d9   : > { %s3927_s23 = scalar_lea.hbm %s5393_s4, 4096 }
 0x5da   : > { %p3928_p13 = scmp.ne.s32.totalorder %s5393_s4, %s3927_s23  ;;  %p3933_p3 = scmp.lt.u32.totalorder %s3927_s23, %s5393_s4 }
 0x5dc   : > { %p3929_p1 = pnand %p3928_p13, %p5339_p4 }
 0x5de   : > { %p3930_p2 = pneg %p3929_p1 }
 0x5e0   : > { %p3935_p12 = pnand %p3933_p3, %p3930_p2 }
 0x5e2   : > { %3938 = shalt.err (!%p3935_p12)
}
 0x5e3   : > { %s4020_s15 = smov 128   ;;  %s4021_s10 = smov 8  }
 0x5e4   : > { %3791 = dma.vmem_to_hbm [thread:$0]  (%p5339_p4), %s3140_s13, 4096, %s5393_s4, [#allocation11], %s4020_s15, %s4020_s15, %s4021_s10  }
 0x5e5   : > { %3976 = dma.done.wait (%p5339_p4), [#allocation11], 4096  }
 0x5e6   : > { %3978 = vsyncadd (%p5339_p4), [#allocation11], 4294963200 }
 0x5e7 PF: > { %s18_s22 = sadd.s32 1, %s4009_s22   ;;  %s5506_s15 = smov %s3985_s16 }
 0x5e8   : > { %p15_p0 = scmp.ge.s32.totalorder %s18_s22, 6   ;;  %s5507_s16 = smov %s3989_s17 }
 0x5e9   : > { %s5508_s17 = smov %s4105_s29  ;;  %s5509_s18 = smov %s4001_s20 }
 0x5ea   : > { %s5510_s19 = smov %s4005_s21  ;;  %s5511_s20 = smov %s5514_s24 }
 0x5eb   : > { %s5512_s21 = smov %s5518_s25  ;;  %17 = sbr.rel (!%p15_p0) target bundleno = 6 (0x6), region = 120 }
 0x5f2   :  { %3155 = vsyncpa [#allocation10], 1 }
 0x5f3   :  { %3157 = vsyncpa [#allocation10 + $0x1], 1 }
 0x5f4   :  { %3158 = vsyncpa [#allocation11], 1 }
 0x5f5   :  { %3160 = vsyncpa [#allocation11 + $0x1], 1 }

</bundles_post_ra>
